<compile_context>
chip_gen: v5e
topology: v5e:2x2
jax: 0.10.0
libtpu: 0.0.40
codegen_flags: <defaults>
</compile_context>

<pallas_src>
import jax
import jax.numpy as jnp
from jax.experimental import pallas as pl
from jax.experimental.pallas import tpu as pltpu

T, F = 15, 144            # seq length, feature dim (DAIN input_dim = 144)
KIN = T * F               # 2160
HID, OUT = 512, 3
OUT_PAD = 128             # lane-dense padded output width


# ---------------------------------------------------------------- kernel -----

def mlp_kernel(x_ref, w1_ref, b1_ref, w2_ref, b2_ref, o_ref):
    # x_ref: (tb, 2160) time-major flattened input block (f32).
    # w1_ref: (2160, 512) bf16, DAIN already folded in (see prepare_params).
    h = jnp.dot(x_ref[...].astype(jnp.bfloat16), w1_ref[...],
                preferred_element_type=jnp.float32)              # (tb, 512) f32 acc
    h = jnp.maximum(h + b1_ref[...], 0.0)                        # +bias, ReLU
    # TODO(synk): nn.Dropout(p=0.5) is identity at inference; no op emitted
    # (this kernel is inference-only).
    o = jnp.dot(h, w2_ref[...],
                preferred_element_type=jnp.float32) + b2_ref[...]   # (tb, 128)
    o_ref[...] = o.astype(o_ref.dtype)


# -------------------------------------------------------- weight preparation -

def prepare_params(wmean, w1, b1, w2, b2):
    """One-time (outside jit) weight transform. Fold is mathematically exact;
    the only approximation is the final bf16 cast of w1_eff."""
    # Permute w1 columns from torch flatten order (f*T + t) to time-major (t*F + f).
    w1_perm = jnp.transpose(w1.reshape(HID, F, T), (2, 1, 0)).reshape(KIN, HID)
    # Fold DAIN:  (x - avg @ Wmean^T)_flat @ W1_perm
    #           = x_flat @ (W1_perm - tile((Wmean^T @ sum_t W1_t) / T, (T,1)))
    w1_sum_t = w1_perm.reshape(T, F, HID).sum(axis=0)            # (F, HID)
    corr = (wmean.T @ w1_sum_t) / T                              # (F, HID)
    w1_eff = (w1_perm - jnp.tile(corr, (T, 1)))                  # (2160, 512) f32
    w1_eff = w1_eff.astype(jnp.bfloat16)                         # bf16 MXU weights

    b1r = b1.reshape(1, HID).astype(jnp.float32)
    # Pre-transpose w2 and pad the 3-wide output to 128 lanes (dense stores).
    w2_pad = jnp.zeros((HID, OUT_PAD), jnp.float32).at[:, :OUT].set(w2.T)
    b2_pad = jnp.zeros((1, OUT_PAD), jnp.float32).at[:, :OUT].set(b2)
    return w1_eff, b1r, w2_pad, b2_pad


# --------------------------------------------------------------- wrappers ----

def _round_up(x, m):
    return ((x + m - 1) // m) * m


def _choose_tile_and_vmem(B):
    """Generation-aware batch tile + VMEM budget."""
    try:
        info = pltpu.get_tpu_info()
        vmem_bytes = int(getattr(info, "vmem_capacity_bytes", 64 << 20))
    except Exception:
        vmem_bytes = 64 << 20                       # conservative (v7x-style) default
    big_vmem = vmem_bytes >= (100 << 20)            # v5e/v6e: 128 MiB; v7x: 64 MiB
    tile_cap = 1024 if big_vmem else 512
    vmem_limit = (64 << 20) if big_vmem else (44 << 20)

    if B < 16:
        tb = B                                      # one tile; block == full array dims
    else:
        # >=2 grid tiles so v7x's 2nd TensorCore gets work; sublane-aligned (8).
        tb = min(tile_cap, _round_up(pl.cdiv(B, 2), 8))
    return tb, vmem_limit


def _head_call(flat, w1_eff, b1r, w2_pad, b2_pad):
    B = flat.shape[0]
    tb, vmem_limit = _choose_tile_and_vmem(B)
    grid = (pl.cdiv(B, tb),)

    flops = 2 * B * KIN * HID + 2 * B * HID * OUT_PAD
    bytes_accessed = (4 * B * KIN            # x (f32)
                      + 2 * KIN * HID        # w1_eff (bf16)
                      + 4 * HID * OUT_PAD    # w2 (f32)
                      + 4 * (HID + OUT_PAD)  # biases
                      + 4 * B * OUT_PAD)     # out (f32)

    resident = dict(pipeline_mode=pl.Buffered(1))   # single-buffer the constants

    return pl.pallas_call(
        mlp_kernel,
        out_shape=jax.ShapeDtypeStruct((B, OUT_PAD), jnp.float32),
        grid_spec=pltpu.PrefetchScalarGridSpec(
            num_scalar_prefetch=0,
            grid=grid,
            in_specs=[
                pl.BlockSpec((tb, KIN), lambda i: (i, 0)),                    # x tile (double-buffered)
                pl.BlockSpec((KIN, HID), lambda i: (0, 0), **resident),       # w1_eff (resident)
                pl.BlockSpec((1, HID), lambda i: (0, 0), **resident),         # b1     (resident)
                pl.BlockSpec((HID, OUT_PAD), lambda i: (0, 0), **resident),   # w2     (resident)
                pl.BlockSpec((1, OUT_PAD), lambda i: (0, 0), **resident),     # b2     (resident)
            ],
            out_specs=pl.BlockSpec((tb, OUT_PAD), lambda i: (i, 0)),
        ),
        compiler_params=pltpu.CompilerParams(
            dimension_semantics=("parallel",),      # shard batch tiles across TCs (v7x)
            vmem_limit_bytes=vmem_limit,
        ),
        cost_estimate=pl.CostEstimate(
            flops=flops, transcendentals=0, bytes_accessed=bytes_accessed),
    )(flat, w1_eff, b1r, w2_pad, b2_pad)


@jax.jit
def mlp_forward(x, w1_eff, b1r, w2_pad, b2_pad):
    # x: (B, 15, 144) — same layout as the torch module's input.
    B = x.shape[0]
    flat = x.reshape(B, KIN)          # contiguous (time-major) flatten: free in XLA
    out_pad = _head_call(flat, w1_eff, b1r, w2_pad, b2_pad)   # (B, 128)
    return out_pad[:, :OUT]                                    # (B, 3)


# --------------------------------------------------------------- reference ---

def ref_forward(x, wmean, w1, b1, w2, b2):
    # Faithful (unfused, full-f32) re-implementation of the torch forward.
    xt = jnp.transpose(x, (0, 2, 1))                 # (B, 144, 15)
    avg = jnp.mean(xt, axis=2)                       # (B, 144)
    aavg = avg @ wmean.T
    xd = xt - aavg[:, :, None]
    flat = xd.reshape(x.shape[0], KIN)               # torch flatten order (f*T + t)
    h = jnp.maximum(flat @ w1.T + b1, 0.0)
    return h @ w2.T + b2


# -------------------------------------------------------------------- main ---

if __name__ == "__main__":
    key = jax.random.PRNGKey(0)
    kx, k1, k2, k3, k4, kx2 = jax.random.split(key, 6)

    # DAIN mean_layer: Linear(144, 144, bias=False), weight initialized to identity.
    wmean = jnp.eye(F, dtype=jnp.float32)

    # base: Linear(2160, 512) / Linear(512, 3), PyTorch-style uniform init.
    lim1 = 1.0 / float(jnp.sqrt(float(KIN)))
    w1 = jax.random.uniform(k1, (HID, KIN), jnp.float32, -lim1, lim1)
    b1 = jax.random.uniform(k2, (HID,), jnp.float32, -lim1, lim1)
    lim2 = 1.0 / float(jnp.sqrt(float(HID)))
    w2 = jax.random.uniform(k3, (OUT, HID), jnp.float32, -lim2, lim2)
    b2 = jax.random.uniform(k4, (OUT,), jnp.float32, -lim2, lim2)

    # One-time weight preparation (outside the per-step jit).
    params = prepare_params(wmean, w1, b1, w2, b2)
    params = jax.block_until_ready(params)
    w1_eff, b1r, w2_pad, b2_pad = params

    # Tolerance reflects the bf16 first-matmul cast (review-approved); the
    # actual error over K=2160 with f32 accumulation is ~1e-3.
    RTOL = ATOL = 2e-2

    # Small batch (single grid tile path).
    B = 2
    x = jax.random.normal(kx, (B, T, F), dtype=jnp.float32)
    out = jax.block_until_ready(mlp_forward(x, w1_eff, b1r, w2_pad, b2_pad))
    ref = ref_forward(x, wmean, w1, b1, w2, b2)
    assert out.shape == (B, OUT), out.shape
    assert jnp.allclose(out, ref, rtol=RTOL, atol=ATOL)

    # Slightly larger batch: exercises the multi-tile grid (>=2 steps,
    # "parallel" batch axis, ragged last tile).
    B2 = 48
    x2 = jax.random.normal(kx2, (B2, T, F), dtype=jnp.float32)
    out2 = jax.block_until_ready(mlp_forward(x2, w1_eff, b1r, w2_pad, b2_pad))
    ref2 = ref_forward(x2, wmean, w1, b1, w2, b2)
    assert out2.shape == (B2, OUT), out2.shape
    assert jnp.allclose(out2, ref2, rtol=RTOL, atol=ATOL)

    print("KERNEL_OK")
</pallas_src>

<mosaic_0001>
module attributes {stable_mosaic.version = 11 : i64} {
  func.func @mlp_kernel(%arg0: i32, %arg1: memref<2x2160xf32, #tpu.memory_space<vmem>>, %arg2: memref<2160x512xbf16, #tpu.memory_space<vmem>>, %arg3: memref<1x512xf32, #tpu.memory_space<vmem>>, %arg4: memref<512x128xf32, #tpu.memory_space<vmem>>, %arg5: memref<1x128xf32, #tpu.memory_space<vmem>>, %arg6: memref<2x128xf32, #tpu.memory_space<vmem>>) attributes {dimension_semantics = [#tpu.dimension_semantics<parallel>], iteration_bounds = array<i64: 1>, scalar_prefetch = 0 : i64, scratch_operands = 0 : i64, tpu.core_type = #tpu.core_type<tc>, window_params = [{transform_indices = @transform_0, window_bounds = array<i64: 2, 2160>}, {pipeline_mode = #tpu.pipeline_mode<synchronous>, transform_indices = @transform_1, window_bounds = array<i64: 2160, 512>}, {pipeline_mode = #tpu.pipeline_mode<synchronous>, transform_indices = @transform_2, window_bounds = array<i64: 1, 512>}, {pipeline_mode = #tpu.pipeline_mode<synchronous>, transform_indices = @transform_3, window_bounds = array<i64: 512, 128>}, {pipeline_mode = #tpu.pipeline_mode<synchronous>, transform_indices = @transform_4, window_bounds = array<i64: 1, 128>}, {transform_indices = @transform_5, window_bounds = array<i64: 2, 128>}]} {
    %c0 = arith.constant 0 : index
    %c0_0 = arith.constant 0 : index
    %0 = vector.load %arg1[%c0, %c0_0] : memref<2x2160xf32, #tpu.memory_space<vmem>>, vector<2x2160xf32>
    %1 = arith.truncf %0 : vector<2x2160xf32> to vector<2x2160xbf16>
    %c0_1 = arith.constant 0 : index
    %c0_2 = arith.constant 0 : index
    %2 = vector.load %arg2[%c0_1, %c0_2] : memref<2160x512xbf16, #tpu.memory_space<vmem>>, vector<2160x512xbf16>
    %cst = arith.constant dense<0.000000e+00> : vector<2x512xf32>
    %3 = tpu.matmul %1, %2, %cst {dimension_numbers = #tpu.dot_dimension_numbers<[1], [0], [0], [1], [0, 0, 1, 1], [], []>} : vector<2x2160xbf16>, vector<2160x512xbf16>, vector<2x512xf32> -> vector<2x512xf32>
    %c0_3 = arith.constant 0 : index
    %c0_4 = arith.constant 0 : index
    %4 = vector.load %arg3[%c0_3, %c0_4] : memref<1x512xf32, #tpu.memory_space<vmem>>, vector<1x512xf32>
    %5 = vector.broadcast %4 : vector<1x512xf32> to vector<2x512xf32>
    %6 = arith.addf %3, %5 : vector<2x512xf32>
    %cst_5 = arith.constant 0.000000e+00 : f32
    %7 = vector.broadcast %cst_5 : f32 to vector<2x512xf32>
    %8 = arith.maximumf %6, %7 : vector<2x512xf32>
    %c0_6 = arith.constant 0 : index
    %c0_7 = arith.constant 0 : index
    %9 = vector.load %arg4[%c0_6, %c0_7] : memref<512x128xf32, #tpu.memory_space<vmem>>, vector<512x128xf32>
    %cst_8 = arith.constant dense<0.000000e+00> : vector<2x128xf32>
    %10 = tpu.matmul %8, %9, %cst_8 {dimension_numbers = #tpu.dot_dimension_numbers<[1], [0], [0], [1], [0, 0, 1, 1], [], []>} : vector<2x512xf32>, vector<512x128xf32>, vector<2x128xf32> -> vector<2x128xf32>
    %c0_9 = arith.constant 0 : index
    %c0_10 = arith.constant 0 : index
    %11 = vector.load %arg5[%c0_9, %c0_10] : memref<1x128xf32, #tpu.memory_space<vmem>>, vector<1x128xf32>
    %12 = vector.broadcast %11 : vector<1x128xf32> to vector<2x128xf32>
    %13 = arith.addf %10, %12 : vector<2x128xf32>
    %c0_11 = arith.constant 0 : index
    %c0_12 = arith.constant 0 : index
    %14 = vector.load %arg6[%c0_11, %c0_12] : memref<2x128xf32, #tpu.memory_space<vmem>>, vector<2x128xf32>
    tpu.vector_store %arg6[%c0_11, %c0_12], %13 {strides = array<i32>} : memref<2x128xf32, #tpu.memory_space<vmem>>, vector<2x128xf32>,
    return
  }
  func.func @transform_0(%arg0: i32) -> (i32, i32) {
    %c0_i32 = arith.constant 0 : i32
    %c0_i32_0 = arith.constant 0 : i32
    return %arg0, %c0_i32 : i32, i32
  }
  func.func @transform_1(%arg0: i32) -> (i32, i32) {
    %c0_i32 = arith.constant 0 : i32
    %c0_i32_0 = arith.constant 0 : i32
    %c0_i32_1 = arith.constant 0 : i32
    return %c0_i32, %c0_i32_0 : i32, i32
  }
  func.func @transform_2(%arg0: i32) -> (i32, i32) {
    %c0_i32 = arith.constant 0 : i32
    %c0_i32_0 = arith.constant 0 : i32
    %c0_i32_1 = arith.constant 0 : i32
    return %c0_i32, %c0_i32_0 : i32, i32
  }
  func.func @transform_3(%arg0: i32) -> (i32, i32) {
    %c0_i32 = arith.constant 0 : i32
    %c0_i32_0 = arith.constant 0 : i32
    %c0_i32_1 = arith.constant 0 : i32
    return %c0_i32, %c0_i32_0 : i32, i32
  }
  func.func @transform_4(%arg0: i32) -> (i32, i32) {
    %c0_i32 = arith.constant 0 : i32
    %c0_i32_0 = arith.constant 0 : i32
    %c0_i32_1 = arith.constant 0 : i32
    return %c0_i32, %c0_i32_0 : i32, i32
  }
  func.func @transform_5(%arg0: i32) -> (i32, i32) {
    %c0_i32 = arith.constant 0 : i32
    %c0_i32_0 = arith.constant 0 : i32
    return %arg0, %c0_i32 : i32, i32
  }
}

</mosaic_0001>

<bundles_post_ra>
// kernel: mlp_forward.1
= control target key start
LH: loop header
LB: loop body
LE: loop exit
PB: predicated region body
PF: predicated region fallthrough
CT: control target
= control target key end

     0   :  { %10 = vsyncpa [#allocation3], 0  ;;  %s7557_s0 = inlined_call_operand.vmem [shape: f32[2,2160], index: 0, kind: input, shape index: {}]   ;;  %s7558_s1 = inlined_call_operand.hbm [shape: bf16[2160,512], index: 1, kind: input, shape index: {}]   ;;  %s7559_s2 = inlined_call_operand.hbm [shape: f32[1,512], index: 2, kind: input, shape index: {}]   ;;  %s7560_s3 = inlined_call_operand.hbm [shape: f32[512,128], index: 3, kind: input, shape index: {}]   ;;  %s7561_s4 = inlined_call_operand.hbm [shape: f32[1,128], index: 4, kind: input, shape index: {}]   ;;  %s7562_s5 = inlined_call_operand.hbm [shape: f32[2,128], index: 5, kind: output, shape index: {}]  }
   0x1   :  { %11 = vsyncpa [#allocation6], 0 }
   0x2   :  { %12 = vsyncpa [#allocation9], 0  ;;  %s34_s20 = sshll.u32 %s7559_s2, 4  ;;  %s35_s20 = int_to_ptr.hbm [resolvable:$true] %s34_s20 }
   0x3   :  { %13 = vsyncpa [#allocation4], 0  ;;  %s7303_s21 = smov [#allocation5]   ;;  %s20_s25 = sshll.u32 %s7558_s1, 4  ;;  %s21_s25 = int_to_ptr.hbm [resolvable:$true] %s20_s25 }
   0x4   :  { %s36_s22 = sshll.u32 %s7303_s21, 4  ;;  %s7304_s26 = smov [#allocation2]   ;;  %s37_s22 = int_to_ptr.vmem [resolvable:$true] %s36_s22 }
   0x5   :  { %39 = dma.hbm_to_vmem [thread:$0]  %s35_s20, 64, %s37_s22, [#allocation6]  }
   0x6   :  { %s22_s27 = sshll.u32 %s7304_s26, 4  ;;  %s7305_s28 = smov 256   ;;  %s23_s27 = int_to_ptr.vmem [resolvable:$true] %s22_s27 }
   0x7   :  { %s7306_s29 = smov 16   ;;  %s44_s2 = sshll.u32 %s7560_s3, 4  ;;  %s45_s2 = int_to_ptr.hbm [resolvable:$true] %s44_s2 }
   0x8   :  { %28 = dma.hbm_to_vmem [thread:$0]  %s21_s25, 69120, %s23_s27, [#allocation3], %s7305_s28, %s7305_s28, %s7306_s29  }
   0x9   :  { %s7307_s7 = smov [#allocation7]   ;;  %s58_s1 = sshll.u32 %s7561_s4, 4  ;;  %s59_s1 = int_to_ptr.hbm [resolvable:$true] %s58_s1 }
   0xa   :  { %s46_s8 = sshll.u32 %s7307_s7, 4  ;;  %s7308_s11 = smov 128   ;;  %s47_s8 = int_to_ptr.vmem [resolvable:$true] %s46_s8 }
   0xb   :  { %s7309_s12 = smov 8   ;;  %s7310_s13 = smov [#allocation8]  }
   0xc   :  { %52 = dma.hbm_to_vmem [thread:$0]  %s45_s2, 8192, %s47_s8, [#allocation6], %s7308_s11, %s7308_s11, %s7309_s12  }
   0xd   :  { %s60_s14 = sshll.u32 %s7310_s13, 4  ;;  %s61_s14 = int_to_ptr.vmem [resolvable:$true] %s60_s14 }
   0xe   :  { %63 = dma.hbm_to_vmem [thread:$0]  %s59_s1, 16, %s61_s14, [#allocation9]  }
   0xf   :  { %7295 = dma.done.wait [#allocation3], 69120  }
  0x10   :  { %7296 = vsyncadd [#allocation3], 4294898176 }
  0x11   :  { %7297 = dma.done.wait [#allocation6], 8256  }
  0x12   :  { %7298 = vsyncadd [#allocation6], 4294959040 }
  0x13   :  { %7299 = dma.done.wait [#allocation9], 16  }
  0x14   :  { %7300 = vsyncadd [#allocation9], 4294967280  ;;  %v4572_v0 = vld [vmem:[#allocation2 + $0xe0] sm:$0xf]  ;;  %v6652_v1 = vld [vmem:[#allocation2 + $0xec] sm:$0xf0] }
  0x15   :  { %v4700_v2 = vld [vmem:[#allocation2 + $0x1e0] sm:$0xf]  ;;  %v4573_v3 = vor.u32 %v6652_v1, %v4572_v0  ;;  %v6684_v4 = vld [vmem:[#allocation2 + $0x1ec] sm:$0xf0]  ;;  %vm3398_vm0 = vcmask 916480   ;;  %s4446_s26 = sshll.u32 %s7562_s5, 4  ;;  %s4447_s26 = int_to_ptr.hbm [resolvable:$true] %s4446_s26 }
  0x16   :  { %v4828_v5 = vld [vmem:[#allocation2 + $0x2e0] sm:$0xf]  ;;  %v6716_v6 = vld [vmem:[#allocation2 + $0x2ec] sm:$0xf0]  ;;  %v4701_v7 = vor.u32 %v6684_v4, %v4700_v2 }
  0x17   :  { %v4829_v8 = vor.u32 %v6716_v6, %v4828_v5  ;;  %v4956_v9 = vld [vmem:[#allocation2 + $0x3e0] sm:$0xf]  ;;  %v6748_v10 = vld [vmem:[#allocation2 + $0x3ec] sm:$0xf0]  ;;  %3402 = vmatpush.bf16.msra.mxu0 %v4573_v3 }
  0x18   :  { %v4556_v11 = vld [vmem:[#allocation2 + $0xc0] sm:$0xf]  ;;  %v4957_v12 = vor.u32 %v6748_v10, %v4956_v9  ;;  %v6648_v13 = vld [vmem:[#allocation2 + $0xcc] sm:$0xf0]  ;;  %3415 = vmatpush.bf16.msra.mxu1 %v4701_v7 }
  0x19   :  { %v4684_v14 = vld [vmem:[#allocation2 + $0x1c0] sm:$0xf]  ;;  %v6680_v15 = vld [vmem:[#allocation2 + $0x1cc] sm:$0xf0]  ;;  %3428 = vmatpush.bf16.msra.mxu2 %v4829_v8  ;;  %v4557_v16 = vor.u32 %v6648_v13, %v4556_v11 }
  0x1a   :  { %v4685_v17 = vor.u32 %v6680_v15, %v4684_v14  ;;  %v4812_v18 = vld [vmem:[#allocation2 + $0x2c0] sm:$0xf]  ;;  %v6712_v19 = vld [vmem:[#allocation2 + $0x2cc] sm:$0xf0]  ;;  %3441 = vmatpush.bf16.msra.mxu3 %v4957_v12 }
  0x1b   :  { %v4940_v20 = vld [vmem:[#allocation2 + $0x3c0] sm:$0xf]  ;;  %v4813_v21 = vor.u32 %v6712_v19, %v4812_v18  ;;  %v6744_v22 = vld [vmem:[#allocation2 + $0x3cc] sm:$0xf0]  ;;  %3403 = vmatpush.bf16.msra.mxu0 %v4557_v16 }
  0x1c   :  { %v4540_v23 = vld [vmem:[#allocation2 + $0xa0] sm:$0xf]  ;;  %v6644_v24 = vld [vmem:[#allocation2 + $0xac] sm:$0xf0]  ;;  %v4941_v25 = vor.u32 %v6744_v22, %v4940_v20  ;;  %3416 = vmatpush.bf16.msra.mxu1 %v4685_v17 }
  0x1d   :  { %v4668_v26 = vld [vmem:[#allocation2 + $0x1a0] sm:$0xf]  ;;  %v6676_v27 = vld [vmem:[#allocation2 + $0x1ac] sm:$0xf0]  ;;  %v4541_v29 = vor.u32 %v6644_v24, %v4540_v23  ;;  %3429 = vmatpush.bf16.msra.mxu2 %v4813_v21 }
  0x1e   :  { %v4796_v28 = vld [vmem:[#allocation2 + $0x2a0] sm:$0xf]  ;;  %v6708_v30 = vld [vmem:[#allocation2 + $0x2ac] sm:$0xf0]  ;;  %v4669_v33 = vor.u32 %v6676_v27, %v4668_v26  ;;  %3442 = vmatpush.bf16.msra.mxu3 %v4941_v25 }
  0x1f   :  { %v4924_v31 = vld [vmem:[#allocation2 + $0x3a0] sm:$0xf]  ;;  %v6740_v32 = vld [vmem:[#allocation2 + $0x3ac] sm:$0xf0]  ;;  %v4797_v34 = vor.u32 %v6708_v30, %v4796_v28  ;;  %3404 = vmatpush.bf16.msra.mxu0 %v4541_v29 }
  0x20   :  { %v4524_v35 = vld [vmem:[#allocation2 + $0x80] sm:$0xf]  ;;  %v6640_v36 = vld [vmem:[#allocation2 + $0x8c] sm:$0xf0]  ;;  %v4925_v38 = vor.u32 %v6740_v32, %v4924_v31  ;;  %3417 = vmatpush.bf16.msra.mxu1 %v4669_v33 }
  0x21   :  { %v4652_v37 = vld [vmem:[#allocation2 + $0x180] sm:$0xf]  ;;  %v6672_v39 = vld [vmem:[#allocation2 + $0x18c] sm:$0xf0]  ;;  %v4525_v44 = vor.u32 %v6640_v36, %v4524_v35  ;;  %3430 = vmatpush.bf16.msra.mxu2 %v4797_v34 }
  0x22   :  { %v4780_v40 = vld [vmem:[#allocation2 + $0x280] sm:$0xf]  ;;  %v6704_v41 = vld [vmem:[#allocation2 + $0x28c] sm:$0xf0]  ;;  %v4653_v45 = vor.u32 %v6672_v39, %v4652_v37  ;;  %3443 = vmatpush.bf16.msra.mxu3 %v4925_v38 }
  0x23   :  { %v4908_v42 = vld [vmem:[#allocation2 + $0x380] sm:$0xf]  ;;  %v6736_v43 = vld [vmem:[#allocation2 + $0x38c] sm:$0xf0]  ;;  %v4781_v46 = vor.u32 %v6704_v41, %v4780_v40  ;;  %3405 = vmatpush.bf16.msra.mxu0 %v4525_v44 }
  0x24   :  { %v4508_v47 = vld [vmem:[#allocation2 + $0x60] sm:$0xf]  ;;  %v6636_v48 = vld [vmem:[#allocation2 + $0x6c] sm:$0xf0]  ;;  %v4909_v50 = vor.u32 %v6736_v43, %v4908_v42  ;;  %3418 = vmatpush.bf16.msra.mxu1 %v4653_v45 }
  0x25   :  { %v4636_v49 = vld [vmem:[#allocation2 + $0x160] sm:$0xf]  ;;  %v6668_v51 = vld [vmem:[#allocation2 + $0x16c] sm:$0xf0]  ;;  %v4509_v56 = vor.u32 %v6636_v48, %v4508_v47  ;;  %3431 = vmatpush.bf16.msra.mxu2 %v4781_v46 }
  0x26   :  { %v4764_v52 = vld [vmem:[#allocation2 + $0x260] sm:$0xf]  ;;  %v6700_v53 = vld [vmem:[#allocation2 + $0x26c] sm:$0xf0]  ;;  %v4637_v57 = vor.u32 %v6668_v51, %v4636_v49  ;;  %3444 = vmatpush.bf16.msra.mxu3 %v4909_v50 }
  0x27   :  { %v4892_v54 = vld [vmem:[#allocation2 + $0x360] sm:$0xf]  ;;  %v6732_v55 = vld [vmem:[#allocation2 + $0x36c] sm:$0xf0]  ;;  %v4765_v58 = vor.u32 %v6700_v53, %v4764_v52  ;;  %3406 = vmatpush.bf16.msra.mxu0 %v4509_v56 }
  0x28   :  { %v4492_v59 = vld [vmem:[#allocation2 + $0x40] sm:$0xf]  ;;  %v6632_v60 = vld [vmem:[#allocation2 + $0x4c] sm:$0xf0]  ;;  %v4893_v62 = vor.u32 %v6732_v55, %v4892_v54  ;;  %3419 = vmatpush.bf16.msra.mxu1 %v4637_v57 }
  0x29   :  { %v4620_v61 = vld [vmem:[#allocation2 + $0x140] sm:$0xf]  ;;  %v6664_v63 = vld [vmem:[#allocation2 + $0x14c] sm:$0xf0]  ;;  %v4493_v4 = vor.u32 %v6632_v60, %v4492_v59  ;;  %3432 = vmatpush.bf16.msra.mxu2 %v4765_v58 }
  0x2a   :  { %v4748_v0 = vld [vmem:[#allocation2 + $0x240] sm:$0xf]  ;;  %v6696_v1 = vld [vmem:[#allocation2 + $0x24c] sm:$0xf0]  ;;  %v4621_v5 = vor.u32 %v6664_v63, %v4620_v61  ;;  %3445 = vmatpush.bf16.msra.mxu3 %v4893_v62 }
  0x2b   :  { %v4876_v2 = vld [vmem:[#allocation2 + $0x340] sm:$0xf]  ;;  %v6728_v3 = vld [vmem:[#allocation2 + $0x34c] sm:$0xf0]  ;;  %v4749_v6 = vor.u32 %v6696_v1, %v4748_v0  ;;  %3407 = vmatpush.bf16.msra.mxu0 %v4493_v4 }
  0x2c   :  { %v4476_v7 = vld [vmem:[#allocation2 + $0x20] sm:$0xf]  ;;  %v6628_v8 = vld [vmem:[#allocation2 + $0x2c] sm:$0xf0]  ;;  %v4877_v10 = vor.u32 %v6728_v3, %v4876_v2  ;;  %3420 = vmatpush.bf16.msra.mxu1 %v4621_v5  ;;  %v81_v2 = vld [vmem:[%s7557_s0] sm:$0xff] }
  0x2d   :  { %v4604_v9 = vld [vmem:[#allocation2 + $0x120] sm:$0xf]  ;;  %v6660_v11 = vld [vmem:[#allocation2 + $0x12c] sm:$0xf0]  ;;  %v4477_v16 = vor.u32 %v6628_v8, %v4476_v7  ;;  %3433 = vmatpush.bf16.msra.mxu2 %v4749_v6  ;;  %91 = vst [vmem:[#allocation1] ss:$4 sm:$0xff] %v81_v2 }
  0x2e   :  { %v4732_v12 = vld [vmem:[#allocation2 + $0x220] sm:$0xf]  ;;  %v6692_v13 = vld [vmem:[#allocation2 + $0x22c] sm:$0xf0]  ;;  %v4605_v19 = vor.u32 %v6660_v11, %v4604_v9  ;;  %3446 = vmatpush.bf16.msra.mxu3 %v4877_v10 }
  0x2f   :  { %v4860_v14 = vld [vmem:[#allocation2 + $0x320] sm:$0xf]  ;;  %v6724_v15 = vld [vmem:[#allocation2 + $0x32c] sm:$0xf0]  ;;  %v4733_v20 = vor.u32 %v6692_v13, %v4732_v12  ;;  %3408 = vmatpush.bf16.msra.mxu0 %v4477_v16 }
  0x30   :  { %v4460_v17 = vld [vmem:[#allocation2] sm:$0xf]  ;;  %v6624_v18 = vld [vmem:[#allocation2 + $0xc] sm:$0xf0]  ;;  %v4861_v24 = vor.u32 %v6724_v15, %v4860_v14  ;;  %3421 = vmatpush.bf16.msra.mxu1 %v4605_v19 }
  0x31   :  { %v4588_v21 = vld [vmem:[#allocation2 + $0x100] sm:$0xf]  ;;  %v6656_v22 = vld [vmem:[#allocation2 + $0x10c] sm:$0xf0]  ;;  %v4461_v31 = vor.u32 %v6624_v18, %v4460_v17  ;;  %3434 = vmatpush.bf16.msra.mxu2 %v4733_v20 }
  0x32   :  { %v4716_v23 = vld [vmem:[#allocation2 + $0x200] sm:$0xf]  ;;  %v6688_v25 = vld [vmem:[#allocation2 + $0x20c] sm:$0xf0]  ;;  %v4589_v35 = vor.u32 %v6656_v22, %v4588_v21  ;;  %3447 = vmatpush.bf16.msra.mxu3 %v4861_v24 }
  0x33   :  { %v4844_v26 = vld [vmem:[#allocation2 + $0x300] sm:$0xf]  ;;  %v6720_v27 = vld [vmem:[#allocation2 + $0x30c] sm:$0xf0]  ;;  %v4717_v36 = vor.u32 %v6688_v25, %v4716_v23  ;;  %3409 = vmatpush.bf16.msra.mxu0 %v4461_v31 }
  0x34   :  { %v5084_v28 = vld [vmem:[#allocation2 + $0x4e0] sm:$0xf]  ;;  %v6780_v29 = vld [vmem:[#allocation2 + $0x4ec] sm:$0xf0]  ;;  %v4845_v39 = vor.u32 %v6720_v27, %v4844_v26  ;;  %3422 = vmatpush.bf16.msra.mxu1 %v4589_v35  ;;  %v83_v27 = vld [vmem:[%s7557_s0 + $0x10] sm:$0xff] }
  0x35   :  { %v5212_v30 = vld [vmem:[#allocation2 + $0x5e0] sm:$0xf]  ;;  %v6812_v32 = vld [vmem:[#allocation2 + $0x5ec] sm:$0xf0]  ;;  %v5085_v40 = vor.u32 %v6780_v29, %v5084_v28  ;;  %3435 = vmatpush.bf16.msra.mxu2 %v4717_v36 }
  0x36   :  { %v5340_v33 = vld [vmem:[#allocation2 + $0x6e0] sm:$0xf]  ;;  %v6844_v34 = vld [vmem:[#allocation2 + $0x6ec] sm:$0xf0]  ;;  %v5213_v41 = vor.u32 %v6812_v32, %v5212_v30  ;;  %3448 = vmatpush.bf16.msra.mxu3 %v4845_v39 }
  0x37   :  { %v5468_v37 = vld [vmem:[#allocation2 + $0x7e0] sm:$0xf]  ;;  %v6876_v38 = vld [vmem:[#allocation2 + $0x7ec] sm:$0xf0]  ;;  %v5341_v42 = vor.u32 %v6844_v34, %v5340_v33  ;;  %3454 = vmatpush.bf16.msrb.mxu0 %v5085_v40 }
  0x38   :  { %v5068_v43 = vld [vmem:[#allocation2 + $0x4c0] sm:$0xf]  ;;  %v6776_v44 = vld [vmem:[#allocation2 + $0x4cc] sm:$0xf0]  ;;  %v5469_v46 = vor.u32 %v6876_v38, %v5468_v37  ;;  %3467 = vmatpush.bf16.msrb.mxu1 %v5213_v41 }
  0x39   :  { %v5196_v45 = vld [vmem:[#allocation2 + $0x5c0] sm:$0xf]  ;;  %v6808_v47 = vld [vmem:[#allocation2 + $0x5cc] sm:$0xf0]  ;;  %v5069_v52 = vor.u32 %v6776_v44, %v5068_v43  ;;  %3480 = vmatpush.bf16.msrb.mxu2 %v5341_v42 }
  0x3a   :  { %v5324_v48 = vld [vmem:[#allocation2 + $0x6c0] sm:$0xf]  ;;  %v6840_v49 = vld [vmem:[#allocation2 + $0x6cc] sm:$0xf0]  ;;  %v5197_v53 = vor.u32 %v6808_v47, %v5196_v45  ;;  %3493 = vmatpush.bf16.msrb.mxu3 %v5469_v46 }
  0x3b   :  { %v5452_v50 = vld [vmem:[#allocation2 + $0x7c0] sm:$0xf]  ;;  %v6872_v51 = vld [vmem:[#allocation2 + $0x7cc] sm:$0xf0]  ;;  %v5325_v54 = vor.u32 %v6840_v49, %v5324_v48  ;;  %3455 = vmatpush.bf16.msrb.mxu0 %v5069_v52 }
  0x3c   :  { %v5052_v55 = vld [vmem:[#allocation2 + $0x4a0] sm:$0xf]  ;;  %v6772_v56 = vld [vmem:[#allocation2 + $0x4ac] sm:$0xf0]  ;;  %v5453_v58 = vor.u32 %v6872_v51, %v5452_v50  ;;  %3468 = vmatpush.bf16.msrb.mxu1 %v5197_v53 }
  0x3d   :  { %v5180_v57 = vld [vmem:[#allocation2 + $0x5a0] sm:$0xf]  ;;  %v6804_v59 = vld [vmem:[#allocation2 + $0x5ac] sm:$0xf0]  ;;  %v5053_v0 = vor.u32 %v6772_v56, %v5052_v55  ;;  %3481 = vmatpush.bf16.msrb.mxu2 %v5325_v54 }
  0x3e   :  { %v5308_v60 = vld [vmem:[#allocation2 + $0x6a0] sm:$0xf]  ;;  %v6836_v61 = vld [vmem:[#allocation2 + $0x6ac] sm:$0xf0]  ;;  %v5181_v3 = vor.u32 %v6804_v59, %v5180_v57  ;;  %3494 = vmatpush.bf16.msrb.mxu3 %v5453_v58 }
  0x3f   :  { %v5436_v62 = vld [vmem:[#allocation2 + $0x7a0] sm:$0xf]  ;;  %v6868_v63 = vld [vmem:[#allocation2 + $0x7ac] sm:$0xf0]  ;;  %v5309_v4 = vor.u32 %v6836_v61, %v5308_v60  ;;  %3456 = vmatpush.bf16.msrb.mxu0 %v5053_v0 }
  0x40   :  { %v5036_v1 = vld [vmem:[#allocation2 + $0x480] sm:$0xf]  ;;  %v6768_v5 = vld [vmem:[#allocation2 + $0x48c] sm:$0xf0]  ;;  %v5437_v7 = vor.u32 %v6868_v63, %v5436_v62  ;;  %3469 = vmatpush.bf16.msrb.mxu1 %v5181_v3 }
  0x41   :  { %v5164_v6 = vld [vmem:[#allocation2 + $0x580] sm:$0xf]  ;;  %v6800_v8 = vld [vmem:[#allocation2 + $0x58c] sm:$0xf0]  ;;  %v5037_v13 = vor.u32 %v6768_v5, %v5036_v1  ;;  %3482 = vmatpush.bf16.msrb.mxu2 %v5309_v4 }
  0x42   :  { %v5292_v9 = vld [vmem:[#allocation2 + $0x680] sm:$0xf]  ;;  %v6832_v10 = vld [vmem:[#allocation2 + $0x68c] sm:$0xf0]  ;;  %v5165_v16 = vor.u32 %v6800_v8, %v5164_v6  ;;  %3495 = vmatpush.bf16.msrb.mxu3 %v5437_v7 }
  0x43   :  { %v5420_v11 = vld [vmem:[#allocation2 + $0x780] sm:$0xf]  ;;  %v6864_v12 = vld [vmem:[#allocation2 + $0x78c] sm:$0xf0]  ;;  %v5293_v17 = vor.u32 %v6832_v10, %v5292_v9  ;;  %3457 = vmatpush.bf16.msrb.mxu0 %v5037_v13 }
  0x44   :  { %v5020_v14 = vld [vmem:[#allocation2 + $0x460] sm:$0xf]  ;;  %v6764_v15 = vld [vmem:[#allocation2 + $0x46c] sm:$0xf0]  ;;  %v5421_v21 = vor.u32 %v6864_v12, %v5420_v11  ;;  %3470 = vmatpush.bf16.msrb.mxu1 %v5165_v16 }
  0x45   :  { %v5148_v18 = vld [vmem:[#allocation2 + $0x560] sm:$0xf]  ;;  %v6796_v19 = vld [vmem:[#allocation2 + $0x56c] sm:$0xf0]  ;;  %v5021_v28 = vor.u32 %v6764_v15, %v5020_v14  ;;  %3483 = vmatpush.bf16.msrb.mxu2 %v5293_v17 }
  0x46   :  { %v5276_v20 = vld [vmem:[#allocation2 + $0x660] sm:$0xf]  ;;  %v6828_v22 = vld [vmem:[#allocation2 + $0x66c] sm:$0xf0]  ;;  %v5149_v29 = vor.u32 %v6796_v19, %v5148_v18  ;;  %3496 = vmatpush.bf16.msrb.mxu3 %v5421_v21 }
  0x47   :  { %v5404_v23 = vld [vmem:[#allocation2 + $0x760] sm:$0xf]  ;;  %v6860_v24 = vld [vmem:[#allocation2 + $0x76c] sm:$0xf0]  ;;  %v5277_v34 = vor.u32 %v6828_v22, %v5276_v20  ;;  %3458 = vmatpush.bf16.msrb.mxu0 %v5021_v28 }
  0x48   :  { %v5004_v25 = vld [vmem:[#allocation2 + $0x440] sm:$0xf]  ;;  %v6760_v26 = vld [vmem:[#allocation2 + $0x44c] sm:$0xf0]  ;;  %v5405_v39 = vor.u32 %v6860_v24, %v5404_v23  ;;  %3471 = vmatpush.bf16.msrb.mxu1 %v5149_v29 }
  0x49   :  { %v5132_v30 = vld [vmem:[#allocation2 + $0x540] sm:$0xf]  ;;  %v6792_v31 = vld [vmem:[#allocation2 + $0x54c] sm:$0xf0]  ;;  %v5005_v46 = vor.u32 %v6760_v26, %v5004_v25  ;;  %3484 = vmatpush.bf16.msrb.mxu2 %v5277_v34 }
  0x4a   :  { %v96_v32 = vld.sshfl [vmem:[#allocation1 + $0x10] sm:$0xff pattern:$0x73625140]  ;;  %v94_v33 = vld.sshfl [vmem:[#allocation1] sm:$0xff pattern:$0x73625140]  ;;  %v5133_v49 = vor.u32 %v6792_v31, %v5132_v30  ;;  %3497 = vmatpush.bf16.msrb.mxu3 %v5405_v39 }
  0x4b   :  { %v7360_v35 = vpack.c.bf16 %v96_v32, %v96_v32  ;;  %v7362_v36 = vpack.c.bf16 %v94_v33, %v94_v33  ;;  %v97_v37 = vld.sshfl [vmem:[#allocation1 + $0x18] sm:$0xff pattern:$0x73625140]  ;;  %v95_v38 = vld.sshfl [vmem:[#allocation1 + $0x8] sm:$0xff pattern:$0x73625140]  ;;  %3459 = vmatpush.bf16.msrb.mxu0 %v5005_v46 }
  0x4c   :  { %v5260_v40 = vld [vmem:[#allocation2 + $0x640] sm:$0xf]  ;;  %v6824_v41 = vld [vmem:[#allocation2 + $0x64c] sm:$0xf0]  ;;  %v7364_v42 = vpack.c.bf16 %v97_v37, %v97_v37  ;;  %102 = vst [vmem:[#allocation1] ss:$4 sm:$0xff] %v83_v27  ;;  %v7366_v43 = vpack.c.bf16 %v95_v38, %v95_v38  ;;  %3472 = vmatpush.bf16.msrb.mxu1 %v5133_v49 }
  0x4d   :  { %v5388_v44 = vld [vmem:[#allocation2 + $0x740] sm:$0xf]  ;;  %v6856_v45 = vld [vmem:[#allocation2 + $0x74c] sm:$0xf0]  ;;  %3436 = vmatmul.bf16.vlgmr.msra.gmra.mxu2 %v7360_v35  ;;  %3410 = vmatmul.bf16.vlgmr.msra.gmra.mxu0 %v7362_v36  ;;  %v5261_v50 = vor.u32 %v6824_v41, %v5260_v40 }
  0x4e   :  { %3449 = vmatmul.bf16.vlgmr.msra.gmra.mxu3 %v7364_v42  ;;  %v4988_v47 = vld [vmem:[#allocation2 + $0x420] sm:$0xf]  ;;  %v6756_v48 = vld [vmem:[#allocation2 + $0x42c] sm:$0xf0]  ;;  %v5389_v54 = vor.u32 %v6856_v45, %v5388_v44  ;;  %3423 = vmatmul.bf16.vlgmr.msra.gmra.mxu1 %v7366_v43 }
  0x4f   :  { %v5116_v51 = vld [vmem:[#allocation2 + $0x520] sm:$0xf]  ;;  %v6788_v52 = vld [vmem:[#allocation2 + $0x52c] sm:$0xf0]  ;;  %v4989_v60 = vor.u32 %v6756_v48, %v4988_v47  ;;  %3485 = vmatpush.bf16.msrb.mxu2 %v5261_v50 }
  0x50   :  { %v5244_v53 = vld [vmem:[#allocation2 + $0x620] sm:$0xf]  ;;  %v6820_v55 = vld [vmem:[#allocation2 + $0x62c] sm:$0xf0]  ;;  %v5117_v0 = vor.u32 %v6788_v52, %v5116_v51  ;;  %3498 = vmatpush.bf16.msrb.mxu3 %v5389_v54 }
  0x51   :  { %v5372_v56 = vld [vmem:[#allocation2 + $0x720] sm:$0xf]  ;;  %v6852_v58 = vld [vmem:[#allocation2 + $0x72c] sm:$0xf0]  ;;  %v5245_v1 = vor.u32 %v6820_v55, %v5244_v53  ;;  %3460 = vmatpush.bf16.msrb.mxu0 %v4989_v60 }
  0x52   :  { %v82_v57 = vld [vmem:[%s7557_s0 + $0x8] sm:$0xff]  ;;  %v6752_v61 = vld [vmem:[#allocation2 + $0x40c] sm:$0xf0]  ;;  %v5373_v5 = vor.u32 %v6852_v58, %v5372_v56  ;;  %3473 = vmatpush.bf16.msrb.mxu1 %v5117_v0 }
  0x53   :  { %v4972_v59 = vld [vmem:[#allocation2 + $0x400] sm:$0xf]  ;;  %93 = vst [vmem:[#allocation1 + $0x20] ss:$4 sm:$0xff] %v82_v57  ;;  %v6784_v63 = vld [vmem:[#allocation2 + $0x50c] sm:$0xf0]  ;;  %3486 = vmatpush.bf16.msrb.mxu2 %v5245_v1 }
  0x54   :  { %v5100_v62 = vld [vmem:[#allocation2 + $0x500] sm:$0xf]  ;;  %v6816_v3 = vld [vmem:[#allocation2 + $0x60c] sm:$0xf0]  ;;  %v4973_v12 = vor.u32 %v6752_v61, %v4972_v59  ;;  %3499 = vmatpush.bf16.msrb.mxu3 %v5373_v5 }
  0x55   :  { %v5228_v2 = vld [vmem:[#allocation2 + $0x600] sm:$0xf]  ;;  %v6848_v6 = vld [vmem:[#allocation2 + $0x70c] sm:$0xf0]  ;;  %v5101_v16 = vor.u32 %v6784_v63, %v5100_v62 }
  0x56   :  { %v5356_v4 = vld [vmem:[#allocation2 + $0x700] sm:$0xf]  ;;  %v6908_v8 = vld [vmem:[#allocation2 + $0x8ec] sm:$0xf0]  ;;  %v5229_v17 = vor.u32 %v6816_v3, %v5228_v2  ;;  %3461 = vmatpush.bf16.msrb.mxu0 %v4973_v12 }
  0x57   :  { %v5596_v7 = vld [vmem:[#allocation2 + $0x8e0] sm:$0xf]  ;;  %v6940_v10 = vld [vmem:[#allocation2 + $0x9ec] sm:$0xf0]  ;;  %v5357_v21 = vor.u32 %v6848_v6, %v5356_v4  ;;  %3474 = vmatpush.bf16.msrb.mxu1 %v5101_v16 }
  0x58   :  { %v5724_v9 = vld [vmem:[#allocation2 + $0x9e0] sm:$0xf]  ;;  %v6972_v13 = vld [vmem:[#allocation2 + $0xaec] sm:$0xf0]  ;;  %v5597_v22 = vor.u32 %v6908_v8, %v5596_v7  ;;  %3487 = vmatpush.bf16.msrb.mxu2 %v5229_v17 }
  0x59   :  { %v5852_v11 = vld [vmem:[#allocation2 + $0xae0] sm:$0xf]  ;;  %v7004_v15 = vld [vmem:[#allocation2 + $0xbec] sm:$0xf0]  ;;  %v5725_v27 = vor.u32 %v6940_v10, %v5724_v9  ;;  %3500 = vmatpush.bf16.msrb.mxu3 %v5357_v21  ;;  %v85_v21 = vld [vmem:[%s7557_s0 + $0x20] sm:$0x3] }
  0x5a   :  { %v5980_v14 = vld [vmem:[#allocation2 + $0xbe0] sm:$0xf]  ;;  %v6904_v19 = vld [vmem:[#allocation2 + $0x8cc] sm:$0xf0]  ;;  %v5853_v28 = vor.u32 %v6972_v13, %v5852_v11  ;;  %3506 = vmatpush.bf16.msra.mxu0 %v5597_v22 }
  0x5b   :  { %v5580_v18 = vld [vmem:[#allocation2 + $0x8c0] sm:$0xf]  ;;  %v84_v20 = vld [vmem:[%s7557_s0 + $0x18] sm:$0xff]  ;;  %v100_v25 = vld.sshfl [vmem:[#allocation1 + $0x30] sm:$0xff pattern:$0x73625140]  ;;  %v5981_v31 = vor.u32 %v7004_v15, %v5980_v14  ;;  %3519 = vmatpush.bf16.msra.mxu1 %v5725_v27 }
  0x5c   :  { %v5708_v23 = vld [vmem:[#allocation2 + $0x9c0] sm:$0xf]  ;;  %v6936_v24 = vld [vmem:[#allocation2 + $0x9cc] sm:$0xf0]  ;;  %v7378_v34 = vpack.c.bf16 %v100_v25, %v100_v25  ;;  %v5581_v41 = vor.u32 %v6904_v19, %v5580_v18  ;;  %3532 = vmatpush.bf16.msra.mxu2 %v5853_v28  ;;  %s7311_s0 = smov [#allocation10]  }
  0x5d   :  { %v98_v26 = vld.sshfl [vmem:[#allocation1 + $0x20] sm:$0xff pattern:$0x73625140]  ;;  %v101_v29 = vld.sshfl [vmem:[#allocation1 + $0x38] sm:$0xff pattern:$0x73625140]  ;;  %v5709_v45 = vor.u32 %v6936_v24, %v5708_v23  ;;  %3545 = vmatpush.bf16.msra.mxu3 %v5981_v31 }
  0x5e   :  { %v99_v30 = vld.sshfl [vmem:[#allocation1 + $0x28] sm:$0xff pattern:$0x73625140]  ;;  %v6968_v33 = vld [vmem:[#allocation2 + $0xacc] sm:$0xf0]  ;;  %v7380_v39 = vpack.c.bf16 %v98_v26, %v98_v26  ;;  %v7382_v40 = vpack.c.bf16 %v101_v29, %v101_v29  ;;  %3488 = vmatmul.bf16.vlgmr.msrb.gmra.mxu2 %v7378_v34  ;;  %3507 = vmatpush.bf16.msra.mxu0 %v5581_v41  ;;  %s4444_s23 = sshll.u32 %s7311_s0, 4  ;;  %s4445_s23 = int_to_ptr.vmem [resolvable:$true] %s4444_s23 }
  0x5f   :  { %v5836_v32 = vld [vmem:[#allocation2 + $0xac0] sm:$0xf]  ;;  %103 = vst [vmem:[#allocation1 + $0x20] ss:$4 sm:$0xff] %v84_v20  ;;  %v7000_v38 = vld [vmem:[#allocation2 + $0xbcc] sm:$0xf0]  ;;  %v7384_v44 = vpack.c.bf16 %v99_v30, %v99_v30  ;;  %3520 = vmatpush.bf16.msra.mxu1 %v5709_v45 }
  0x60   :  { %v5964_v37 = vld [vmem:[#allocation2 + $0xbc0] sm:$0xf]  ;;  %v5837_v46 = vor.u32 %v6968_v33, %v5836_v32  ;;  %v6900_v48 = vld [vmem:[#allocation2 + $0x8ac] sm:$0xf0]  ;;  %3462 = vmatmul.bf16.vlgmr.msrb.gmra.mxu0 %v7380_v39  ;;  %3501 = vmatmul.bf16.vlgmr.msrb.gmra.mxu3 %v7382_v40 }
  0x61   :  { %v5564_v47 = vld [vmem:[#allocation2 + $0x8a0] sm:$0xf]  ;;  %v5965_v50 = vor.u32 %v7000_v38, %v5964_v37  ;;  %v6932_v51 = vld [vmem:[#allocation2 + $0x9ac] sm:$0xf0]  ;;  %3475 = vmatmul.bf16.vlgmr.msrb.gmra.mxu1 %v7384_v44 }
  0x62   :  { %v5692_v49 = vld [vmem:[#allocation2 + $0x9a0] sm:$0xf]  ;;  %v6964_v53 = vld [vmem:[#allocation2 + $0xaac] sm:$0xf0]  ;;  %v5565_v56 = vor.u32 %v6900_v48, %v5564_v47  ;;  %3533 = vmatpush.bf16.msra.mxu2 %v5837_v46 }
  0x63   :  { %v5820_v52 = vld [vmem:[#allocation2 + $0xaa0] sm:$0xf]  ;;  %v6996_v55 = vld [vmem:[#allocation2 + $0xbac] sm:$0xf0]  ;;  %v5693_v57 = vor.u32 %v6932_v51, %v5692_v49  ;;  %3546 = vmatpush.bf16.msra.mxu3 %v5965_v50 }
  0x64   :  { %v5948_v54 = vld [vmem:[#allocation2 + $0xba0] sm:$0xf]  ;;  %v5821_v58 = vor.u32 %v6964_v53, %v5820_v52  ;;  %v6896_v60 = vld [vmem:[#allocation2 + $0x88c] sm:$0xf0]  ;;  %3508 = vmatpush.bf16.msra.mxu0 %v5565_v56 }
  0x65   :  { %v5548_v59 = vld [vmem:[#allocation2 + $0x880] sm:$0xf]  ;;  %v5949_v62 = vor.u32 %v6996_v55, %v5948_v54  ;;  %v6928_v63 = vld [vmem:[#allocation2 + $0x98c] sm:$0xf0]  ;;  %3521 = vmatpush.bf16.msra.mxu1 %v5693_v57 }
  0x66   :  { %v5676_v61 = vld [vmem:[#allocation2 + $0x980] sm:$0xf]  ;;  %v6960_v1 = vld [vmem:[#allocation2 + $0xa8c] sm:$0xf0]  ;;  %v5549_v5 = vor.u32 %v6896_v60, %v5548_v59  ;;  %3534 = vmatpush.bf16.msra.mxu2 %v5821_v58 }
  0x67   :  { %v5804_v0 = vld [vmem:[#allocation2 + $0xa80] sm:$0xf]  ;;  %v6992_v3 = vld [vmem:[#allocation2 + $0xb8c] sm:$0xf0]  ;;  %v5677_v9 = vor.u32 %v6928_v63, %v5676_v61  ;;  %3547 = vmatpush.bf16.msra.mxu3 %v5949_v62 }
  0x68   :  { %v5932_v2 = vld [vmem:[#allocation2 + $0xb80] sm:$0xf]  ;;  %v6892_v6 = vld [vmem:[#allocation2 + $0x86c] sm:$0xf0]  ;;  %v5805_v10 = vor.u32 %v6960_v1, %v5804_v0  ;;  %3509 = vmatpush.bf16.msra.mxu0 %v5549_v5 }
  0x69   :  { %v5532_v4 = vld [vmem:[#allocation2 + $0x860] sm:$0xf]  ;;  %v6924_v8 = vld [vmem:[#allocation2 + $0x96c] sm:$0xf0]  ;;  %v5933_v14 = vor.u32 %v6992_v3, %v5932_v2  ;;  %3522 = vmatpush.bf16.msra.mxu1 %v5677_v9 }
  0x6a   :  { %v5660_v7 = vld [vmem:[#allocation2 + $0x960] sm:$0xf]  ;;  %v6956_v12 = vld [vmem:[#allocation2 + $0xa6c] sm:$0xf0]  ;;  %v5533_v20 = vor.u32 %v6892_v6, %v5532_v4  ;;  %3535 = vmatpush.bf16.msra.mxu2 %v5805_v10 }
  0x6b   :  { %v5788_v11 = vld [vmem:[#allocation2 + $0xa60] sm:$0xf]  ;;  %v6988_v15 = vld [vmem:[#allocation2 + $0xb6c] sm:$0xf0]  ;;  %v5661_v23 = vor.u32 %v6924_v8, %v5660_v7  ;;  %3548 = vmatpush.bf16.msra.mxu3 %v5933_v14 }
  0x6c   :  { %v5916_v13 = vld [vmem:[#allocation2 + $0xb60] sm:$0xf]  ;;  %v7390_v16 = vld.sshfl [vmem:[#allocation1] sm:$0xff pattern:$0x73625140]  ;;  %v5789_v24 = vor.u32 %v6956_v12, %v5788_v11  ;;  %3510 = vmatpush.bf16.msra.mxu0 %v5533_v20 }
  0x6d   :  { %v5516_v17 = vld [vmem:[#allocation2 + $0x840] sm:$0xf]  ;;  %v7392_v18 = vld.sshfl [vmem:[#allocation1 + $0x10] sm:$0xff pattern:$0x73625140]  ;;  %v5917_v27 = vor.u32 %v6988_v15, %v5916_v13  ;;  %3523 = vmatpush.bf16.msra.mxu1 %v5661_v23 }
  0x6e   :  { %v7394_v19 = vld.sshfl [vmem:[#allocation1 + $0x8] sm:$0xff pattern:$0x73625140]  ;;  %v7399_v22 = vld.sshfl [vmem:[#allocation1 + $0x18] sm:$0xff pattern:$0x73625140]  ;;  %3536 = vmatpush.bf16.msra.mxu2 %v5789_v24  ;;  %v7403_v24 = vpack.c.bf16 %v7390_v16, %v7390_v16 }
  0x6f   :  { %v6888_v25 = vld [vmem:[#allocation2 + $0x84c] sm:$0xf0]  ;;  %v5644_v26 = vld [vmem:[#allocation2 + $0x940] sm:$0xf]  ;;  %112 = vst [vmem:[#allocation1] ss:$4 sm:$0xff] %v85_v21  ;;  %3549 = vmatpush.bf16.msra.mxu3 %v5917_v27  ;;  %v7415_v16 = vpack.c.bf16 %v7399_v22, %v7399_v22 }
  0x70   :  { %v6920_v28 = vld [vmem:[#allocation2 + $0x94c] sm:$0xf0]  ;;  %v5772_v29 = vld [vmem:[#allocation2 + $0xa40] sm:$0xf]  ;;  %v5517_v33 = vor.u32 %v6888_v25, %v5516_v17 }
  0x71   :  { %v6952_v30 = vld [vmem:[#allocation2 + $0xa4c] sm:$0xf0]  ;;  %v5900_v31 = vld [vmem:[#allocation2 + $0xb40] sm:$0xf]  ;;  %v5645_v37 = vor.u32 %v6920_v28, %v5644_v26  ;;  %v7407_v28 = vpack.c.bf16 %v7392_v18, %v7392_v18 }
  0x72   :  { %v6984_v32 = vld [vmem:[#allocation2 + $0xb4c] sm:$0xf0]  ;;  %v5773_v38 = vor.u32 %v6952_v30, %v5772_v29  ;;  %v5500_v41 = vld [vmem:[#allocation2 + $0x820] sm:$0xf]  ;;  %3511 = vmatpush.bf16.msra.mxu0 %v5517_v33  ;;  %v7411_v29 = vpack.c.bf16 %v7394_v19, %v7394_v19 }
  0x73   :  { %v6884_v45 = vld [vmem:[#allocation2 + $0x82c] sm:$0xf0]  ;;  %v5628_v46 = vld [vmem:[#allocation2 + $0x920] sm:$0xf]  ;;  %v5901_v47 = vor.u32 %v6984_v32, %v5900_v31  ;;  %3524 = vmatpush.bf16.msra.mxu1 %v5645_v37 }
  0x74   :  { %v6916_v48 = vld [vmem:[#allocation2 + $0x92c] sm:$0xf0]  ;;  %v5756_v49 = vld [vmem:[#allocation2 + $0xa20] sm:$0xf]  ;;  %v5501_v53 = vor.u32 %v6884_v45, %v5500_v41  ;;  %3537 = vmatpush.bf16.msra.mxu2 %v5773_v38 }
  0x75   :  { %v6948_v50 = vld [vmem:[#allocation2 + $0xa2c] sm:$0xf0]  ;;  %v5884_v51 = vld [vmem:[#allocation2 + $0xb20] sm:$0xf]  ;;  %v5629_v56 = vor.u32 %v6916_v48, %v5628_v46  ;;  %3550 = vmatpush.bf16.msra.mxu3 %v5901_v47 }
  0x76   :  { %v6980_v52 = vld [vmem:[#allocation2 + $0xb2c] sm:$0xf0]  ;;  %v5484_v54 = vld [vmem:[#allocation2 + $0x800] sm:$0xf]  ;;  %v5757_v57 = vor.u32 %v6948_v50, %v5756_v49  ;;  %3512 = vmatpush.bf16.msra.mxu0 %v5501_v53 }
  0x77   :  { %v6880_v55 = vld [vmem:[#allocation2 + $0x80c] sm:$0xf0]  ;;  %v5612_v58 = vld [vmem:[#allocation2 + $0x900] sm:$0xf]  ;;  %v5885_v61 = vor.u32 %v6980_v52, %v5884_v51  ;;  %3525 = vmatpush.bf16.msra.mxu1 %v5629_v56 }
  0x78   :  { %v6912_v59 = vld [vmem:[#allocation2 + $0x90c] sm:$0xf0]  ;;  %v5740_v60 = vld [vmem:[#allocation2 + $0xa00] sm:$0xf]  ;;  %v5485_v4 = vor.u32 %v6880_v55, %v5484_v54  ;;  %3538 = vmatpush.bf16.msra.mxu2 %v5757_v57 }
  0x79   :  { %v6944_v62 = vld [vmem:[#allocation2 + $0xa0c] sm:$0xf0]  ;;  %v5868_v63 = vld [vmem:[#allocation2 + $0xb00] sm:$0xf]  ;;  %v5613_v8 = vor.u32 %v6912_v59, %v5612_v58  ;;  %3551 = vmatpush.bf16.msra.mxu3 %v5885_v61 }
  0x7a   :  { %v6976_v0 = vld [vmem:[#allocation2 + $0xb0c] sm:$0xf0]  ;;  %v6108_v1 = vld [vmem:[#allocation2 + $0xce0] sm:$0xf]  ;;  %v5741_v9 = vor.u32 %v6944_v62, %v5740_v60  ;;  %3513 = vmatpush.bf16.msra.mxu0 %v5485_v4 }
  0x7b   :  { %v7036_v2 = vld [vmem:[#allocation2 + $0xcec] sm:$0xf0]  ;;  %v6236_v3 = vld [vmem:[#allocation2 + $0xde0] sm:$0xf]  ;;  %v5869_v12 = vor.u32 %v6976_v0, %v5868_v63  ;;  %3526 = vmatpush.bf16.msra.mxu1 %v5613_v8 }
  0x7c   :  { %v7068_v5 = vld [vmem:[#allocation2 + $0xdec] sm:$0xf0]  ;;  %v6364_v6 = vld [vmem:[#allocation2 + $0xee0] sm:$0xf]  ;;  %v6109_v13 = vor.u32 %v7036_v2, %v6108_v1  ;;  %3539 = vmatpush.bf16.msra.mxu2 %v5741_v9 }
  0x7d   :  { %v7100_v7 = vld [vmem:[#allocation2 + $0xeec] sm:$0xf0]  ;;  %v6492_v10 = vld [vmem:[#allocation2 + $0xfe0] sm:$0xf]  ;;  %v6237_v14 = vor.u32 %v7068_v5, %v6236_v3  ;;  %3552 = vmatpush.bf16.msra.mxu3 %v5869_v12  ;;  %3514 = vmatmul.bf16.vlgmr.msra.gmra.mxu0 %v7403_v24 }
  0x7e   :  { %v7132_v11 = vld [vmem:[#allocation2 + $0xfec] sm:$0xf0]  ;;  %v6365_v15 = vor.u32 %v7100_v7, %v6364_v6  ;;  %v6092_v17 = vld [vmem:[#allocation2 + $0xcc0] sm:$0xf]  ;;  %3558 = vmatpush.bf16.msrb.mxu0 %v6109_v13  ;;  %3527 = vmatmul.bf16.vlgmr.msra.gmra.mxu1 %v7411_v29 }
  0x7f   :  { %v7032_v20 = vld [vmem:[#allocation2 + $0xccc] sm:$0xf0]  ;;  %v6220_v21 = vld [vmem:[#allocation2 + $0xdc0] sm:$0xf]  ;;  %v6493_v23 = vor.u32 %v7132_v11, %v6492_v10  ;;  %3571 = vmatpush.bf16.msrb.mxu1 %v6237_v14  ;;  %3540 = vmatmul.bf16.vlgmr.msra.gmra.mxu2 %v7407_v28 }
  0x80   :  { %v7064_v25 = vld [vmem:[#allocation2 + $0xdcc] sm:$0xf0]  ;;  %v6348_v26 = vld [vmem:[#allocation2 + $0xec0] sm:$0xf]  ;;  %v6093_v32 = vor.u32 %v7032_v20, %v6092_v17  ;;  %3584 = vmatpush.bf16.msrb.mxu2 %v6365_v15  ;;  %3553 = vmatmul.bf16.vlgmr.msra.gmra.mxu3 %v7415_v16 }
  0x81   :  { %v7096_v27 = vld [vmem:[#allocation2 + $0xecc] sm:$0xf0]  ;;  %v6476_v30 = vld [vmem:[#allocation2 + $0xfc0] sm:$0xf]  ;;  %v6221_v33 = vor.u32 %v7064_v25, %v6220_v21  ;;  %3597 = vmatpush.bf16.msrb.mxu3 %v6493_v23 }
  0x82   :  { %v7128_v31 = vld [vmem:[#allocation2 + $0xfcc] sm:$0xf0]  ;;  %v6349_v37 = vor.u32 %v7096_v27, %v6348_v26  ;;  %v6076_v38 = vld [vmem:[#allocation2 + $0xca0] sm:$0xf]  ;;  %3559 = vmatpush.bf16.msrb.mxu0 %v6093_v32 }
  0x83   :  { %v7028_v18 = vld [vmem:[#allocation2 + $0xcac] sm:$0xf0]  ;;  %v6204_v41 = vld [vmem:[#allocation2 + $0xda0] sm:$0xf]  ;;  %v6477_v19 = vor.u32 %v7128_v31, %v6476_v30  ;;  %3572 = vmatpush.bf16.msrb.mxu1 %v6221_v33 }
  0x84   :  { %v7060_v45 = vld [vmem:[#allocation2 + $0xdac] sm:$0xf0]  ;;  %v6332_v46 = vld [vmem:[#allocation2 + $0xea0] sm:$0xf]  ;;  %v6077_v49 = vor.u32 %v7028_v18, %v6076_v38  ;;  %3585 = vmatpush.bf16.msrb.mxu2 %v6349_v37 }
  0x85   :  { %v7092_v47 = vld [vmem:[#allocation2 + $0xeac] sm:$0xf0]  ;;  %v6460_v22 = vld [vmem:[#allocation2 + $0xfa0] sm:$0xf]  ;;  %v6205_v50 = vor.u32 %v7060_v45, %v6204_v41  ;;  %3598 = vmatpush.bf16.msrb.mxu3 %v6477_v19 }
  0x86   :  { %v7124_v48 = vld [vmem:[#allocation2 + $0xfac] sm:$0xf0]  ;;  %v6333_v51 = vor.u32 %v7092_v47, %v6332_v46  ;;  %v6060_v52 = vld [vmem:[#allocation2 + $0xc80] sm:$0xf]  ;;  %3560 = vmatpush.bf16.msrb.mxu0 %v6077_v49 }
  0x87   :  { %v7024_v53 = vld [vmem:[#allocation2 + $0xc8c] sm:$0xf0]  ;;  %v6188_v54 = vld [vmem:[#allocation2 + $0xd80] sm:$0xf]  ;;  %v6461_v55 = vor.u32 %v7124_v48, %v6460_v22  ;;  %3573 = vmatpush.bf16.msrb.mxu1 %v6205_v50 }
  0x88   :  { %v7056_v56 = vld [vmem:[#allocation2 + $0xd8c] sm:$0xf0]  ;;  %v6316_v57 = vld [vmem:[#allocation2 + $0xe80] sm:$0xf]  ;;  %v6061_v61 = vor.u32 %v7024_v53, %v6060_v52  ;;  %3586 = vmatpush.bf16.msrb.mxu2 %v6333_v51 }
  0x89   :  { %v7088_v58 = vld [vmem:[#allocation2 + $0xe8c] sm:$0xf0]  ;;  %v6444_v59 = vld [vmem:[#allocation2 + $0xf80] sm:$0xf]  ;;  %v6189_v62 = vor.u32 %v7056_v56, %v6188_v54  ;;  %3599 = vmatpush.bf16.msrb.mxu3 %v6461_v55 }
  0x8a   :  { %v7120_v60 = vld [vmem:[#allocation2 + $0xf8c] sm:$0xf0]  ;;  %v6317_v63 = vor.u32 %v7088_v58, %v6316_v57  ;;  %v6044_v0 = vld [vmem:[#allocation2 + $0xc60] sm:$0xf]  ;;  %3561 = vmatpush.bf16.msrb.mxu0 %v6061_v61  ;;  %v6682_v61 = vld [vmem:[#allocation2 + $0x1e4] sm:$0xf] }
  0x8b   :  { %v7020_v1 = vld [vmem:[#allocation2 + $0xc6c] sm:$0xf0]  ;;  %v6172_v2 = vld [vmem:[#allocation2 + $0xd60] sm:$0xf]  ;;  %v6445_v3 = vor.u32 %v7120_v60, %v6444_v59  ;;  %3574 = vmatpush.bf16.msrb.mxu1 %v6189_v62  ;;  %v6650_v59 = vld [vmem:[#allocation2 + $0xe4] sm:$0xf] }
  0x8c   :  { %v7052_v4 = vld [vmem:[#allocation2 + $0xd6c] sm:$0xf0]  ;;  %v6300_v5 = vld [vmem:[#allocation2 + $0xe60] sm:$0xf]  ;;  %v6045_v9 = vor.u32 %v7020_v1, %v6044_v0  ;;  %3587 = vmatpush.bf16.msrb.mxu2 %v6317_v63  ;;  %v4574_v60 = vld [vmem:[#allocation2 + $0xf0] sm:$0xf0] }
  0x8d   :  { %v7084_v6 = vld [vmem:[#allocation2 + $0xe6c] sm:$0xf0]  ;;  %v6428_v7 = vld [vmem:[#allocation2 + $0xf60] sm:$0xf]  ;;  %v6173_v10 = vor.u32 %v7052_v4, %v6172_v2  ;;  %3600 = vmatpush.bf16.msrb.mxu3 %v6445_v3  ;;  %v4702_v63 = vld [vmem:[#allocation2 + $0x1f0] sm:$0xf0] }
  0x8e   :  { %v7116_v8 = vld [vmem:[#allocation2 + $0xf6c] sm:$0xf0]  ;;  %v6301_v11 = vor.u32 %v7084_v6, %v6300_v5  ;;  %v6028_v12 = vld [vmem:[#allocation2 + $0xc40] sm:$0xf]  ;;  %3562 = vmatpush.bf16.msrb.mxu0 %v6045_v9  ;;  %v6714_v0 = vld [vmem:[#allocation2 + $0x2e4] sm:$0xf] }
  0x8f   :  { %v7016_v13 = vld [vmem:[#allocation2 + $0xc4c] sm:$0xf0]  ;;  %v6156_v14 = vld [vmem:[#allocation2 + $0xd40] sm:$0xf]  ;;  %v6429_v15 = vor.u32 %v7116_v8, %v6428_v7  ;;  %3575 = vmatpush.bf16.msrb.mxu1 %v6173_v10  ;;  %v4830_v1 = vld [vmem:[#allocation2 + $0x2f0] sm:$0xf0]  ;;  %v4577_v10 = vor.u32 %v6650_v59, %v4574_v60 }
  0x90   :  { %v7048_v17 = vld [vmem:[#allocation2 + $0xd4c] sm:$0xf0]  ;;  %v6284_v20 = vld [vmem:[#allocation2 + $0xe40] sm:$0xf]  ;;  %v6029_v26 = vor.u32 %v7016_v13, %v6028_v12  ;;  %3588 = vmatpush.bf16.msrb.mxu2 %v6301_v11  ;;  %v4705_v11 = vor.u32 %v6682_v61, %v4702_v63  ;;  %v6702_v59 = vld [vmem:[#allocation2 + $0x284] sm:$0xf] }
  0x91   :  { %v7080_v21 = vld [vmem:[#allocation2 + $0xe4c] sm:$0xf0]  ;;  %v6412_v23 = vld [vmem:[#allocation2 + $0xf40] sm:$0xf]  ;;  %v6157_v30 = vor.u32 %v7048_v17, %v6156_v14  ;;  %3601 = vmatpush.bf16.msrb.mxu3 %v6429_v15  ;;  %v6646_v14 = vld [vmem:[#allocation2 + $0xc4] sm:$0xf]  ;;  %v4833_v15 = vor.u32 %v6714_v0, %v4830_v1 }
  0x92   :  { %v7112_v25 = vld [vmem:[#allocation2 + $0xf4c] sm:$0xf0]  ;;  %v6012_v27 = vld [vmem:[#allocation2 + $0xc20] sm:$0xf]  ;;  %v6285_v31 = vor.u32 %v7080_v21, %v6284_v20  ;;  %3563 = vmatpush.bf16.msrb.mxu0 %v6029_v26  ;;  %v4558_v20 = vld [vmem:[#allocation2 + $0xd0] sm:$0xf0] }
  0x93   :  { %v7012_v32 = vld [vmem:[#allocation2 + $0xc2c] sm:$0xf0]  ;;  %v6140_v33 = vld [vmem:[#allocation2 + $0xd20] sm:$0xf]  ;;  %v6413_v38 = vor.u32 %v7112_v25, %v6412_v23  ;;  %3576 = vmatpush.bf16.msrb.mxu1 %v6157_v30  ;;  %v6678_v21 = vld [vmem:[#allocation2 + $0x1c4] sm:$0xf] }
  0x94   :  { %v7044_v37 = vld [vmem:[#allocation2 + $0xd2c] sm:$0xf0]  ;;  %v6268_v18 = vld [vmem:[#allocation2 + $0xe20] sm:$0xf]  ;;  %v6013_v22 = vor.u32 %v7012_v32, %v6012_v27  ;;  %3589 = vmatpush.bf16.msrb.mxu2 %v6285_v31  ;;  %v4686_v23 = vld [vmem:[#allocation2 + $0x1d0] sm:$0xf0] }
  0x95   :  { %v7076_v41 = vld [vmem:[#allocation2 + $0xe2c] sm:$0xf0]  ;;  %v6396_v19 = vld [vmem:[#allocation2 + $0xf20] sm:$0xf]  ;;  %v6141_v50 = vor.u32 %v7044_v37, %v6140_v33  ;;  %3602 = vmatpush.bf16.msrb.mxu3 %v6413_v38  ;;  %v6710_v27 = vld [vmem:[#allocation2 + $0x2c4] sm:$0xf]  ;;  %v4561_v33 = vor.u32 %v6646_v14, %v4558_v20  ;;  %v4689_v37 = vor.u32 %v6678_v21, %v4686_v23 }
  0x96   :  { %v7108_v45 = vld [vmem:[#allocation2 + $0xf2c] sm:$0xf0]  ;;  %v5996_v46 = vld [vmem:[#allocation2 + $0xc00] sm:$0xf]  ;;  %v6269_v51 = vor.u32 %v7076_v41, %v6268_v18  ;;  %3564 = vmatpush.bf16.msrb.mxu0 %v6013_v22  ;;  %v4814_v30 = vld [vmem:[#allocation2 + $0x2d0] sm:$0xf0] }
  0x97   :  { %v7008_v47 = vld [vmem:[#allocation2 + $0xc0c] sm:$0xf0]  ;;  %v6124_v48 = vld [vmem:[#allocation2 + $0xd00] sm:$0xf]  ;;  %v6397_v55 = vor.u32 %v7108_v45, %v6396_v19  ;;  %3577 = vmatpush.bf16.msrb.mxu1 %v6141_v50  ;;  %v6642_v41 = vld [vmem:[#allocation2 + $0xa4] sm:$0xf]  ;;  %v4817_v19 = vor.u32 %v6710_v27, %v4814_v30 }
  0x98   :  { %v7040_v49 = vld [vmem:[#allocation2 + $0xd0c] sm:$0xf0]  ;;  %v6252_v52 = vld [vmem:[#allocation2 + $0xe00] sm:$0xf]  ;;  %v5997_v62 = vor.u32 %v7008_v47, %v5996_v46  ;;  %3590 = vmatpush.bf16.msrb.mxu2 %v6269_v51  ;;  %v4542_v45 = vld [vmem:[#allocation2 + $0xb0] sm:$0xf0] }
  0x99   :  { %v7072_v53 = vld [vmem:[#allocation2 + $0xe0c] sm:$0xf0]  ;;  %v6380_v54 = vld [vmem:[#allocation2 + $0xf00] sm:$0xf]  ;;  %v6125_v2 = vor.u32 %v7040_v49, %v6124_v48  ;;  %3603 = vmatpush.bf16.msrb.mxu3 %v6397_v55  ;;  %v6674_v46 = vld [vmem:[#allocation2 + $0x1a4] sm:$0xf]  ;;  %v4545_v50 = vor.u32 %v6642_v41, %v4542_v45 }
  0x9a   :  { %v7104_v56 = vld [vmem:[#allocation2 + $0xf0c] sm:$0xf0]  ;;  %v6604_v57 = vld [vmem:[#allocation2 + $0x10c0] sm:$0xf]  ;;  %v6253_v3 = vor.u32 %v7072_v53, %v6252_v52  ;;  %3565 = vmatpush.bf16.msrb.mxu0 %v5997_v62  ;;  %v4670_v47 = vld [vmem:[#allocation2 + $0x1b0] sm:$0xf0] }
  0x9b   :  { %v7160_v58 = vld [vmem:[#allocation2 + $0x10cc] sm:$0xf0]  ;;  %v108_v4 = vld.sshfl [vmem:[#allocation1 + $0x20] sm:$0xff pattern:$0x73625140]  ;;  %v6381_v6 = vor.u32 %v7104_v56, %v6380_v54  ;;  %3578 = vmatpush.bf16.msrb.mxu1 %v6125_v2  ;;  %v4673_v51 = vor.u32 %v6674_v46, %v4670_v47 }
  0x9c   :  { %v110_v5 = vld.sshfl [vmem:[#allocation1 + $0x30] sm:$0xff pattern:$0x73625140]  ;;  %v6605_v7 = vor.u32 %v7160_v58, %v6604_v57  ;;  %v109_v8 = vld.sshfl [vmem:[#allocation1 + $0x28] sm:$0xff pattern:$0x73625140]  ;;  %v7421_v17 = vpack.c.bf16 %v108_v4, %v108_v4  ;;  %3591 = vmatpush.bf16.msrb.mxu2 %v6253_v3 }
  0x9d   :  { %v111_v9 = vld.sshfl [vmem:[#allocation1 + $0x38] sm:$0xff pattern:$0x73625140]  ;;  %v6588_v12 = vld [vmem:[#allocation2 + $0x10a0] sm:$0xf]  ;;  %v7423_v25 = vpack.c.bf16 %v110_v5, %v110_v5  ;;  %v7425_v26 = vpack.c.bf16 %v109_v8, %v109_v8  ;;  %3604 = vmatpush.bf16.msrb.mxu3 %v6381_v6 }
  0x9e   :  { %v7156_v13 = vld [vmem:[#allocation2 + $0x10ac] sm:$0xf0]  ;;  %3611 = vmatpush.bf16.msra.mxu0 %v6605_v7  ;;  %v7427_v31 = vpack.c.bf16 %v111_v9, %v111_v9  ;;  %v6572_v38 = vld [vmem:[#allocation2 + $0x1080] sm:$0xf]  ;;  %v6706_v22 = vld [vmem:[#allocation2 + $0x2a4] sm:$0xf] }
  0x9f   :  { %v6589_v32 = vor.u32 %v7156_v13, %v6588_v12  ;;  %3623 = vmatpush.bf16.msra.mxu1 %v4577_v10  ;;  %v7152_v18 = vld [vmem:[#allocation2 + $0x108c] sm:$0xf0]  ;;  %3566 = vmatmul.bf16.vlgmr.msrb.gmra.mxu0 %v7421_v17  ;;  %v4798_v48 = vld [vmem:[#allocation2 + $0x2b0] sm:$0xf0]  ;;  %v6556_v52 = vld [vmem:[#allocation2 + $0x1060] sm:$0xf] }
  0xa0   :  { %3636 = vmatpush.bf16.msra.mxu2 %v4705_v11  ;;  %3579 = vmatmul.bf16.vlgmr.msrb.gmra.mxu1 %v7425_v26  ;;  %v6573_v49 = vor.u32 %v7152_v18, %v6572_v38  ;;  %v7148_v53 = vld [vmem:[#allocation2 + $0x106c] sm:$0xf0]  ;;  %v6638_v54 = vld [vmem:[#allocation2 + $0x84] sm:$0xf]  ;;  %v4801_v55 = vor.u32 %v6706_v22, %v4798_v48  ;;  %v4526_v56 = vld [vmem:[#allocation2 + $0x90] sm:$0xf0] }
  0xa1   :  { %3649 = vmatpush.bf16.msra.mxu3 %v4833_v15  ;;  %3592 = vmatmul.bf16.vlgmr.msrb.gmra.mxu2 %v7423_v25  ;;  %v6670_v57 = vld [vmem:[#allocation2 + $0x184] sm:$0xf]  ;;  %v4654_v58 = vld [vmem:[#allocation2 + $0x190] sm:$0xf0]  ;;  %v6557_v61 = vor.u32 %v7148_v53, %v6556_v52  ;;  %v4529_v62 = vor.u32 %v6638_v54, %v4526_v56  ;;  %v6540_v0 = vld [vmem:[#allocation2 + $0x1040] sm:$0xf] }
  0xa2   :  { %3605 = vmatmul.bf16.vlgmr.msrb.gmra.mxu3 %v7427_v31  ;;  %3612 = vmatpush.bf16.msra.mxu0 %v6589_v32  ;;  %v4782_v60 = vld [vmem:[#allocation2 + $0x290] sm:$0xf0]  ;;  %v4657_v63 = vor.u32 %v6670_v57, %v4654_v58  ;;  %v7144_v1 = vld [vmem:[#allocation2 + $0x104c] sm:$0xf0]  ;;  %v6634_v2 = vld [vmem:[#allocation2 + $0x64] sm:$0xf] }
  0xa3   :  { %3624 = vmatpush.bf16.msra.mxu1 %v4561_v33  ;;  %v4785_v3 = vor.u32 %v6702_v59, %v4782_v60  ;;  %v4510_v4 = vld [vmem:[#allocation2 + $0x70] sm:$0xf0]  ;;  %v6666_v5 = vld [vmem:[#allocation2 + $0x164] sm:$0xf]  ;;  %v6541_v9 = vor.u32 %v7144_v1, %v6540_v0  ;;  %v6524_v12 = vld [vmem:[#allocation2 + $0x1020] sm:$0xf] }
  0xa4   :  { %3637 = vmatpush.bf16.msra.mxu2 %v4689_v37  ;;  %v4638_v6 = vld [vmem:[#allocation2 + $0x170] sm:$0xf0]  ;;  %v6698_v7 = vld [vmem:[#allocation2 + $0x264] sm:$0xf]  ;;  %v4513_v10 = vor.u32 %v6634_v2, %v4510_v4  ;;  %v7140_v13 = vld [vmem:[#allocation2 + $0x102c] sm:$0xf0] }
  0xa5   :  { %3650 = vmatpush.bf16.msra.mxu3 %v4817_v19  ;;  %v4766_v8 = vld [vmem:[#allocation2 + $0x270] sm:$0xf0]  ;;  %v4641_v11 = vor.u32 %v6666_v5, %v4638_v6  ;;  %v6630_v14 = vld [vmem:[#allocation2 + $0x44] sm:$0xf]  ;;  %v6525_v32 = vor.u32 %v7140_v13, %v6524_v12  ;;  %v6508_v33 = vld [vmem:[#allocation2 + $0x1000] sm:$0xf] }
  0xa6   :  { %3613 = vmatpush.bf16.msra.mxu0 %v6573_v49  ;;  %v4769_v15 = vor.u32 %v6698_v7, %v4766_v8  ;;  %v4494_v20 = vld [vmem:[#allocation2 + $0x50] sm:$0xf0]  ;;  %v6662_v21 = vld [vmem:[#allocation2 + $0x144] sm:$0xf]  ;;  %v7136_v18 = vld [vmem:[#allocation2 + $0x100c] sm:$0xf0] }
  0xa7   :  { %3625 = vmatpush.bf16.msra.mxu1 %v4545_v50  ;;  %v4622_v23 = vld [vmem:[#allocation2 + $0x150] sm:$0xf0]  ;;  %v6694_v27 = vld [vmem:[#allocation2 + $0x244] sm:$0xf]  ;;  %v4497_v37 = vor.u32 %v6630_v14, %v4494_v20 }
  0xa8   :  { %3638 = vmatpush.bf16.msra.mxu2 %v4673_v51  ;;  %v4750_v30 = vld [vmem:[#allocation2 + $0x250] sm:$0xf0]  ;;  %v4625_v38 = vor.u32 %v6662_v21, %v4622_v23  ;;  %v6626_v41 = vld [vmem:[#allocation2 + $0x24] sm:$0xf]  ;;  %v6509_v51 = vor.u32 %v7136_v18, %v6508_v33 }
  0xa9   :  { %3651 = vmatpush.bf16.msra.mxu3 %v4801_v55  ;;  %v4478_v19 = vld [vmem:[#allocation2 + $0x30] sm:$0xf0]  ;;  %v4753_v45 = vor.u32 %v6694_v27, %v4750_v30  ;;  %v6658_v46 = vld [vmem:[#allocation2 + $0x124] sm:$0xf] }
  0xaa   :  { %3614 = vmatpush.bf16.msra.mxu0 %v6557_v61  ;;  %v4606_v47 = vld [vmem:[#allocation2 + $0x130] sm:$0xf0]  ;;  %v6690_v22 = vld [vmem:[#allocation2 + $0x224] sm:$0xf]  ;;  %v4481_v53 = vor.u32 %v6626_v41, %v4478_v19 }
  0xab   :  { %3626 = vmatpush.bf16.msra.mxu1 %v4529_v62  ;;  %v4734_v48 = vld [vmem:[#allocation2 + $0x230] sm:$0xf0]  ;;  %v6746_v49 = vld [vmem:[#allocation2 + $0x3e4] sm:$0xf]  ;;  %v4609_v54 = vor.u32 %v6658_v46, %v4606_v47 }
  0xac   :  { %3639 = vmatpush.bf16.msra.mxu2 %v4657_v63  ;;  %v4958_v50 = vld [vmem:[#allocation2 + $0x3f0] sm:$0xf0]  ;;  %v113_v52 = vld.sshfl [vmem:[#allocation1] sm:$0xff pattern:$0x73625140]  ;;  %v4737_v58 = vor.u32 %v6690_v22, %v4734_v48 }
  0xad   :  { %3652 = vmatpush.bf16.msra.mxu3 %v4785_v3  ;;  %v6622_v55 = vld [vmem:[#allocation2 + $0x4] sm:$0xf]  ;;  %v4462_v56 = vld [vmem:[#allocation2 + $0x10] sm:$0xf0]  ;;  %v4961_v59 = vor.u32 %v6746_v49, %v4958_v50  ;;  %v7433_v63 = vpack.c.bf16 %v113_v52, %v113_v52 }
  0xae   :  { %3615 = vmatpush.bf16.msra.mxu0 %v6541_v9  ;;  %v6654_v57 = vld [vmem:[#allocation2 + $0x104] sm:$0xf]  ;;  %v4590_v60 = vld [vmem:[#allocation2 + $0x110] sm:$0xf0]  ;;  %v4465_v6 = vor.u32 %v6622_v55, %v4462_v56 }
  0xaf   :  { %3627 = vmatpush.bf16.msra.mxu1 %v4513_v10  ;;  %v6686_v61 = vld [vmem:[#allocation2 + $0x204] sm:$0xf]  ;;  %v4718_v62 = vld [vmem:[#allocation2 + $0x210] sm:$0xf0]  ;;  %v4593_v7 = vor.u32 %v6654_v57, %v4590_v60 }
  0xb0   :  { %3640 = vmatpush.bf16.msra.mxu2 %v4641_v11  ;;  %v6742_v0 = vld [vmem:[#allocation2 + $0x3c4] sm:$0xf]  ;;  %v4942_v1 = vld [vmem:[#allocation2 + $0x3d0] sm:$0xf0]  ;;  %v4721_v10 = vor.u32 %v6686_v61, %v4718_v62 }
  0xb1   :  { %3653 = vmatpush.bf16.msra.mxu3 %v4769_v15  ;;  %v6778_v2 = vld [vmem:[#allocation2 + $0x4e4] sm:$0xf]  ;;  %v5086_v3 = vld [vmem:[#allocation2 + $0x4f0] sm:$0xf0]  ;;  %v4945_v11 = vor.u32 %v6742_v0, %v4942_v1 }
  0xb2   :  { %3616 = vmatpush.bf16.msra.mxu0 %v6525_v32  ;;  %v6810_v4 = vld [vmem:[#allocation2 + $0x5e4] sm:$0xf]  ;;  %v5214_v5 = vld [vmem:[#allocation2 + $0x5f0] sm:$0xf0]  ;;  %v5089_v12 = vor.u32 %v6778_v2, %v5086_v3 }
  0xb3   :  { %3628 = vmatpush.bf16.msra.mxu1 %v4497_v37  ;;  %v6842_v8 = vld [vmem:[#allocation2 + $0x6e4] sm:$0xf]  ;;  %v5342_v9 = vld [vmem:[#allocation2 + $0x6f0] sm:$0xf0]  ;;  %v5217_v13 = vor.u32 %v6810_v4, %v5214_v5 }
  0xb4   :  { %3641 = vmatpush.bf16.msra.mxu2 %v4625_v38  ;;  %v6738_v14 = vld [vmem:[#allocation2 + $0x3a4] sm:$0xf]  ;;  %v4926_v15 = vld [vmem:[#allocation2 + $0x3b0] sm:$0xf0]  ;;  %v5345_v21 = vor.u32 %v6842_v8, %v5342_v9 }
  0xb5   :  { %3654 = vmatpush.bf16.msra.mxu3 %v4753_v45  ;;  %v6774_v20 = vld [vmem:[#allocation2 + $0x4c4] sm:$0xf]  ;;  %v5070_v23 = vld [vmem:[#allocation2 + $0x4d0] sm:$0xf0]  ;;  %v4929_v37 = vor.u32 %v6738_v14, %v4926_v15 }
  0xb6   :  { %3617 = vmatpush.bf16.msra.mxu0 %v6509_v51  ;;  %v6806_v27 = vld [vmem:[#allocation2 + $0x5c4] sm:$0xf]  ;;  %v5198_v30 = vld [vmem:[#allocation2 + $0x5d0] sm:$0xf0]  ;;  %v5073_v38 = vor.u32 %v6774_v20, %v5070_v23 }
  0xb7   :  { %3629 = vmatpush.bf16.msra.mxu1 %v4481_v53  ;;  %v6838_v32 = vld [vmem:[#allocation2 + $0x6c4] sm:$0xf]  ;;  %v5326_v33 = vld [vmem:[#allocation2 + $0x6d0] sm:$0xf0]  ;;  %v5201_v18 = vor.u32 %v6806_v27, %v5198_v30 }
  0xb8   :  { %3642 = vmatpush.bf16.msra.mxu2 %v4609_v54  ;;  %v6734_v41 = vld [vmem:[#allocation2 + $0x384] sm:$0xf]  ;;  %v4910_v19 = vld [vmem:[#allocation2 + $0x390] sm:$0xf0]  ;;  %v5329_v46 = vor.u32 %v6838_v32, %v5326_v33  ;;  %v688_v33 = vld [vmem:[#allocation5] sm:$0xf] }
  0xb9   :  { %3655 = vmatpush.bf16.msra.mxu3 %v4737_v58  ;;  %6618 = vmatmul.msk.bf16.vlgmr.msra.gmra.mxu0 %vm3398_vm0, %v7433_v63  ;;  %v6770_v45 = vld [vmem:[#allocation2 + $0x4a4] sm:$0xf]  ;;  %v5054_v47 = vld [vmem:[#allocation2 + $0x4b0] sm:$0xf0]  ;;  %v4913_v51 = vor.u32 %v6734_v41, %v4910_v19 }
  0xba   :  { %3662 = vmatpush.bf16.msrb.mxu0 %v4961_v59  ;;  %v6802_v22 = vld [vmem:[#allocation2 + $0x5a4] sm:$0xf]  ;;  %v5182_v48 = vld [vmem:[#allocation2 + $0x5b0] sm:$0xf0]  ;;  %v5057_v52 = vor.u32 %v6770_v45, %v5054_v47 }
  0xbb   :  { %3630 = vmatpush.bf16.msra.mxu1 %v4465_v6  ;;  %v6834_v49 = vld [vmem:[#allocation2 + $0x6a4] sm:$0xf]  ;;  %v5310_v50 = vld [vmem:[#allocation2 + $0x6b0] sm:$0xf0]  ;;  %v5185_v53 = vor.u32 %v6802_v22, %v5182_v48  ;;  %v690_v48 = vperm.slane %v688_v33, 0 }
  0xbc   :  { %3643 = vmatpush.bf16.msra.mxu2 %v4593_v7  ;;  %v6730_v54 = vld [vmem:[#allocation2 + $0x364] sm:$0xf]  ;;  %v4894_v55 = vld [vmem:[#allocation2 + $0x370] sm:$0xf0]  ;;  %v5313_v57 = vor.u32 %v6834_v49, %v5310_v50 }
  0xbd   :  { %3656 = vmatpush.bf16.msra.mxu3 %v4721_v10  ;;  %v6766_v56 = vld [vmem:[#allocation2 + $0x484] sm:$0xf]  ;;  %v5038_v58 = vld [vmem:[#allocation2 + $0x490] sm:$0xf0]  ;;  %v4897_v0 = vor.u32 %v6730_v54, %v4894_v55 }
  0xbe   :  { %3663 = vmatpush.bf16.msrb.mxu0 %v4945_v11  ;;  %3631 = vmatmul.bf16.vlgmr.msra.gmra.mxu1 %v7362_v36  ;;  %v6798_v59 = vld [vmem:[#allocation2 + $0x584] sm:$0xf]  ;;  %v5166_v60 = vld [vmem:[#allocation2 + $0x590] sm:$0xf0]  ;;  %v5041_v1 = vor.u32 %v6766_v56, %v5038_v58 }
  0xbf   :  { %3675 = vmatpush.bf16.msrb.mxu1 %v5089_v12  ;;  %3644 = vmatmul.bf16.vlgmr.msra.gmra.mxu2 %v7366_v43  ;;  %v6830_v61 = vld [vmem:[#allocation2 + $0x684] sm:$0xf]  ;;  %v5294_v62 = vld [vmem:[#allocation2 + $0x690] sm:$0xf0]  ;;  %v5169_v2 = vor.u32 %v6798_v59, %v5166_v60 }
  0xc0   :  { %3688 = vmatpush.bf16.msrb.mxu2 %v5217_v13  ;;  %3657 = vmatmul.bf16.vlgmr.msra.gmra.mxu3 %v7360_v35  ;;  %v6726_v3 = vld [vmem:[#allocation2 + $0x344] sm:$0xf]  ;;  %v4878_v4 = vld [vmem:[#allocation2 + $0x350] sm:$0xf0]  ;;  %v5297_v6 = vor.u32 %v6830_v61, %v5294_v62 }
  0xc1   :  { %3701 = vmatpush.bf16.msrb.mxu3 %v5345_v21  ;;  %v6762_v5 = vld [vmem:[#allocation2 + $0x464] sm:$0xf]  ;;  %v5022_v7 = vld [vmem:[#allocation2 + $0x470] sm:$0xf0]  ;;  %v4881_v12 = vor.u32 %v6726_v3, %v4878_v4 }
  0xc2   :  { %3664 = vmatpush.bf16.msrb.mxu0 %v4929_v37  ;;  %v6794_v8 = vld [vmem:[#allocation2 + $0x564] sm:$0xf]  ;;  %v5150_v9 = vld [vmem:[#allocation2 + $0x570] sm:$0xf0]  ;;  %v5025_v14 = vor.u32 %v6762_v5, %v5022_v7 }
  0xc3   :  { %3676 = vmatpush.bf16.msrb.mxu1 %v5073_v38  ;;  %v6826_v10 = vld [vmem:[#allocation2 + $0x664] sm:$0xf]  ;;  %v5278_v11 = vld [vmem:[#allocation2 + $0x670] sm:$0xf0]  ;;  %v5153_v15 = vor.u32 %v6794_v8, %v5150_v9 }
  0xc4   :  { %3689 = vmatpush.bf16.msrb.mxu2 %v5201_v18  ;;  %v6722_v13 = vld [vmem:[#allocation2 + $0x324] sm:$0xf]  ;;  %v4862_v20 = vld [vmem:[#allocation2 + $0x330] sm:$0xf0]  ;;  %v5281_v27 = vor.u32 %v6826_v10, %v5278_v11 }
  0xc5   :  { %3702 = vmatpush.bf16.msrb.mxu3 %v5329_v46  ;;  %v6758_v21 = vld [vmem:[#allocation2 + $0x444] sm:$0xf]  ;;  %v5006_v23 = vld [vmem:[#allocation2 + $0x450] sm:$0xf0]  ;;  %v4865_v18 = vor.u32 %v6722_v13, %v4862_v20 }
  0xc6   :  { %3665 = vmatpush.bf16.msrb.mxu0 %v4913_v51  ;;  %v6790_v30 = vld [vmem:[#allocation2 + $0x544] sm:$0xf]  ;;  %v5134_v32 = vld [vmem:[#allocation2 + $0x550] sm:$0xf0]  ;;  %v5009_v45 = vor.u32 %v6758_v21, %v5006_v23 }
  0xc7   :  { %3677 = vmatpush.bf16.msrb.mxu1 %v5057_v52  ;;  %v6822_v37 = vld [vmem:[#allocation2 + $0x644] sm:$0xf]  ;;  %v5262_v38 = vld [vmem:[#allocation2 + $0x650] sm:$0xf0]  ;;  %v5137_v46 = vor.u32 %v6790_v30, %v5134_v32 }
  0xc8   :  { %3690 = vmatpush.bf16.msrb.mxu2 %v5185_v53  ;;  %v6718_v41 = vld [vmem:[#allocation2 + $0x304] sm:$0xf]  ;;  %v4846_v19 = vld [vmem:[#allocation2 + $0x310] sm:$0xf0]  ;;  %v5265_v49 = vor.u32 %v6822_v37, %v5262_v38 }
  0xc9   :  { %3703 = vmatpush.bf16.msrb.mxu3 %v5313_v57  ;;  %v6754_v47 = vld [vmem:[#allocation2 + $0x424] sm:$0xf]  ;;  %v4990_v22 = vld [vmem:[#allocation2 + $0x430] sm:$0xf0]  ;;  %v4849_v56 = vor.u32 %v6718_v41, %v4846_v19 }
  0xca   :  { %3666 = vmatpush.bf16.msrb.mxu0 %v4897_v0  ;;  %v6786_v50 = vld [vmem:[#allocation2 + $0x524] sm:$0xf]  ;;  %v5118_v51 = vld [vmem:[#allocation2 + $0x530] sm:$0xf0]  ;;  %v3411_v57 = vpop.f32.mrf.mxu0  ;;  %v4993_v58 = vor.u32 %v6754_v47, %v4990_v22 }
  0xcb   :  { %3678 = vmatpush.bf16.msrb.mxu1 %v5041_v1  ;;  %v6818_v52 = vld [vmem:[#allocation2 + $0x624] sm:$0xf]  ;;  %v5246_v53 = vld [vmem:[#allocation2 + $0x630] sm:$0xf0]  ;;  %v5121_v59 = vor.u32 %v6786_v50, %v5118_v51  ;;  %v3412_v0 = vadd.f32 %v3411_v57, %v690_v48  ;;  %v3424_v9 = vpop.f32.mrf.mxu1 }
  0xcc   :  { %3691 = vmatpush.bf16.msrb.mxu2 %v5169_v2  ;;  %v6874_v54 = vld [vmem:[#allocation2 + $0x7e4] sm:$0xf]  ;;  %v5470_v55 = vld [vmem:[#allocation2 + $0x7f0] sm:$0xf0]  ;;  %v5249_v1 = vor.u32 %v6818_v52, %v5246_v53 }
  0xcd   :  { %3704 = vmatpush.bf16.msrb.mxu3 %v5297_v6  ;;  %v6750_v60 = vld [vmem:[#allocation2 + $0x404] sm:$0xf]  ;;  %v4974_v61 = vld [vmem:[#allocation2 + $0x410] sm:$0xf0]  ;;  %v5473_v2 = vor.u32 %v6874_v54, %v5470_v55  ;;  %v3425_v13 = vadd.f32 %v3424_v9, %v3412_v0 }
  0xce   :  { %3667 = vmatpush.bf16.msrb.mxu0 %v4881_v12  ;;  %v6782_v62 = vld [vmem:[#allocation2 + $0x504] sm:$0xf]  ;;  %v5102_v3 = vld [vmem:[#allocation2 + $0x510] sm:$0xf0] }
  0xcf   :  { %3679 = vmatpush.bf16.msrb.mxu1 %v5025_v14  ;;  %v6814_v4 = vld [vmem:[#allocation2 + $0x604] sm:$0xf]  ;;  %v5230_v5 = vld [vmem:[#allocation2 + $0x610] sm:$0xf0]  ;;  %v4977_v14 = vor.u32 %v6750_v60, %v4974_v61 }
  0xd0   :  { %3692 = vmatpush.bf16.msrb.mxu2 %v5153_v15  ;;  %v6870_v6 = vld [vmem:[#allocation2 + $0x7c4] sm:$0xf]  ;;  %v5454_v7 = vld [vmem:[#allocation2 + $0x7d0] sm:$0xf0]  ;;  %v5105_v15 = vor.u32 %v6782_v62, %v5102_v3  ;;  %v5233_v23 = vor.u32 %v6814_v4, %v5230_v5  ;;  %v3437_v30 = vpop.f32.mrf.mxu2 }
  0xd1   :  { %3705 = vmatpush.bf16.msrb.mxu3 %v5281_v27  ;;  %v6906_v8 = vld [vmem:[#allocation2 + $0x8e4] sm:$0xf]  ;;  %v5598_v10 = vld [vmem:[#allocation2 + $0x8f0] sm:$0xf0]  ;;  %v5457_v27 = vor.u32 %v6870_v6, %v5454_v7  ;;  %v3438_v41 = vadd.f32 %v3437_v30, %v3425_v13  ;;  %v3450_v19 = vpop.f32.mrf.mxu3 }
  0xd2   :  { %3668 = vmatpush.bf16.msrb.mxu0 %v4865_v18  ;;  %v6938_v11 = vld [vmem:[#allocation2 + $0x9e4] sm:$0xf]  ;;  %v5726_v12 = vld [vmem:[#allocation2 + $0x9f0] sm:$0xf0]  ;;  %v5601_v32 = vor.u32 %v6906_v8, %v5598_v10  ;;  %v3413_v48 = vpop.f32.mrf.mxu0 }
  0xd3   :  { %3680 = vmatpush.bf16.msrb.mxu1 %v5009_v45  ;;  %v6970_v20 = vld [vmem:[#allocation2 + $0xae4] sm:$0xf]  ;;  %v5854_v21 = vld [vmem:[#allocation2 + $0xaf0] sm:$0xf0]  ;;  %v5729_v33 = vor.u32 %v6938_v11, %v5726_v12  ;;  %v3451_v51 = vadd.f32 %v3450_v19, %v3438_v41 }
  0xd4   :  { %3693 = vmatpush.bf16.msrb.mxu2 %v5137_v46  ;;  %v6866_v37 = vld [vmem:[#allocation2 + $0x7a4] sm:$0xf]  ;;  %v5438_v38 = vld [vmem:[#allocation2 + $0x7b0] sm:$0xf0]  ;;  %v5857_v45 = vor.u32 %v6970_v20, %v5854_v21 }
  0xd5   :  { %3706 = vmatpush.bf16.msrb.mxu3 %v5265_v49  ;;  %v6902_v18 = vld [vmem:[#allocation2 + $0x8c4] sm:$0xf]  ;;  %v5582_v46 = vld [vmem:[#allocation2 + $0x8d0] sm:$0xf0]  ;;  %v5441_v52 = vor.u32 %v6866_v37, %v5438_v38 }
  0xd6   :  { %3669 = vmatpush.bf16.msrb.mxu0 %v4849_v56  ;;  %v6934_v47 = vld [vmem:[#allocation2 + $0x9c4] sm:$0xf]  ;;  %v5710_v22 = vld [vmem:[#allocation2 + $0x9d0] sm:$0xf0]  ;;  %v5585_v53 = vor.u32 %v6902_v18, %v5582_v46 }
  0xd7   :  { %3681 = vmatpush.bf16.msrb.mxu1 %v4993_v58  ;;  %v6966_v49 = vld [vmem:[#allocation2 + $0xac4] sm:$0xf]  ;;  %v5838_v50 = vld [vmem:[#allocation2 + $0xad0] sm:$0xf0]  ;;  %v5713_v54 = vor.u32 %v6934_v47, %v5710_v22  ;;  %v3426_v58 = vpop.f32.mrf.mxu1 }
  0xd8   :  { %3694 = vmatpush.bf16.msrb.mxu2 %v5121_v59  ;;  %v6862_v55 = vld [vmem:[#allocation2 + $0x784] sm:$0xf]  ;;  %v5422_v56 = vld [vmem:[#allocation2 + $0x790] sm:$0xf0]  ;;  %v5841_v59 = vor.u32 %v6966_v49, %v5838_v50  ;;  %v3439_v3 = vpop.f32.mrf.mxu2 }
  0xd9   :  { %3707 = vmatpush.bf16.msrb.mxu3 %v5249_v1  ;;  %3670 = vmatmul.bf16.vlgmr.msrb.gmra.mxu0 %v7364_v42  ;;  %v6898_v57 = vld [vmem:[#allocation2 + $0x8a4] sm:$0xf]  ;;  %v5566_v60 = vld [vmem:[#allocation2 + $0x8b0] sm:$0xf0]  ;;  %v3452_v9 = vpop.f32.mrf.mxu3 }
  0xda   :  { %3714 = vmatpush.bf16.msra.mxu0 %v5473_v2  ;;  %v6930_v61 = vld [vmem:[#allocation2 + $0x9a4] sm:$0xf]  ;;  %v5694_v62 = vld [vmem:[#allocation2 + $0x9b0] sm:$0xf0]  ;;  %v5425_v2 = vor.u32 %v6862_v55, %v5422_v56  ;;  %v5569_v4 = vor.u32 %v6898_v57, %v5566_v60 }
  0xdb   :  { %3682 = vmatpush.bf16.msrb.mxu1 %v4977_v14  ;;  %v6962_v0 = vld [vmem:[#allocation2 + $0xaa4] sm:$0xf]  ;;  %v5822_v1 = vld [vmem:[#allocation2 + $0xab0] sm:$0xf0]  ;;  %v5697_v5 = vor.u32 %v6930_v61, %v5694_v62 }
  0xdc   :  { %3695 = vmatpush.bf16.msrb.mxu2 %v5105_v15  ;;  %v6858_v6 = vld [vmem:[#allocation2 + $0x764] sm:$0xf]  ;;  %v5406_v7 = vld [vmem:[#allocation2 + $0x770] sm:$0xf0]  ;;  %v5825_v10 = vor.u32 %v6962_v0, %v5822_v1 }
  0xdd   :  { %3708 = vmatpush.bf16.msrb.mxu3 %v5233_v23  ;;  %v6894_v8 = vld [vmem:[#allocation2 + $0x884] sm:$0xf]  ;;  %v5550_v11 = vld [vmem:[#allocation2 + $0x890] sm:$0xf0]  ;;  %v5409_v20 = vor.u32 %v6858_v6, %v5406_v7  ;;  %v3463_v21 = vpop.f32.mrf.mxu0 }
  0xde   :  { %3715 = vmatpush.bf16.msra.mxu0 %v5457_v27  ;;  %3683 = vmatmul.bf16.vlgmr.msrb.gmra.mxu1 %v7380_v39  ;;  %v6926_v12 = vld [vmem:[#allocation2 + $0x984] sm:$0xf]  ;;  %v5678_v13 = vld [vmem:[#allocation2 + $0x990] sm:$0xf0]  ;;  %v5553_v23 = vor.u32 %v6894_v8, %v5550_v11  ;;  %v3464_v37 = vadd.f32 %v3463_v21, %v3451_v51 }
  0xdf   :  { %3727 = vmatpush.bf16.msra.mxu1 %v5601_v32  ;;  %3696 = vmatmul.bf16.vlgmr.msrb.gmra.mxu2 %v7384_v44  ;;  %v6958_v14 = vld [vmem:[#allocation2 + $0xa84] sm:$0xf]  ;;  %v5806_v15 = vld [vmem:[#allocation2 + $0xa90] sm:$0xf0]  ;;  %v5681_v27 = vor.u32 %v6926_v12, %v5678_v13  ;;  %v3476_v38 = vpop.f32.mrf.mxu1 }
  0xe0   :  { %3740 = vmatpush.bf16.msra.mxu2 %v5729_v33  ;;  %3709 = vmatmul.bf16.vlgmr.msrb.gmra.mxu3 %v7378_v34  ;;  %v6854_v30 = vld [vmem:[#allocation2 + $0x744] sm:$0xf]  ;;  %v5390_v32 = vld [vmem:[#allocation2 + $0x750] sm:$0xf0]  ;;  %v5809_v18 = vor.u32 %v6958_v14, %v5806_v15  ;;  %v3477_v22 = vadd.f32 %v3476_v38, %v3464_v37 }
  0xe1   :  { %3753 = vmatpush.bf16.msra.mxu3 %v5857_v45  ;;  %v6890_v33 = vld [vmem:[#allocation2 + $0x864] sm:$0xf]  ;;  %v5534_v41 = vld [vmem:[#allocation2 + $0x870] sm:$0xf0]  ;;  %v5393_v48 = vor.u32 %v6854_v30, %v5390_v32  ;;  %v3489_v55 = vpop.f32.mrf.mxu2 }
  0xe2   :  { %3716 = vmatpush.bf16.msra.mxu0 %v5441_v52  ;;  %v6922_v19 = vld [vmem:[#allocation2 + $0x964] sm:$0xf]  ;;  %v5662_v45 = vld [vmem:[#allocation2 + $0x970] sm:$0xf0]  ;;  %v5537_v49 = vor.u32 %v6890_v33, %v5534_v41 }
  0xe3   :  { %3728 = vmatpush.bf16.msra.mxu1 %v5585_v53  ;;  %v6954_v46 = vld [vmem:[#allocation2 + $0xa64] sm:$0xf]  ;;  %v5790_v47 = vld [vmem:[#allocation2 + $0xa70] sm:$0xf0]  ;;  %v5665_v50 = vor.u32 %v6922_v19, %v5662_v45  ;;  %v3502_v60 = vpop.f32.mrf.mxu3 }
  0xe4   :  { %3741 = vmatpush.bf16.msra.mxu2 %v5713_v54  ;;  %v6850_v52 = vld [vmem:[#allocation2 + $0x724] sm:$0xf]  ;;  %v5374_v53 = vld [vmem:[#allocation2 + $0x730] sm:$0xf0]  ;;  %v5793_v51 = vor.u32 %v6954_v46, %v5790_v47 }
  0xe5   :  { %3754 = vmatpush.bf16.msra.mxu3 %v5841_v59  ;;  %v6886_v54 = vld [vmem:[#allocation2 + $0x844] sm:$0xf]  ;;  %v5518_v56 = vld [vmem:[#allocation2 + $0x850] sm:$0xf0]  ;;  %v3490_v59 = vadd.f32 %v3489_v55, %v3477_v22  ;;  %v5377_v0 = vor.u32 %v6850_v52, %v5374_v53  ;;  %v3465_v3 = vpop.f32.mrf.mxu0 }
  0xe6   :  { %3717 = vmatpush.bf16.msra.mxu0 %v5425_v2  ;;  %v6918_v57 = vld [vmem:[#allocation2 + $0x944] sm:$0xf]  ;;  %v5646_v58 = vld [vmem:[#allocation2 + $0x950] sm:$0xf0] }
  0xe7   :  { %3729 = vmatpush.bf16.msra.mxu1 %v5569_v4  ;;  %v6950_v61 = vld [vmem:[#allocation2 + $0xa44] sm:$0xf]  ;;  %v5774_v62 = vld [vmem:[#allocation2 + $0xa50] sm:$0xf0]  ;;  %v7444_v2 = vadd.f32 %v3502_v60, %v3490_v59  ;;  %v5521_v4 = vor.u32 %v6886_v54, %v5518_v56  ;;  %v3478_v9 = vpop.f32.mrf.mxu1 }
  0xe8   :  { %3742 = vmatpush.bf16.msra.mxu2 %v5697_v5  ;;  %v6846_v1 = vld [vmem:[#allocation2 + $0x704] sm:$0xf]  ;;  %v5649_v5 = vor.u32 %v6918_v57, %v5646_v58  ;;  %v5358_v6 = vld [vmem:[#allocation2 + $0x710] sm:$0xf0] }
  0xe9   :  { %3755 = vmatpush.bf16.msra.mxu3 %v5825_v10  ;;  %v6882_v7 = vld [vmem:[#allocation2 + $0x824] sm:$0xf]  ;;  %v5502_v8 = vld [vmem:[#allocation2 + $0x830] sm:$0xf0]  ;;  %v5777_v10 = vor.u32 %v6950_v61, %v5774_v62  ;;  %v5361_v21 = vor.u32 %v6846_v1, %v5358_v6  ;;  %v3491_v37 = vpop.f32.mrf.mxu2 }
  0xea   :  { %3718 = vmatpush.bf16.msra.mxu0 %v5409_v20  ;;  %v6914_v11 = vld [vmem:[#allocation2 + $0x924] sm:$0xf]  ;;  %v5630_v12 = vld [vmem:[#allocation2 + $0x930] sm:$0xf0] }
  0xeb   :  { %3730 = vmatpush.bf16.msra.mxu1 %v5553_v23  ;;  %v6946_v13 = vld [vmem:[#allocation2 + $0xa24] sm:$0xf]  ;;  %v5758_v14 = vld [vmem:[#allocation2 + $0xa30] sm:$0xf0]  ;;  %v5505_v23 = vor.u32 %v6882_v7, %v5502_v8  ;;  %v3504_v46 = vpop.f32.mrf.mxu3 }
  0xec   :  { %3743 = vmatpush.bf16.msra.mxu2 %v5681_v27  ;;  %v7002_v15 = vld [vmem:[#allocation2 + $0xbe4] sm:$0xf]  ;;  %v5982_v20 = vld [vmem:[#allocation2 + $0xbf0] sm:$0xf0]  ;;  %v5633_v27 = vor.u32 %v6914_v11, %v5630_v12  ;;  %v5761_v38 = vor.u32 %v6946_v13, %v5758_v14 }
  0xed   :  { %3756 = vmatpush.bf16.msra.mxu3 %v5809_v18  ;;  %v6878_v30 = vld [vmem:[#allocation2 + $0x804] sm:$0xf]  ;;  %v5486_v32 = vld [vmem:[#allocation2 + $0x810] sm:$0xf0]  ;;  %v5985_v18 = vor.u32 %v7002_v15, %v5982_v20 }
  0xee   :  { %3719 = vmatpush.bf16.msra.mxu0 %v5393_v48  ;;  %v6910_v33 = vld [vmem:[#allocation2 + $0x904] sm:$0xf]  ;;  %v5614_v41 = vld [vmem:[#allocation2 + $0x910] sm:$0xf0]  ;;  %v5489_v53 = vor.u32 %v6878_v30, %v5486_v32 }
  0xef   :  { %3731 = vmatpush.bf16.msra.mxu1 %v5537_v49  ;;  %v6942_v19 = vld [vmem:[#allocation2 + $0xa04] sm:$0xf]  ;;  %v5742_v45 = vld [vmem:[#allocation2 + $0xa10] sm:$0xf0]  ;;  %v5617_v54 = vor.u32 %v6910_v33, %v5614_v41 }
  0xf0   :  { %3744 = vmatpush.bf16.msra.mxu2 %v5665_v50  ;;  %v6998_v47 = vld [vmem:[#allocation2 + $0xbc4] sm:$0xf]  ;;  %v5966_v22 = vld [vmem:[#allocation2 + $0xbd0] sm:$0xf0]  ;;  %v5745_v56 = vor.u32 %v6942_v19, %v5742_v45 }
  0xf1   :  { %3757 = vmatpush.bf16.msra.mxu3 %v5793_v51  ;;  %v7034_v48 = vld [vmem:[#allocation2 + $0xce4] sm:$0xf]  ;;  %v6110_v49 = vld [vmem:[#allocation2 + $0xcf0] sm:$0xf0]  ;;  %v5969_v57 = vor.u32 %v6998_v47, %v5966_v22 }
  0xf2   :  { %3720 = vmatpush.bf16.msra.mxu0 %v5377_v0  ;;  %v7066_v50 = vld [vmem:[#allocation2 + $0xde4] sm:$0xf]  ;;  %v6238_v52 = vld [vmem:[#allocation2 + $0xdf0] sm:$0xf0]  ;;  %v6113_v58 = vor.u32 %v7034_v48, %v6110_v49 }
  0xf3   :  { %3732 = vmatpush.bf16.msra.mxu1 %v5521_v4  ;;  %v7098_v55 = vld [vmem:[#allocation2 + $0xee4] sm:$0xf]  ;;  %v6366_v51 = vld [vmem:[#allocation2 + $0xef0] sm:$0xf0]  ;;  %v6241_v59 = vor.u32 %v7066_v50, %v6238_v52 }
  0xf4   :  { %3745 = vmatpush.bf16.msra.mxu2 %v5649_v5  ;;  %v6994_v60 = vld [vmem:[#allocation2 + $0xba4] sm:$0xf]  ;;  %v5950_v61 = vld [vmem:[#allocation2 + $0xbb0] sm:$0xf0]  ;;  %v6369_v0 = vor.u32 %v7098_v55, %v6366_v51 }
  0xf5   :  { %3758 = vmatpush.bf16.msra.mxu3 %v5777_v10  ;;  %v7030_v62 = vld [vmem:[#allocation2 + $0xcc4] sm:$0xf]  ;;  %v6094_v1 = vld [vmem:[#allocation2 + $0xcd0] sm:$0xf0]  ;;  %v5953_v7 = vor.u32 %v6994_v60, %v5950_v61 }
  0xf6   :  { %3721 = vmatpush.bf16.msra.mxu0 %v5361_v21  ;;  %v7062_v3 = vld [vmem:[#allocation2 + $0xdc4] sm:$0xf]  ;;  %v6222_v4 = vld [vmem:[#allocation2 + $0xdd0] sm:$0xf0]  ;;  %v6097_v8 = vor.u32 %v7030_v62, %v6094_v1 }
  0xf7   :  { %3733 = vmatpush.bf16.msra.mxu1 %v5505_v23  ;;  %v7094_v5 = vld [vmem:[#allocation2 + $0xec4] sm:$0xf]  ;;  %v6350_v6 = vld [vmem:[#allocation2 + $0xed0] sm:$0xf0]  ;;  %v6225_v9 = vor.u32 %v7062_v3, %v6222_v4 }
  0xf8   :  { %3746 = vmatpush.bf16.msra.mxu2 %v5633_v27  ;;  %v6990_v10 = vld [vmem:[#allocation2 + $0xb84] sm:$0xf]  ;;  %v5934_v11 = vld [vmem:[#allocation2 + $0xb90] sm:$0xf0]  ;;  %v6353_v13 = vor.u32 %v7094_v5, %v6350_v6 }
  0xf9   :  { %3759 = vmatpush.bf16.msra.mxu3 %v5761_v38  ;;  %3722 = vmatmul.bf16.vlgmr.msra.gmra.mxu0 %v7382_v40  ;;  %v7026_v12 = vld [vmem:[#allocation2 + $0xca4] sm:$0xf]  ;;  %v6078_v14 = vld [vmem:[#allocation2 + $0xcb0] sm:$0xf0]  ;;  %v5937_v27 = vor.u32 %v6990_v10, %v5934_v11 }
  0xfa   :  { %3766 = vmatpush.bf16.msrb.mxu0 %v5985_v18  ;;  %v7058_v15 = vld [vmem:[#allocation2 + $0xda4] sm:$0xf]  ;;  %v6206_v20 = vld [vmem:[#allocation2 + $0xdb0] sm:$0xf0]  ;;  %v6081_v30 = vor.u32 %v7026_v12, %v6078_v14  ;;  %v3515_v46 = vpop.f32.mrf.mxu0 }
  0xfb   :  { %3734 = vmatpush.bf16.msra.mxu1 %v5489_v53  ;;  %v7090_v21 = vld [vmem:[#allocation2 + $0xea4] sm:$0xf]  ;;  %v6334_v23 = vld [vmem:[#allocation2 + $0xeb0] sm:$0xf0]  ;;  %v6209_v32 = vor.u32 %v7058_v15, %v6206_v20  ;;  %v3516_v48 = vadd.f32 %v3515_v46, %v7444_v2  ;;  %v3528_v50 = vpop.f32.mrf.mxu1 }
  0xfc   :  { %3747 = vmatpush.bf16.msra.mxu2 %v5617_v54  ;;  %v6986_v33 = vld [vmem:[#allocation2 + $0xb64] sm:$0xf]  ;;  %v5918_v37 = vld [vmem:[#allocation2 + $0xb70] sm:$0xf0]  ;;  %v6337_v18 = vor.u32 %v7090_v21, %v6334_v23 }
  0xfd   :  { %3760 = vmatpush.bf16.msra.mxu3 %v5745_v56  ;;  %v7022_v38 = vld [vmem:[#allocation2 + $0xc84] sm:$0xf]  ;;  %v6062_v41 = vld [vmem:[#allocation2 + $0xc90] sm:$0xf0]  ;;  %v5921_v49 = vor.u32 %v6986_v33, %v5918_v37 }
  0xfe   :  { %3767 = vmatpush.bf16.msrb.mxu0 %v5969_v57  ;;  %3735 = vmatmul.bf16.vlgmr.msra.gmra.mxu1 %v7403_v24  ;;  %v7054_v19 = vld [vmem:[#allocation2 + $0xd84] sm:$0xf]  ;;  %v6190_v45 = vld [vmem:[#allocation2 + $0xd90] sm:$0xf0]  ;;  %v6065_v52 = vor.u32 %v7022_v38, %v6062_v41  ;;  %v3529_v57 = vadd.f32 %v3528_v50, %v3516_v48 }
  0xff   :  { %3779 = vmatpush.bf16.msrb.mxu1 %v6113_v58  ;;  %3748 = vmatmul.bf16.vlgmr.msra.gmra.mxu2 %v7411_v29  ;;  %v7086_v47 = vld [vmem:[#allocation2 + $0xe84] sm:$0xf]  ;;  %v6318_v22 = vld [vmem:[#allocation2 + $0xe90] sm:$0xf0]  ;;  %v6193_v53 = vor.u32 %v7054_v19, %v6190_v45 }
 0x100   :  { %3792 = vmatpush.bf16.msrb.mxu2 %v6241_v59  ;;  %3761 = vmatmul.bf16.vlgmr.msra.gmra.mxu3 %v7407_v28  ;;  %v6982_v54 = vld [vmem:[#allocation2 + $0xb44] sm:$0xf]  ;;  %v5902_v55 = vld [vmem:[#allocation2 + $0xb50] sm:$0xf0]  ;;  %v6321_v56 = vor.u32 %v7086_v47, %v6318_v22 }
 0x101   :  { %3805 = vmatpush.bf16.msrb.mxu3 %v6369_v0  ;;  %v7018_v51 = vld [vmem:[#allocation2 + $0xc64] sm:$0xf]  ;;  %v6046_v58 = vld [vmem:[#allocation2 + $0xc70] sm:$0xf0]  ;;  %v5905_v0 = vor.u32 %v6982_v54, %v5902_v55 }
 0x102   :  { %3768 = vmatpush.bf16.msrb.mxu0 %v5953_v7  ;;  %v7050_v59 = vld [vmem:[#allocation2 + $0xd64] sm:$0xf]  ;;  %v6174_v60 = vld [vmem:[#allocation2 + $0xd70] sm:$0xf0]  ;;  %v6049_v2 = vor.u32 %v7018_v51, %v6046_v58  ;;  %v3541_v7 = vpop.f32.mrf.mxu2  ;;  %v3517_v15 = vpop.f32.mrf.mxu0 }
 0x103   :  { %3780 = vmatpush.bf16.msrb.mxu1 %v6097_v8  ;;  %v7082_v61 = vld [vmem:[#allocation2 + $0xe64] sm:$0xf]  ;;  %v6302_v62 = vld [vmem:[#allocation2 + $0xe70] sm:$0xf0]  ;;  %v6177_v1 = vor.u32 %v7050_v59, %v6174_v60  ;;  %v3542_v11 = vadd.f32 %v3541_v7, %v3529_v57  ;;  %v3554_v12 = vpop.f32.mrf.mxu3  ;;  %v3530_v23 = vpop.f32.mrf.mxu1  ;;  %v6685_v7 = vld [vmem:[#allocation2 + $0x1f4] sm:$0xf0] }
 0x104   :  { %3793 = vmatpush.bf16.msrb.mxu2 %v6225_v9  ;;  %v6978_v3 = vld [vmem:[#allocation2 + $0xb24] sm:$0xf]  ;;  %v5886_v4 = vld [vmem:[#allocation2 + $0xb30] sm:$0xf0]  ;;  %v6305_v6 = vor.u32 %v7082_v61, %v6302_v62  ;;  %v6649_v23 = vld [vmem:[#allocation2 + $0xd4] sm:$0xf0] }
 0x105   :  { %3806 = vmatpush.bf16.msrb.mxu3 %v6353_v13  ;;  %v7014_v5 = vld [vmem:[#allocation2 + $0xc44] sm:$0xf]  ;;  %v6030_v8 = vld [vmem:[#allocation2 + $0xc50] sm:$0xf0]  ;;  %v5889_v20 = vor.u32 %v6978_v3, %v5886_v4  ;;  %v6653_v3 = vld [vmem:[#allocation2 + $0xf4] sm:$0xf0] }
 0x106   :  { %3769 = vmatpush.bf16.msrb.mxu0 %v5937_v27  ;;  %v7046_v9 = vld [vmem:[#allocation2 + $0xd44] sm:$0xf]  ;;  %v6158_v10 = vld [vmem:[#allocation2 + $0xd50] sm:$0xf0]  ;;  %v7451_v27 = vadd.f32 %v3554_v12, %v3542_v11 }
 0x107   :  { %3781 = vmatpush.bf16.msrb.mxu1 %v6081_v30  ;;  %v7078_v13 = vld [vmem:[#allocation2 + $0xe44] sm:$0xf]  ;;  %v6286_v14 = vld [vmem:[#allocation2 + $0xe50] sm:$0xf0]  ;;  %v6033_v30 = vor.u32 %v7014_v5, %v6030_v8 }
 0x108   :  { %3794 = vmatpush.bf16.msrb.mxu2 %v6209_v32  ;;  %v6974_v21 = vld [vmem:[#allocation2 + $0xb04] sm:$0xf]  ;;  %v6161_v32 = vor.u32 %v7046_v9, %v6158_v10  ;;  %v5870_v33 = vld [vmem:[#allocation2 + $0xb10] sm:$0xf0] }
 0x109   :  { %3807 = vmatpush.bf16.msrb.mxu3 %v6337_v18  ;;  %v7010_v37 = vld [vmem:[#allocation2 + $0xc24] sm:$0xf]  ;;  %v6014_v38 = vld [vmem:[#allocation2 + $0xc30] sm:$0xf0]  ;;  %v6289_v18 = vor.u32 %v7078_v13, %v6286_v14  ;;  %v5873_v48 = vor.u32 %v6974_v21, %v5870_v33  ;;  %v4564_v21 = vld [vmem:[#allocation2 + $0xc8] sm:$0xf] }
 0x10a   :  { %3770 = vmatpush.bf16.msrb.mxu0 %v5921_v49  ;;  %v7042_v41 = vld [vmem:[#allocation2 + $0xd24] sm:$0xf]  ;;  %v6142_v19 = vld [vmem:[#allocation2 + $0xd30] sm:$0xf0]  ;;  %v6017_v49 = vor.u32 %v7010_v37, %v6014_v38  ;;  %v3543_v59 = vpop.f32.mrf.mxu2  ;;  %v4565_v38 = vor.u32 %v6649_v23, %v4564_v21 }
 0x10b   :  { %3782 = vmatpush.bf16.msrb.mxu1 %v6065_v52  ;;  %v7074_v45 = vld [vmem:[#allocation2 + $0xe24] sm:$0xf]  ;;  %v6270_v46 = vld [vmem:[#allocation2 + $0xe30] sm:$0xf0]  ;;  %v6145_v50 = vor.u32 %v7042_v41, %v6142_v19  ;;  %v6641_v59 = vld [vmem:[#allocation2 + $0x94] sm:$0xf0] }
 0x10c   :  { %3795 = vmatpush.bf16.msrb.mxu2 %v6193_v53  ;;  %v7130_v47 = vld [vmem:[#allocation2 + $0xfe4] sm:$0xf]  ;;  %v6494_v22 = vld [vmem:[#allocation2 + $0xff0] sm:$0xf0]  ;;  %v6273_v55 = vor.u32 %v7074_v45, %v6270_v46 }
 0x10d   :  { %3808 = vmatpush.bf16.msrb.mxu3 %v6321_v56  ;;  %v7006_v52 = vld [vmem:[#allocation2 + $0xc04] sm:$0xf]  ;;  %v5998_v53 = vld [vmem:[#allocation2 + $0xc10] sm:$0xf0]  ;;  %v6497_v51 = vor.u32 %v7130_v47, %v6494_v22  ;;  %v4548_v47 = vld [vmem:[#allocation2 + $0xa8] sm:$0xf] }
 0x10e   :  { %3771 = vmatpush.bf16.msrb.mxu0 %v5905_v0  ;;  %v7038_v54 = vld [vmem:[#allocation2 + $0xd04] sm:$0xf]  ;;  %v6126_v56 = vld [vmem:[#allocation2 + $0xd10] sm:$0xf0]  ;;  %v3556_v0 = vpop.f32.mrf.mxu3  ;;  %v6001_v4 = vor.u32 %v7006_v52, %v5998_v53  ;;  %v6645_v22 = vld [vmem:[#allocation2 + $0xb4] sm:$0xf0] }
 0x10f   :  { %3783 = vmatpush.bf16.msrb.mxu1 %v6049_v2  ;;  %v7070_v57 = vld [vmem:[#allocation2 + $0xe04] sm:$0xf]  ;;  %v6254_v58 = vld [vmem:[#allocation2 + $0xe10] sm:$0xf0]  ;;  %v6129_v5 = vor.u32 %v7038_v54, %v6126_v56  ;;  %v4549_v53 = vor.u32 %v6645_v22, %v4548_v47 }
 0x110   :  { %3796 = vmatpush.bf16.msrb.mxu2 %v6177_v1  ;;  %v7126_v60 = vld [vmem:[#allocation2 + $0xfc4] sm:$0xf]  ;;  %v6478_v61 = vld [vmem:[#allocation2 + $0xfd0] sm:$0xf0]  ;;  %v4580_v1 = vld [vmem:[#allocation2 + $0xe8] sm:$0xf]  ;;  %v6257_v8 = vor.u32 %v7070_v57, %v6254_v58 }
 0x111   :  { %3809 = vmatpush.bf16.msrb.mxu3 %v6305_v6  ;;  %v7158_v62 = vld [vmem:[#allocation2 + $0x10c4] sm:$0xf]  ;;  %v6606_v2 = vld [vmem:[#allocation2 + $0x10d0] sm:$0xf0]  ;;  %v4708_v6 = vld [vmem:[#allocation2 + $0x1e8] sm:$0xf]  ;;  %v6481_v9 = vor.u32 %v7126_v60, %v6478_v61  ;;  %v4581_v11 = vor.u32 %v6653_v3, %v4580_v1 }
 0x112   :  { %3772 = vmatpush.bf16.msrb.mxu0 %v5889_v20  ;;  %v6609_v10 = vor.u32 %v7158_v62, %v6606_v2  ;;  %v7122_v12 = vld [vmem:[#allocation2 + $0xfa4] sm:$0xf]  ;;  %v6462_v13 = vld [vmem:[#allocation2 + $0xfb0] sm:$0xf0]  ;;  %v4709_v15 = vor.u32 %v6685_v7, %v4708_v6  ;;  %v4532_v58 = vld [vmem:[#allocation2 + $0x88] sm:$0xf] }
 0x113   :  { %3784 = vmatpush.bf16.msrb.mxu1 %v6033_v30  ;;  %v7154_v14 = vld [vmem:[#allocation2 + $0x10a4] sm:$0xf]  ;;  %v6590_v20 = vld [vmem:[#allocation2 + $0x10b0] sm:$0xf0]  ;;  %v4692_v30 = vld [vmem:[#allocation2 + $0x1c8] sm:$0xf]  ;;  %v6465_v33 = vor.u32 %v7122_v12, %v6462_v13 }
 0x114   :  { %3797 = vmatpush.bf16.msrb.mxu2 %v6161_v32  ;;  %v6681_v32 = vld [vmem:[#allocation2 + $0x1d4] sm:$0xf0]  ;;  %v6593_v37 = vor.u32 %v7154_v14, %v6590_v20  ;;  %v6446_v41 = vld [vmem:[#allocation2 + $0xf90] sm:$0xf0]  ;;  %v7150_v19 = vld [vmem:[#allocation2 + $0x1084] sm:$0xf] }
 0x115   :  { %3810 = vmatpush.bf16.msrb.mxu3 %v6289_v18  ;;  %v7118_v18 = vld [vmem:[#allocation2 + $0xf84] sm:$0xf]  ;;  %v4693_v45 = vor.u32 %v6681_v32, %v4692_v30  ;;  %v6574_v46 = vld [vmem:[#allocation2 + $0x1090] sm:$0xf0]  ;;  %v4660_v61 = vld [vmem:[#allocation2 + $0x188] sm:$0xf] }
 0x116   :  { %3773 = vmatpush.bf16.msrb.mxu0 %v5873_v48  ;;  %v4676_v48 = vld [vmem:[#allocation2 + $0x1a8] sm:$0xf]  ;;  %v6577_v52 = vor.u32 %v7150_v19, %v6574_v46  ;;  %v7114_v54 = vld [vmem:[#allocation2 + $0xf64] sm:$0xf]  ;;  %v6558_v57 = vld [vmem:[#allocation2 + $0x1070] sm:$0xf0] }
 0x117   :  { %3785 = vmatpush.bf16.msrb.mxu1 %v6017_v49  ;;  %v6677_v49 = vld [vmem:[#allocation2 + $0x1b4] sm:$0xf0]  ;;  %v6414_v6 = vld [vmem:[#allocation2 + $0xf50] sm:$0xf0]  ;;  %v7142_v7 = vld [vmem:[#allocation2 + $0x1044] sm:$0xf] }
 0x118   :  { %3798 = vmatpush.bf16.msrb.mxu2 %v6145_v50  ;;  %v6449_v50 = vor.u32 %v7118_v18, %v6446_v41  ;;  %v4677_v56 = vor.u32 %v6677_v49, %v4676_v48  ;;  %v6673_v62 = vld [vmem:[#allocation2 + $0x194] sm:$0xf0]  ;;  %v4644_v13 = vld [vmem:[#allocation2 + $0x168] sm:$0xf]  ;;  %v7106_v21 = vld [vmem:[#allocation2 + $0xf24] sm:$0xf] }
 0x119   :  { %3811 = vmatpush.bf16.msrb.mxu3 %v6273_v55  ;;  %3774 = vmatmul.bf16.vlgmr.msrb.gmra.mxu0 %v7415_v16  ;;  %v6430_v55 = vld [vmem:[#allocation2 + $0xf70] sm:$0xf0]  ;;  %v6637_v12 = vld [vmem:[#allocation2 + $0x74] sm:$0xf0]  ;;  %v7138_v30 = vld [vmem:[#allocation2 + $0x1024] sm:$0xf] }
 0x11a   :  { %3818 = vmatpush.bf16.msra.mxu0 %v6497_v51  ;;  %v7146_v51 = vld [vmem:[#allocation2 + $0x1064] sm:$0xf]  ;;  %v6433_v2 = vor.u32 %v7114_v54, %v6430_v55  ;;  %v6669_v14 = vld [vmem:[#allocation2 + $0x174] sm:$0xf0]  ;;  %v6398_v23 = vld [vmem:[#allocation2 + $0xf30] sm:$0xf0] }
 0x11b   :  { %3786 = vmatpush.bf16.msrb.mxu1 %v6001_v4  ;;  %v6561_v3 = vor.u32 %v7146_v51, %v6558_v57  ;;  %v4533_v4 = vor.u32 %v6641_v59, %v4532_v58  ;;  %v4645_v32 = vor.u32 %v6669_v14, %v4644_v13  ;;  %v6633_v18 = vld [vmem:[#allocation2 + $0x54] sm:$0xf0]  ;;  %v6401_v22 = vor.u32 %v7106_v21, %v6398_v23  ;;  %v7102_v48 = vld [vmem:[#allocation2 + $0xf04] sm:$0xf]  ;;  %v6382_v54 = vld [vmem:[#allocation2 + $0xf10] sm:$0xf0] }
 0x11c   :  { %3799 = vmatpush.bf16.msrb.mxu2 %v6129_v5  ;;  %v3567_v60 = vpop.f32.mrf.mxu0  ;;  %v7110_v5 = vld [vmem:[#allocation2 + $0xf44] sm:$0xf]  ;;  %v6665_v46 = vld [vmem:[#allocation2 + $0x154] sm:$0xf0]  ;;  %v6510_v51 = vld [vmem:[#allocation2 + $0x1010] sm:$0xf0] }
 0x11d   :  { %3812 = vmatpush.bf16.msrb.mxu3 %v6257_v8  ;;  %v3568_v0 = vadd.f32 %v3567_v60, %v7451_v27  ;;  %v3580_v1 = vpop.f32.mrf.mxu1  ;;  %v4661_v8 = vor.u32 %v6673_v62, %v4660_v61  ;;  %v7134_v55 = vld [vmem:[#allocation2 + $0x1004] sm:$0xf]  ;;  %v4484_v57 = vld [vmem:[#allocation2 + $0x28] sm:$0xf]  ;;  %v6629_v58 = vld [vmem:[#allocation2 + $0x34] sm:$0xf0] }
 0x11e   :  { %3819 = vmatpush.bf16.msra.mxu0 %v6481_v9  ;;  %3787 = vmatmul.bf16.vlgmr.msrb.gmra.mxu1 %v7421_v17  ;;  %v4612_v59 = vld [vmem:[#allocation2 + $0x128] sm:$0xf]  ;;  %v6661_v60 = vld [vmem:[#allocation2 + $0x134] sm:$0xf0] }
 0x11f   :  { %3832 = vmatpush.bf16.msra.mxu1 %v6609_v10  ;;  %3800 = vmatmul.bf16.vlgmr.msrb.gmra.mxu2 %v7425_v26  ;;  %v3581_v9 = vadd.f32 %v3580_v1, %v3568_v0  ;;  %v6542_v10 = vld [vmem:[#allocation2 + $0x1050] sm:$0xf0]  ;;  %v4836_v61 = vld [vmem:[#allocation2 + $0x2e8] sm:$0xf]  ;;  %v6717_v62 = vld [vmem:[#allocation2 + $0x2f4] sm:$0xf0]  ;;  %v6385_v0 = vor.u32 %v7102_v48, %v6382_v54 }
 0x120   :  { %3844 = vmatpush.bf16.msra.mxu2 %v4581_v11  ;;  %3813 = vmatmul.bf16.vlgmr.msrb.gmra.mxu3 %v7423_v25  ;;  %v4516_v11 = vld [vmem:[#allocation2 + $0x68] sm:$0xf]  ;;  %v6545_v27 = vor.u32 %v7142_v7, %v6542_v10  ;;  %v6749_v1 = vld [vmem:[#allocation2 + $0x3f4] sm:$0xf0]  ;;  %v4837_v7 = vor.u32 %v6717_v62, %v4836_v61 }
 0x121   :  { %3857 = vmatpush.bf16.msra.mxu3 %v4709_v15  ;;  %v6417_v15 = vor.u32 %v7110_v5, %v6414_v6  ;;  %v4517_v20 = vor.u32 %v6637_v12, %v4516_v11  ;;  %v4468_v5 = vld [vmem:[#allocation2 + $0x8] sm:$0xf]  ;;  %v4613_v6 = vor.u32 %v6661_v60, %v4612_v59  ;;  %v6657_v10 = vld [vmem:[#allocation2 + $0x114] sm:$0xf0] }
 0x122   :  { %3820 = vmatpush.bf16.msra.mxu0 %v6465_v33  ;;  %v4820_v13 = vld [vmem:[#allocation2 + $0x2c8] sm:$0xf]  ;;  %v6713_v14 = vld [vmem:[#allocation2 + $0x2d4] sm:$0xf0] }
 0x123   :  { %3833 = vmatpush.bf16.msra.mxu1 %v6593_v37  ;;  %v6526_v37 = vld [vmem:[#allocation2 + $0x1030] sm:$0xf0]  ;;  %v5092_v21 = vld [vmem:[#allocation2 + $0x4e8] sm:$0xf]  ;;  %v6781_v23 = vld [vmem:[#allocation2 + $0x4f4] sm:$0xf0] }
 0x124   :  { %3845 = vmatpush.bf16.msra.mxu2 %v4565_v38  ;;  %v3593_v33 = vpop.f32.mrf.mxu2  ;;  %v4500_v38 = vld [vmem:[#allocation2 + $0x48] sm:$0xf]  ;;  %v3569_v47 = vpop.f32.mrf.mxu0  ;;  %v6737_v61 = vld [vmem:[#allocation2 + $0x394] sm:$0xf0] }
 0x125   :  { %3858 = vmatpush.bf16.msra.mxu3 %v4693_v45  ;;  %v3594_v41 = vadd.f32 %v3593_v33, %v3581_v9  ;;  %v3606_v19 = vpop.f32.mrf.mxu3  ;;  %v4628_v45 = vld [vmem:[#allocation2 + $0x148] sm:$0xf]  ;;  %v3582_v49 = vpop.f32.mrf.mxu1  ;;  %v6813_v33 = vld [vmem:[#allocation2 + $0x5f4] sm:$0xf0] }
 0x126   :  { %3821 = vmatpush.bf16.msra.mxu0 %v6449_v50  ;;  %v4596_v9 = vld [vmem:[#allocation2 + $0x108] sm:$0xf]  ;;  %v6777_v49 = vld [vmem:[#allocation2 + $0x4d4] sm:$0xf0] }
 0x127   :  { %3834 = vmatpush.bf16.msra.mxu1 %v6577_v52  ;;  %v7458_v50 = vadd.f32 %v3606_v19, %v3594_v41  ;;  %v6529_v52 = vor.u32 %v7138_v30, %v6526_v37  ;;  %v4597_v37 = vor.u32 %v6657_v10, %v4596_v9  ;;  %v5093_v41 = vor.u32 %v6781_v23, %v5092_v21  ;;  %v4804_v19 = vld [vmem:[#allocation2 + $0x2a8] sm:$0xf]  ;;  %v6733_v10 = vld [vmem:[#allocation2 + $0x374] sm:$0xf0] }
 0x128   :  { %3846 = vmatpush.bf16.msra.mxu2 %v4549_v53  ;;  %v4501_v53 = vor.u32 %v6633_v18, %v4500_v38  ;;  %v4821_v38 = vor.u32 %v6713_v14, %v4820_v13  ;;  %v5076_v48 = vld [vmem:[#allocation2 + $0x4c8] sm:$0xf]  ;;  %v6769_v13 = vld [vmem:[#allocation2 + $0x494] sm:$0xf0] }
 0x129   :  { %3859 = vmatpush.bf16.msra.mxu3 %v4677_v56  ;;  %v4629_v56 = vor.u32 %v6665_v46, %v4628_v45  ;;  %v6709_v45 = vld [vmem:[#allocation2 + $0x2b4] sm:$0xf0]  ;;  %v4932_v46 = vld [vmem:[#allocation2 + $0x3a8] sm:$0xf] }
 0x12a   :  { %3822 = vmatpush.bf16.msra.mxu0 %v6433_v2  ;;  %v4964_v2 = vld [vmem:[#allocation2 + $0x3e8] sm:$0xf]  ;;  %v4805_v54 = vor.u32 %v6709_v45, %v4804_v19  ;;  %v6765_v19 = vld [vmem:[#allocation2 + $0x474] sm:$0xf0] }
 0x12b   :  { %3835 = vmatpush.bf16.msra.mxu1 %v6561_v3  ;;  %v6513_v3 = vor.u32 %v7134_v55, %v6510_v51  ;;  %v4965_v12 = vor.u32 %v6749_v1, %v4964_v2  ;;  %v5077_v51 = vor.u32 %v6777_v49, %v5076_v48  ;;  %v5060_v62 = vld [vmem:[#allocation2 + $0x4a8] sm:$0xf] }
 0x12c   :  { %3847 = vmatpush.bf16.msra.mxu2 %v4533_v4  ;;  %v4485_v4 = vor.u32 %v6629_v58, %v4484_v57  ;;  %v3595_v11 = vpop.f32.mrf.mxu2  ;;  %v6705_v57 = vld [vmem:[#allocation2 + $0x294] sm:$0xf0]  ;;  %v4916_v58 = vld [vmem:[#allocation2 + $0x388] sm:$0xf] }
 0x12d   :  { %3860 = vmatpush.bf16.msra.mxu3 %v4661_v8  ;;  %v6625_v8 = vld [vmem:[#allocation2 + $0x14] sm:$0xf0]  ;;  %v5188_v1 = vld [vmem:[#allocation2 + $0x5a8] sm:$0xf] }
 0x12e   :  { %3823 = vmatpush.bf16.msra.mxu0 %v6417_v15  ;;  %v4948_v15 = vld [vmem:[#allocation2 + $0x3c8] sm:$0xf]  ;;  %v4469_v30 = vor.u32 %v6625_v8, %v4468_v5  ;;  %v6701_v8 = vld [vmem:[#allocation2 + $0x274] sm:$0xf0] }
 0x12f   :  { %3836 = vmatpush.bf16.msra.mxu1 %v6545_v27  ;;  %v3608_v27 = vpop.f32.mrf.mxu3  ;;  %v4772_v5 = vld [vmem:[#allocation2 + $0x268] sm:$0xf] }
 0x130   :  { %3848 = vmatpush.bf16.msra.mxu2 %v4517_v20  ;;  %v6745_v20 = vld [vmem:[#allocation2 + $0x3d4] sm:$0xf0]  ;;  %v4900_v9 = vld [vmem:[#allocation2 + $0x368] sm:$0xf] }
 0x131   :  { %3861 = vmatpush.bf16.msra.mxu3 %v4645_v32  ;;  %v5220_v32 = vld [vmem:[#allocation2 + $0x5e8] sm:$0xf]  ;;  %v4949_v18 = vor.u32 %v6745_v20, %v4948_v15  ;;  %v6801_v27 = vld [vmem:[#allocation2 + $0x594] sm:$0xf0]  ;;  %v4773_v20 = vor.u32 %v6701_v8, %v4772_v5  ;;  %v4901_v23 = vor.u32 %v6733_v10, %v4900_v9 }
 0x132   :  { %3824 = vmatpush.bf16.msra.mxu0 %v6401_v22  ;;  %v5221_v47 = vor.u32 %v6813_v33, %v5220_v32  ;;  %v6741_v22 = vld [vmem:[#allocation2 + $0x3b4] sm:$0xf0]  ;;  %v5172_v15 = vld [vmem:[#allocation2 + $0x588] sm:$0xf] }
 0x133   :  { %3837 = vmatpush.bf16.msra.mxu1 %v6529_v52  ;;  %v5204_v52 = vld [vmem:[#allocation2 + $0x5c8] sm:$0xf]  ;;  %v4933_v55 = vor.u32 %v6741_v22, %v4932_v46  ;;  %v6697_v33 = vld [vmem:[#allocation2 + $0x254] sm:$0xf0] }
 0x134   :  { %3849 = vmatpush.bf16.msra.mxu2 %v4501_v53  ;;  %v6809_v53 = vld [vmem:[#allocation2 + $0x5d4] sm:$0xf0]  ;;  %v4756_v32 = vld [vmem:[#allocation2 + $0x248] sm:$0xf] }
 0x135   :  { %3862 = vmatpush.bf16.msra.mxu3 %v4629_v56  ;;  %v4788_v56 = vld [vmem:[#allocation2 + $0x288] sm:$0xf]  ;;  %v5205_v59 = vor.u32 %v6809_v53, %v5204_v52  ;;  %v6797_v22 = vld [vmem:[#allocation2 + $0x574] sm:$0xf0]  ;;  %v4757_v48 = vor.u32 %v6697_v33, %v4756_v32 }
 0x136   :  { %3825 = vmatpush.bf16.msra.mxu0 %v6385_v0  ;;  %v3619_v60 = vpop.f32.mrf.mxu0  ;;  %v6773_v0 = vld [vmem:[#allocation2 + $0x4b4] sm:$0xf0]  ;;  %v4740_v53 = vld [vmem:[#allocation2 + $0x228] sm:$0xf] }
 0x137   :  { %3838 = vmatpush.bf16.msra.mxu1 %v6513_v3  ;;  %v7465_v2 = vadd.f32 %v3619_v60, %v7458_v50  ;;  %v6805_v3 = vld [vmem:[#allocation2 + $0x5b4] sm:$0xf0]  ;;  %v7172_v50 = vld [vmem:[#allocation5] sm:$0xf]  ;;  %v4852_v9 = vld [vmem:[#allocation2 + $0x308] sm:$0xf] }
 0x138   :  { %3850 = vmatpush.bf16.msra.mxu2 %v4485_v4  ;;  %v4789_v4 = vor.u32 %v6705_v57, %v4788_v56  ;;  %v5189_v11 = vor.u32 %v6805_v3, %v5188_v1  ;;  %v691_v14 = vperm.slane %v7172_v50, 1  ;;  %v6725_v57 = vld [vmem:[#allocation2 + $0x334] sm:$0xf0]  ;;  %v4724_v3 = vld [vmem:[#allocation2 + $0x208] sm:$0xf] }
 0x139   :  { %3863 = vmatpush.bf16.msra.mxu3 %v4613_v6  ;;  %3826 = vmatmul.bf16.vlgmr.msra.gmra.mxu0 %v7427_v31  ;;  %v4917_v6 = vor.u32 %v6737_v61, %v4916_v58  ;;  %v5012_v58 = vld [vmem:[#allocation2 + $0x448] sm:$0xf]  ;;  %v6689_v8 = vld [vmem:[#allocation2 + $0x214] sm:$0xf0] }
 0x13a   :  { %3870 = vmatpush.bf16.msrb.mxu0 %v4837_v7  ;;  %6619 = vmatmul.msk.bf16.vlgmr.msra.gmra.mxu1 %vm3398_vm0, %v7433_v63  ;;  %v5061_v7 = vor.u32 %v6773_v0, %v5060_v62  ;;  %v5140_v62 = vld [vmem:[#allocation2 + $0x548] sm:$0xf]  ;;  %v6793_v0 = vld [vmem:[#allocation2 + $0x554] sm:$0xf0] }
 0x13b   :  { %3883 = vmatpush.bf16.msrb.mxu1 %v4965_v12  ;;  %v5044_v12 = vld [vmem:[#allocation2 + $0x488] sm:$0xf]  ;;  %v3632_v21 = vpop.f32.mrf.mxu1  ;;  %v6721_v10 = vld [vmem:[#allocation2 + $0x314] sm:$0xf0] }
 0x13c   :  { %3851 = vmatpush.bf16.msra.mxu2 %v4469_v30  ;;  %v5045_v30 = vor.u32 %v6769_v13, %v5044_v12  ;;  %v3633_v45 = vadd.f32 %v3632_v21, %v691_v14  ;;  %v4996_v12 = vld [vmem:[#allocation2 + $0x428] sm:$0xf]  ;;  %v6757_v13 = vld [vmem:[#allocation2 + $0x434] sm:$0xf0] }
 0x13d   :  { %3864 = vmatpush.bf16.msra.mxu3 %v4597_v37  ;;  %v4884_v37 = vld [vmem:[#allocation2 + $0x348] sm:$0xf]  ;;  %v6789_v14 = vld [vmem:[#allocation2 + $0x534] sm:$0xf0]  ;;  %v4997_v32 = vor.u32 %v6757_v13, %v4996_v12 }
 0x13e   :  { %3871 = vmatpush.bf16.msrb.mxu0 %v4821_v38  ;;  %v5173_v38 = vor.u32 %v6801_v27, %v5172_v15  ;;  %v3621_v46 = vpop.f32.mrf.mxu0  ;;  %v5124_v50 = vld [vmem:[#allocation2 + $0x528] sm:$0xf]  ;;  %v6845_v27 = vld [vmem:[#allocation2 + $0x6f4] sm:$0xf0] }
 0x13f   :  { %3884 = vmatpush.bf16.msrb.mxu1 %v4949_v18  ;;  %3852 = vmatmul.bf16.vlgmr.msra.gmra.mxu2 %v7362_v36  ;;  %v6729_v18 = vld [vmem:[#allocation2 + $0x354] sm:$0xf0]  ;;  %v5348_v15 = vld [vmem:[#allocation2 + $0x6e8] sm:$0xf] }
 0x140   :  { %3896 = vmatpush.bf16.msrb.mxu2 %v5093_v41  ;;  %3865 = vmatmul.bf16.vlgmr.msra.gmra.mxu3 %v7366_v43  ;;  %v5028_v41 = vld [vmem:[#allocation2 + $0x468] sm:$0xf]  ;;  %v4885_v49 = vor.u32 %v6729_v18, %v4884_v37  ;;  %v5349_v18 = vor.u32 %v6845_v27, %v5348_v15  ;;  %v6833_v13 = vld [vmem:[#allocation2 + $0x694] sm:$0xf0] }
 0x141   :  { %3909 = vmatpush.bf16.msrb.mxu3 %v5221_v47  ;;  %v5156_v47 = vld [vmem:[#allocation2 + $0x568] sm:$0xf]  ;;  %v5029_v52 = vor.u32 %v6765_v19, %v5028_v41  ;;  %v6753_v41 = vld [vmem:[#allocation2 + $0x414] sm:$0xf0] }
 0x142   :  { %3872 = vmatpush.bf16.msrb.mxu0 %v4805_v54  ;;  %v6693_v54 = vld [vmem:[#allocation2 + $0x234] sm:$0xf0]  ;;  %v5157_v56 = vor.u32 %v6797_v22, %v5156_v47  ;;  %v5476_v21 = vld [vmem:[#allocation2 + $0x7e8] sm:$0xf] }
 0x143   :  { %3885 = vmatpush.bf16.msrb.mxu1 %v4933_v55  ;;  %v4868_v55 = vld [vmem:[#allocation2 + $0x328] sm:$0xf]  ;;  %v3658_v61 = vpop.f32.mrf.mxu3  ;;  %v4741_v1 = vor.u32 %v6693_v54, %v4740_v53  ;;  %v3634_v5 = vpop.f32.mrf.mxu1  ;;  %v6909_v54 = vld [vmem:[#allocation2 + $0x8f4] sm:$0xf0] }
 0x144   :  { %3897 = vmatpush.bf16.msrb.mxu2 %v5077_v51  ;;  %v3645_v51 = vpop.f32.mrf.mxu2  ;;  %v4980_v33 = vld [vmem:[#allocation2 + $0x408] sm:$0xf]  ;;  %v6865_v15 = vld [vmem:[#allocation2 + $0x794] sm:$0xf0] }
 0x145   :  { %3910 = vmatpush.bf16.msrb.mxu3 %v5205_v59  ;;  %v6761_v59 = vld [vmem:[#allocation2 + $0x454] sm:$0xf0]  ;;  %v3646_v60 = vadd.f32 %v3645_v51, %v3633_v45  ;;  %v5108_v19 = vld [vmem:[#allocation2 + $0x508] sm:$0xf] }
 0x146   :  { %3873 = vmatpush.bf16.msrb.mxu0 %v4789_v4  ;;  %v6785_v45 = vld [vmem:[#allocation2 + $0x514] sm:$0xf0]  ;;  %v5332_v22 = vld [vmem:[#allocation2 + $0x6c8] sm:$0xf] }
 0x147   :  { %3886 = vmatpush.bf16.msrb.mxu1 %v4917_v6  ;;  %v7468_v4 = vadd.f32 %v3658_v61, %v3646_v60  ;;  %v4869_v6 = vor.u32 %v6725_v57, %v4868_v55  ;;  %v5604_v53 = vld [vmem:[#allocation2 + $0x8e8] sm:$0xf]  ;;  %v4981_v55 = vor.u32 %v6753_v41, %v4980_v33  ;;  %v5109_v57 = vor.u32 %v6785_v45, %v5108_v19  ;;  %v6861_v45 = vld [vmem:[#allocation2 + $0x774] sm:$0xf0] }
 0x148   :  { %3898 = vmatpush.bf16.msrb.mxu2 %v5061_v7  ;;  %v5013_v7 = vor.u32 %v6761_v59, %v5012_v58  ;;  %v5732_v51 = vld [vmem:[#allocation2 + $0x9e8] sm:$0xf]  ;;  %v5605_v60 = vor.u32 %v6909_v54, %v5604_v53 }
 0x149   :  { %3911 = vmatpush.bf16.msrb.mxu3 %v5189_v11  ;;  %v5141_v11 = vor.u32 %v6793_v0, %v5140_v62  ;;  %v5316_v61 = vld [vmem:[#allocation2 + $0x6a8] sm:$0xf]  ;;  %v6837_v62 = vld [vmem:[#allocation2 + $0x6b4] sm:$0xf0] }
 0x14a   :  { %3874 = vmatpush.bf16.msrb.mxu0 %v4773_v20  ;;  %v4725_v20 = vor.u32 %v6689_v8, %v4724_v3  ;;  %v5444_v0 = vld [vmem:[#allocation2 + $0x7a8] sm:$0xf]  ;;  %v6869_v3 = vld [vmem:[#allocation2 + $0x7b4] sm:$0xf0] }
 0x14b   :  { %3887 = vmatpush.bf16.msrb.mxu1 %v4901_v23  ;;  %v6877_v23 = vld [vmem:[#allocation2 + $0x7f4] sm:$0xf0]  ;;  %v3660_v46 = vpop.f32.mrf.mxu3  ;;  %v5588_v5 = vld [vmem:[#allocation2 + $0x8c8] sm:$0xf] }
 0x14c   :  { %3899 = vmatpush.bf16.msrb.mxu2 %v5045_v30  ;;  %v4853_v30 = vor.u32 %v6721_v10, %v4852_v9  ;;  %v3647_v37 = vpop.f32.mrf.mxu2  ;;  %v5477_v47 = vor.u32 %v6877_v23, %v5476_v21  ;;  %v6937_v8 = vld [vmem:[#allocation2 + $0x9d4] sm:$0xf0]  ;;  %v5317_v9 = vor.u32 %v6837_v62, %v5316_v61  ;;  %v5445_v10 = vor.u32 %v6869_v3, %v5444_v0  ;;  %v5300_v12 = vld [vmem:[#allocation2 + $0x688] sm:$0xf] }
 0x14d   :  { %3912 = vmatpush.bf16.msrb.mxu3 %v5173_v38  ;;  %v5125_v38 = vor.u32 %v6789_v14, %v5124_v50  ;;  %v5428_v50 = vld [vmem:[#allocation2 + $0x788] sm:$0xf]  ;;  %v6925_v0 = vld [vmem:[#allocation2 + $0x974] sm:$0xf0] }
 0x14e   :  { %3875 = vmatpush.bf16.msrb.mxu0 %v4757_v48  ;;  %v6841_v48 = vld [vmem:[#allocation2 + $0x6d4] sm:$0xf0]  ;;  %v5572_v27 = vld [vmem:[#allocation2 + $0x8a8] sm:$0xf]  ;;  %v5429_v33 = vor.u32 %v6865_v15, %v5428_v50 }
 0x14f   :  { %3888 = vmatpush.bf16.msrb.mxu1 %v4885_v49  ;;  %v5460_v49 = vld [vmem:[#allocation2 + $0x7c8] sm:$0xf]  ;;  %v5333_v58 = vor.u32 %v6841_v48, %v5332_v22  ;;  %v6929_v48 = vld [vmem:[#allocation2 + $0x994] sm:$0xf0] }
 0x150   :  { %3900 = vmatpush.bf16.msrb.mxu2 %v5029_v52  ;;  %v6873_v52 = vld [vmem:[#allocation2 + $0x7d4] sm:$0xf0]  ;;  %v5700_v23 = vld [vmem:[#allocation2 + $0x9a8] sm:$0xf] }
 0x151   :  { %3913 = vmatpush.bf16.msrb.mxu3 %v5157_v56  ;;  %v6941_v56 = vld [vmem:[#allocation2 + $0x9f4] sm:$0xf0]  ;;  %v5461_v59 = vor.u32 %v6873_v52, %v5460_v49  ;;  %v5412_v41 = vld [vmem:[#allocation2 + $0x768] sm:$0xf] }
 0x152   :  { %3876 = vmatpush.bf16.msrb.mxu0 %v4741_v1  ;;  %v5733_v1 = vor.u32 %v6941_v56, %v5732_v51  ;;  %v5556_v46 = vld [vmem:[#allocation2 + $0x888] sm:$0xf]  ;;  %v5413_v53 = vor.u32 %v6861_v45, %v5412_v41  ;;  %v6825_v51 = vld [vmem:[#allocation2 + $0x654] sm:$0xf0] }
 0x153   :  { %3889 = vmatpush.bf16.msrb.mxu1 %v4869_v6  ;;  %v6905_v6 = vld [vmem:[#allocation2 + $0x8d4] sm:$0xf0]  ;;  %v5684_v22 = vld [vmem:[#allocation2 + $0x988] sm:$0xf] }
 0x154   :  { %3901 = vmatpush.bf16.msrb.mxu2 %v5013_v7  ;;  %v5716_v7 = vld [vmem:[#allocation2 + $0x9c8] sm:$0xf]  ;;  %v6921_v15 = vld [vmem:[#allocation2 + $0x954] sm:$0xf0] }
 0x155   :  { %3914 = vmatpush.bf16.msrb.mxu3 %v5141_v11  ;;  %v5589_v11 = vor.u32 %v6905_v6, %v5588_v5  ;;  %v5717_v14 = vor.u32 %v6937_v8, %v5716_v7  ;;  %v5396_v56 = vld [vmem:[#allocation2 + $0x748] sm:$0xf]  ;;  %v6821_v7 = vld [vmem:[#allocation2 + $0x634] sm:$0xf0] }
 0x156   :  { %3877 = vmatpush.bf16.msrb.mxu0 %v4725_v20  ;;  %v6901_v20 = vld [vmem:[#allocation2 + $0x8b4] sm:$0xf0]  ;;  %v7473_v21 = vpop.f32.mrf.mxu0  ;;  %v5668_v62 = vld [vmem:[#allocation2 + $0x968] sm:$0xf] }
 0x157   :  { %3890 = vmatpush.bf16.msrb.mxu1 %v4853_v30  ;;  %v6933_v30 = vld [vmem:[#allocation2 + $0x9b4] sm:$0xf0]  ;;  %v5573_v37 = vor.u32 %v6901_v20, %v5572_v27  ;;  %v5252_v6 = vld [vmem:[#allocation2 + $0x628] sm:$0xf] }
 0x158   :  { %3902 = vmatpush.bf16.msrb.mxu2 %v4997_v32  ;;  %v5301_v32 = vor.u32 %v6833_v13, %v5300_v12  ;;  %v5701_v19 = vor.u32 %v6933_v30, %v5700_v23  ;;  %v5380_v8 = vld [vmem:[#allocation2 + $0x728] sm:$0xf]  ;;  %v6889_v13 = vld [vmem:[#allocation2 + $0x854] sm:$0xf0]  ;;  %v5253_v27 = vor.u32 %v6821_v7, %v5252_v6 }
 0x159   :  { %3915 = vmatpush.bf16.msrb.mxu3 %v5125_v38  ;;  %3878 = vmatmul.bf16.vlgmr.msrb.gmra.mxu0 %v7360_v35  ;;  %v5284_v38 = vld [vmem:[#allocation2 + $0x668] sm:$0xf]  ;;  %v7001_v6 = vld [vmem:[#allocation2 + $0xbd4] sm:$0xf0] }
 0x15a   :  { %3922 = vmatpush.bf16.msra.mxu0 %v5349_v18  ;;  %3891 = vmatmul.bf16.vlgmr.msrb.gmra.mxu1 %v7364_v42  ;;  %v6829_v18 = vld [vmem:[#allocation2 + $0x674] sm:$0xf0]  ;;  %v5524_v12 = vld [vmem:[#allocation2 + $0x848] sm:$0xf] }
 0x15b   :  { %3935 = vmatpush.bf16.msra.mxu1 %v5477_v47  ;;  %v6897_v47 = vld [vmem:[#allocation2 + $0x894] sm:$0xf0]  ;;  %v5285_v49 = vor.u32 %v6829_v18, %v5284_v38  ;;  %v7476_v52 = vpop.f32.mrf.mxu1  ;;  %v5236_v20 = vld [vmem:[#allocation2 + $0x608] sm:$0xf] }
 0x15c   :  { %3903 = vmatpush.bf16.msrb.mxu2 %v4981_v55  ;;  %v5557_v54 = vor.u32 %v6897_v47, %v5556_v46  ;;  %v5268_v55 = vld [vmem:[#allocation2 + $0x648] sm:$0xf]  ;;  %v6849_v38 = vld [vmem:[#allocation2 + $0x714] sm:$0xf0]  ;;  %v3672_v46 = vadd.f32 %v7473_v21, %v7468_v4 }
 0x15d   :  { %3916 = vmatpush.bf16.msrb.mxu3 %v5109_v57  ;;  %v5685_v57 = vor.u32 %v6929_v48, %v5684_v22  ;;  %v5508_v41 = vld [vmem:[#allocation2 + $0x828] sm:$0xf]  ;;  %v6917_v47 = vld [vmem:[#allocation2 + $0x934] sm:$0xf0] }
 0x15e   :  { %3923 = vmatpush.bf16.msra.mxu0 %v5333_v58  ;;  %v6857_v58 = vld [vmem:[#allocation2 + $0x754] sm:$0xf0]  ;;  %v3673_v61 = vpop.f32.mrf.mxu0  ;;  %v5636_v45 = vld [vmem:[#allocation2 + $0x928] sm:$0xf]  ;;  %v3685_v21 = vadd.f32 %v7476_v52, %v3672_v46 }
 0x15f   :  { %3936 = vmatpush.bf16.msra.mxu1 %v5461_v59  ;;  %3904 = vmatmul.bf16.vlgmr.msrb.gmra.mxu2 %v7380_v39  ;;  %v5540_v59 = vld [vmem:[#allocation2 + $0x868] sm:$0xf]  ;;  %v5397_v3 = vor.u32 %v6857_v58, %v5396_v56  ;;  %v6973_v48 = vld [vmem:[#allocation2 + $0xaf4] sm:$0xf0]  ;;  %v5637_v58 = vor.u32 %v6917_v47, %v5636_v45 }
 0x160   :  { %3948 = vmatpush.bf16.msra.mxu2 %v5605_v60  ;;  %3917 = vmatmul.bf16.vlgmr.msrb.gmra.mxu3 %v7384_v44  ;;  %v6893_v60 = vld [vmem:[#allocation2 + $0x874] sm:$0xf0]  ;;  %v5860_v22 = vld [vmem:[#allocation2 + $0xae8] sm:$0xf] }
 0x161   :  { %3961 = vmatpush.bf16.msra.mxu3 %v5733_v1  ;;  %v5269_v1 = vor.u32 %v6825_v51, %v5268_v55  ;;  %v5541_v5 = vor.u32 %v6893_v60, %v5540_v59  ;;  %v5492_v56 = vld [vmem:[#allocation2 + $0x808] sm:$0xf]  ;;  %v5861_v59 = vor.u32 %v6973_v48, %v5860_v22  ;;  %v6881_v60 = vld [vmem:[#allocation2 + $0x814] sm:$0xf0] }
 0x162   :  { %3924 = vmatpush.bf16.msra.mxu0 %v5317_v9  ;;  %v7478_v9 = vpop.f32.mrf.mxu2  ;;  %v5620_v61 = vld [vmem:[#allocation2 + $0x908] sm:$0xf]  ;;  %v6961_v22 = vld [vmem:[#allocation2 + $0xa94] sm:$0xf0] }
 0x163   :  { %3937 = vmatpush.bf16.msra.mxu1 %v5445_v10  ;;  %v5669_v10 = vor.u32 %v6925_v0, %v5668_v62  ;;  %v7480_v50 = vpop.f32.mrf.mxu3  ;;  %v3686_v23 = vpop.f32.mrf.mxu1  ;;  %v6913_v62 = vld [vmem:[#allocation2 + $0x914] sm:$0xf0]  ;;  %v6116_v7 = vld [vmem:[#allocation2 + $0xce8] sm:$0xf] }
 0x164   :  { %3949 = vmatpush.bf16.msra.mxu2 %v5589_v11  ;;  %v6853_v11 = vld [vmem:[#allocation2 + $0x734] sm:$0xf0]  ;;  %v5812_v47 = vld [vmem:[#allocation2 + $0xa88] sm:$0xf] }
 0x165   :  { %3962 = vmatpush.bf16.msra.mxu3 %v5717_v14  ;;  %v5652_v14 = vld [vmem:[#allocation2 + $0x948] sm:$0xf]  ;;  %v5381_v30 = vor.u32 %v6853_v11, %v5380_v8  ;;  %v7037_v8 = vld [vmem:[#allocation2 + $0xcf4] sm:$0xf0] }
 0x166   :  { %3925 = vmatpush.bf16.msra.mxu0 %v5301_v32  ;;  %v5525_v32 = vor.u32 %v6889_v13, %v5524_v12  ;;  %v5653_v18 = vor.u32 %v6921_v15, %v5652_v14  ;;  %v6244_v11 = vld [vmem:[#allocation2 + $0xde8] sm:$0xf]  ;;  %v7069_v12 = vld [vmem:[#allocation2 + $0xdf4] sm:$0xf0]  ;;  %v5621_v13 = vor.u32 %v6913_v62, %v5620_v61  ;;  %v3698_v15 = vadd.f32 %v7478_v9, %v3685_v21 }
 0x167   :  { %3938 = vmatpush.bf16.msra.mxu1 %v5429_v33  ;;  %v6817_v33 = vld [vmem:[#allocation2 + $0x614] sm:$0xf0]  ;;  %v5940_v48 = vld [vmem:[#allocation2 + $0xb88] sm:$0xf] }
 0x168   :  { %3950 = vmatpush.bf16.msra.mxu2 %v5573_v37  ;;  %v5364_v37 = vld [vmem:[#allocation2 + $0x708] sm:$0xf]  ;;  %v6965_v23 = vld [vmem:[#allocation2 + $0xab4] sm:$0xf0] }
 0x169   :  { %3963 = vmatpush.bf16.msra.mxu3 %v5701_v19  ;;  %v6885_v19 = vld [vmem:[#allocation2 + $0x834] sm:$0xf0]  ;;  %v5365_v55 = vor.u32 %v6849_v38, %v5364_v37  ;;  %v6100_v37 = vld [vmem:[#allocation2 + $0xcc8] sm:$0xf] }
 0x16a   :  { %3926 = vmatpush.bf16.msra.mxu0 %v5285_v49  ;;  %v5237_v49 = vor.u32 %v6817_v33, %v5236_v20  ;;  %v5509_v51 = vor.u32 %v6885_v19, %v5508_v41  ;;  %v5828_v20 = vld [vmem:[#allocation2 + $0xaa8] sm:$0xf]  ;;  %v6997_v33 = vld [vmem:[#allocation2 + $0xbb4] sm:$0xf0]  ;;  %v3711_v19 = vadd.f32 %v7480_v50, %v3698_v15 }
 0x16b   :  { %3939 = vmatpush.bf16.msra.mxu1 %v5413_v53  ;;  %v5988_v53 = vld [vmem:[#allocation2 + $0xbe8] sm:$0xf]  ;;  %v3712_v4 = vpop.f32.mrf.mxu3  ;;  %v7033_v38 = vld [vmem:[#allocation2 + $0xcd4] sm:$0xf0]  ;;  %v5829_v9 = vor.u32 %v6965_v23, %v5828_v20 }
 0x16c   :  { %3951 = vmatpush.bf16.msra.mxu2 %v5557_v54  ;;  %v7005_v54 = vld [vmem:[#allocation2 + $0xbf4] sm:$0xf0]  ;;  %v6101_v46 = vor.u32 %v7033_v38, %v6100_v37  ;;  %v5796_v61 = vld [vmem:[#allocation2 + $0xa68] sm:$0xf] }
 0x16d   :  { %3964 = vmatpush.bf16.msra.mxu3 %v5685_v57  ;;  %v3699_v57 = vpop.f32.mrf.mxu2  ;;  %v5989_v0 = vor.u32 %v7005_v54, %v5988_v53  ;;  %v7065_v41 = vld [vmem:[#allocation2 + $0xdd4] sm:$0xf0]  ;;  %v5924_v4 = vld [vmem:[#allocation2 + $0xb68] sm:$0xf] }
 0x16e   :  { %3927 = vmatpush.bf16.msra.mxu0 %v5269_v1  ;;  %v5844_v1 = vld [vmem:[#allocation2 + $0xac8] sm:$0xf]  ;;  %v6993_v54 = vld [vmem:[#allocation2 + $0xb94] sm:$0xf0] }
 0x16f   :  { %3940 = vmatpush.bf16.msra.mxu1 %v5397_v3  ;;  %v6969_v3 = vld [vmem:[#allocation2 + $0xad4] sm:$0xf0]  ;;  %v6212_v57 = vld [vmem:[#allocation2 + $0xda8] sm:$0xf] }
 0x170   :  { %3952 = vmatpush.bf16.msra.mxu2 %v5541_v5  ;;  %v5972_v5 = vld [vmem:[#allocation2 + $0xbc8] sm:$0xf]  ;;  %v5845_v14 = vor.u32 %v6969_v3, %v5844_v1  ;;  %v7061_v50 = vld [vmem:[#allocation2 + $0xdb4] sm:$0xf0] }
 0x171   :  { %3965 = vmatpush.bf16.msra.mxu3 %v5669_v10  ;;  %v5493_v10 = vor.u32 %v6881_v60, %v5492_v56  ;;  %v5973_v52 = vor.u32 %v7001_v6, %v5972_v5  ;;  %v6957_v62 = vld [vmem:[#allocation2 + $0xa74] sm:$0xf0]  ;;  %v6213_v21 = vor.u32 %v7061_v50, %v6212_v57  ;;  %v6068_v1 = vld [vmem:[#allocation2 + $0xc88] sm:$0xf] }
 0x172   :  { %3928 = vmatpush.bf16.msra.mxu0 %v5253_v27  ;;  %v6117_v27 = vor.u32 %v7037_v8, %v6116_v7  ;;  %v7025_v3 = vld [vmem:[#allocation2 + $0xc94] sm:$0xf0]  ;;  %v6196_v6 = vld [vmem:[#allocation2 + $0xd88] sm:$0xf] }
 0x173   :  { %3941 = vmatpush.bf16.msra.mxu1 %v5381_v30  ;;  %v5956_v30 = vld [vmem:[#allocation2 + $0xba8] sm:$0xf]  ;;  %v7057_v7 = vld [vmem:[#allocation2 + $0xd94] sm:$0xf0] }
 0x174   :  { %3953 = vmatpush.bf16.msra.mxu2 %v5525_v32  ;;  %v6245_v32 = vor.u32 %v7069_v12, %v6244_v11  ;;  %v5957_v45 = vor.u32 %v6997_v33, %v5956_v30  ;;  %v6069_v12 = vor.u32 %v7025_v3, %v6068_v1  ;;  %v5908_v15 = vld [vmem:[#allocation2 + $0xb48] sm:$0xf]  ;;  %v7021_v23 = vld [vmem:[#allocation2 + $0xc74] sm:$0xf0] }
 0x175   :  { %3966 = vmatpush.bf16.msra.mxu3 %v5653_v18  ;;  %v6228_v18 = vld [vmem:[#allocation2 + $0xdc8] sm:$0xf]  ;;  %v7053_v33 = vld [vmem:[#allocation2 + $0xd74] sm:$0xf0] }
 0x176   :  { %3929 = vmatpush.bf16.msra.mxu0 %v5237_v49  ;;  %v6229_v49 = vor.u32 %v7065_v41, %v6228_v18  ;;  %v3723_v53 = vpop.f32.mrf.mxu0  ;;  %v6052_v20 = vld [vmem:[#allocation2 + $0xc68] sm:$0xf]  ;;  %v7045_v3 = vld [vmem:[#allocation2 + $0xd34] sm:$0xf0] }
 0x177   :  { %3942 = vmatpush.bf16.msra.mxu1 %v5365_v55  ;;  %v6084_v55 = vld [vmem:[#allocation2 + $0xca8] sm:$0xf]  ;;  %v3724_v56 = vadd.f32 %v3723_v53, %v3711_v19  ;;  %v6053_v18 = vor.u32 %v7021_v23, %v6052_v20  ;;  %v7041_v20 = vld [vmem:[#allocation2 + $0xd14] sm:$0xf0] }
 0x178   :  { %3954 = vmatpush.bf16.msra.mxu2 %v5509_v51  ;;  %v7029_v51 = vld [vmem:[#allocation2 + $0xcb4] sm:$0xf0]  ;;  %v5764_v41 = vld [vmem:[#allocation2 + $0xa28] sm:$0xf] }
 0x179   :  { %3967 = vmatpush.bf16.msra.mxu3 %v5637_v58  ;;  %3930 = vmatmul.bf16.vlgmr.msra.gmra.mxu0 %v7378_v34  ;;  %v5813_v58 = vor.u32 %v6961_v22, %v5812_v47  ;;  %v6085_v60 = vor.u32 %v7029_v51, %v6084_v55  ;;  %v5892_v19 = vld [vmem:[#allocation2 + $0xb28] sm:$0xf]  ;;  %v6981_v22 = vld [vmem:[#allocation2 + $0xb34] sm:$0xf0] }
 0x17a   :  { %3974 = vmatpush.bf16.msrb.mxu0 %v5861_v59  ;;  %3943 = vmatmul.bf16.vlgmr.msra.gmra.mxu1 %v7382_v40  ;;  %v5941_v59 = vor.u32 %v6993_v54, %v5940_v48  ;;  %v6036_v48 = vld [vmem:[#allocation2 + $0xc48] sm:$0xf]  ;;  %v7049_v55 = vld [vmem:[#allocation2 + $0xd54] sm:$0xf0] }
 0x17b   :  { %3987 = vmatpush.bf16.msrb.mxu1 %v5989_v0  ;;  %v6989_v0 = vld [vmem:[#allocation2 + $0xb74] sm:$0xf0]  ;;  %v3736_v5 = vpop.f32.mrf.mxu1  ;;  %v6164_v54 = vld [vmem:[#allocation2 + $0xd48] sm:$0xf] }
 0x17c   :  { %3955 = vmatpush.bf16.msra.mxu2 %v5493_v10  ;;  %v3737_v8 = vadd.f32 %v3736_v5, %v3724_v56  ;;  %v5797_v10 = vor.u32 %v6957_v62, %v5796_v61  ;;  %v5925_v11 = vor.u32 %v6989_v0, %v5924_v4  ;;  %v5748_v57 = vld [vmem:[#allocation2 + $0xa08] sm:$0xf]  ;;  %v6977_v62 = vld [vmem:[#allocation2 + $0xb14] sm:$0xf0]  ;;  %v6165_v4 = vor.u32 %v7049_v55, %v6164_v54 }
 0x17d   :  { %3968 = vmatpush.bf16.msra.mxu3 %v5621_v13  ;;  %v5780_v13 = vld [vmem:[#allocation2 + $0xa48] sm:$0xf]  ;;  %v7013_v0 = vld [vmem:[#allocation2 + $0xc34] sm:$0xf0] }
 0x17e   :  { %3975 = vmatpush.bf16.msrb.mxu0 %v5845_v14  ;;  %v6953_v14 = vld [vmem:[#allocation2 + $0xa54] sm:$0xf0]  ;;  %v3725_v30 = vpop.f32.mrf.mxu0  ;;  %v5876_v61 = vld [vmem:[#allocation2 + $0xb08] sm:$0xf] }
 0x17f   :  { %3988 = vmatpush.bf16.msrb.mxu1 %v5973_v52  ;;  %3956 = vmatmul.bf16.vlgmr.msra.gmra.mxu2 %v7403_v24  ;;  %v6197_v52 = vor.u32 %v7057_v7, %v6196_v6  ;;  %v5781_v37 = vor.u32 %v6953_v14, %v5780_v13  ;;  %v6148_v1 = vld [vmem:[#allocation2 + $0xd28] sm:$0xf]  ;;  %v7101_v6 = vld [vmem:[#allocation2 + $0xef4] sm:$0xf0] }
 0x180   :  { %4000 = vmatpush.bf16.msrb.mxu2 %v6117_v27  ;;  %3969 = vmatmul.bf16.vlgmr.msra.gmra.mxu3 %v7411_v29  ;;  %v6985_v27 = vld [vmem:[#allocation2 + $0xb54] sm:$0xf0]  ;;  %v6372_v5 = vld [vmem:[#allocation2 + $0xee8] sm:$0xf]  ;;  %v6149_v14 = vor.u32 %v7045_v3, %v6148_v1 }
 0x181   :  { %4013 = vmatpush.bf16.msrb.mxu3 %v6245_v32  ;;  %v6180_v32 = vld [vmem:[#allocation2 + $0xd68] sm:$0xf]  ;;  %v5909_v38 = vor.u32 %v6985_v27, %v5908_v15  ;;  %v6373_v15 = vor.u32 %v7101_v6, %v6372_v5  ;;  %v7093_v54 = vld [vmem:[#allocation2 + $0xeb4] sm:$0xf0] }
 0x182   :  { %3976 = vmatpush.bf16.msrb.mxu0 %v5829_v9  ;;  %v6949_v9 = vld [vmem:[#allocation2 + $0xa34] sm:$0xf0]  ;;  %v6004_v13 = vld [vmem:[#allocation2 + $0xc08] sm:$0xf] }
 0x183   :  { %3989 = vmatpush.bf16.msrb.mxu1 %v5957_v45  ;;  %v6181_v45 = vor.u32 %v7053_v33, %v6180_v32  ;;  %v3762_v47 = vpop.f32.mrf.mxu3  ;;  %v3738_v51 = vpop.f32.mrf.mxu1  ;;  %v5765_v56 = vor.u32 %v6949_v9, %v5764_v41  ;;  %v6132_v27 = vld [vmem:[#allocation2 + $0xd08] sm:$0xf]  ;;  %v7161_v9 = vld [vmem:[#allocation2 + $0x10d4] sm:$0xf0] }
 0x184   :  { %4001 = vmatpush.bf16.msrb.mxu2 %v6101_v46  ;;  %v3749_v46 = vpop.f32.mrf.mxu2  ;;  %v6356_v33 = vld [vmem:[#allocation2 + $0xec8] sm:$0xf]  ;;  %v7121_v6 = vld [vmem:[#allocation2 + $0xf94] sm:$0xf0] }
 0x185   :  { %4014 = vmatpush.bf16.msrb.mxu3 %v6229_v49  ;;  %v7017_v49 = vld [vmem:[#allocation2 + $0xc54] sm:$0xf0]  ;;  %v3750_v53 = vadd.f32 %v3749_v46, %v3737_v8  ;;  %v6500_v8 = vld [vmem:[#allocation2 + $0xfe8] sm:$0xf]  ;;  %v4582_v46 = vld [vmem:[#allocation2 + $0xf8] sm:$0xf0] }
 0x186   :  { %3977 = vmatpush.bf16.msrb.mxu0 %v5813_v58  ;;  %v5893_v58 = vor.u32 %v6981_v22, %v5892_v19  ;;  %v6612_v41 = vld [vmem:[#allocation2 + $0x10c8] sm:$0xf] }
 0x187   :  { %3990 = vmatpush.bf16.msrb.mxu1 %v5941_v59  ;;  %v7491_v50 = vadd.f32 %v3762_v47, %v3750_v53  ;;  %v6037_v59 = vor.u32 %v7017_v49, %v6036_v48  ;;  %v6133_v47 = vor.u32 %v7041_v20, %v6132_v27  ;;  %v6613_v49 = vor.u32 %v7161_v9, %v6612_v41  ;;  %v6340_v53 = vld [vmem:[#allocation2 + $0xea8] sm:$0xf]  ;;  %v7085_v27 = vld [vmem:[#allocation2 + $0xe74] sm:$0xf0] }
 0x188   :  { %4002 = vmatpush.bf16.msrb.mxu2 %v6085_v60  ;;  %v6945_v60 = vld [vmem:[#allocation2 + $0xa14] sm:$0xf0]  ;;  %v6468_v55 = vld [vmem:[#allocation2 + $0xfa8] sm:$0xf] }
 0x189   :  { %4015 = vmatpush.bf16.msrb.mxu3 %v6213_v21  ;;  %v6020_v21 = vld [vmem:[#allocation2 + $0xc28] sm:$0xf]  ;;  %v5749_v7 = vor.u32 %v6945_v60, %v5748_v57  ;;  %v4566_v60 = vld [vmem:[#allocation2 + $0xd8] sm:$0xf0] }
 0x18a   :  { %3978 = vmatpush.bf16.msrb.mxu0 %v5797_v10  ;;  %v7133_v10 = vld [vmem:[#allocation2 + $0xff4] sm:$0xf0]  ;;  %v6596_v57 = vld [vmem:[#allocation2 + $0x10a8] sm:$0xf] }
 0x18b   :  { %3991 = vmatpush.bf16.msrb.mxu1 %v5925_v11  ;;  %v5877_v11 = vor.u32 %v6977_v62, %v5876_v61  ;;  %v3764_v30 = vpop.f32.mrf.mxu3  ;;  %v6501_v32 = vor.u32 %v7133_v10, %v6500_v8  ;;  %v6341_v61 = vor.u32 %v7093_v54, %v6340_v53  ;;  %v6452_v1 = vld [vmem:[#allocation2 + $0xf88] sm:$0xf]  ;;  %v7153_v8 = vld [vmem:[#allocation2 + $0x1094] sm:$0xf0] }
 0x18c   :  { %4003 = vmatpush.bf16.msrb.mxu2 %v6069_v12  ;;  %v6021_v12 = vor.u32 %v7013_v0, %v6020_v21  ;;  %v3751_v23 = vpop.f32.mrf.mxu2  ;;  %v6324_v21 = vld [vmem:[#allocation2 + $0xe88] sm:$0xf]  ;;  %v7089_v0 = vld [vmem:[#allocation2 + $0xe94] sm:$0xf0] }
 0x18d   :  { %4016 = vmatpush.bf16.msrb.mxu3 %v6197_v52  ;;  %v7009_v52 = vld [vmem:[#allocation2 + $0xc14] sm:$0xf0]  ;;  %v6436_v20 = vld [vmem:[#allocation2 + $0xf68] sm:$0xf] }
 0x18e   :  { %3979 = vmatpush.bf16.msrb.mxu0 %v5781_v37  ;;  %v7097_v37 = vld [vmem:[#allocation2 + $0xed4] sm:$0xf0]  ;;  %v6005_v19 = vor.u32 %v7009_v52, %v6004_v13  ;;  %v6325_v13 = vor.u32 %v7089_v0, %v6324_v21  ;;  %v6308_v52 = vld [vmem:[#allocation2 + $0xe68] sm:$0xf] }
 0x18f   :  { %3992 = vmatpush.bf16.msrb.mxu1 %v5909_v38  ;;  %v6484_v38 = vld [vmem:[#allocation2 + $0xfc8] sm:$0xf]  ;;  %v6357_v22 = vor.u32 %v7097_v37, %v6356_v33  ;;  %v7117_v30 = vld [vmem:[#allocation2 + $0xf74] sm:$0xf0]  ;;  %v6309_v41 = vor.u32 %v7085_v27, %v6308_v52 }
 0x190   :  { %4004 = vmatpush.bf16.msrb.mxu2 %v6053_v18  ;;  %v7129_v18 = vld [vmem:[#allocation2 + $0xfd4] sm:$0xf0]  ;;  %v6437_v9 = vor.u32 %v7117_v30, %v6436_v20  ;;  %v6388_v52 = vld [vmem:[#allocation2 + $0xf08] sm:$0xf] }
 0x191   :  { %4017 = vmatpush.bf16.msrb.mxu3 %v6181_v45  ;;  %v6651_v45 = vld [vmem:[#allocation2 + $0xec] sm:$0xf]  ;;  %v6485_v48 = vor.u32 %v7129_v18, %v6484_v38  ;;  %v7149_v33 = vld [vmem:[#allocation2 + $0x1074] sm:$0xf0]  ;;  %v4534_v18 = vld [vmem:[#allocation2 + $0x98] sm:$0xf0] }
 0x192   :  { %3980 = vmatpush.bf16.msrb.mxu0 %v5765_v56  ;;  %v4585_v51 = vor.u32 %v6651_v45, %v4582_v46  ;;  %v7125_v56 = vld [vmem:[#allocation2 + $0xfb4] sm:$0xf0]  ;;  %v6639_v38 = vld [vmem:[#allocation2 + $0x8c] sm:$0xf]  ;;  %v6292_v45 = vld [vmem:[#allocation2 + $0xe48] sm:$0xf] }
 0x193   :  { %3993 = vmatpush.bf16.msrb.mxu1 %v5893_v58  ;;  %v7157_v58 = vld [vmem:[#allocation2 + $0x10b4] sm:$0xf0]  ;;  %v6469_v62 = vor.u32 %v7125_v56, %v6468_v55  ;;  %v6635_v55 = vld [vmem:[#allocation2 + $0x6c] sm:$0xf]  ;;  %v6516_v20 = vld [vmem:[#allocation2 + $0x1008] sm:$0xf] }
 0x194   :  { %4005 = vmatpush.bf16.msrb.mxu2 %v6037_v59  ;;  %v6647_v59 = vld [vmem:[#allocation2 + $0xcc] sm:$0xf]  ;;  %v7081_v46 = vld [vmem:[#allocation2 + $0xe54] sm:$0xf0] }
 0x195   :  { %4018 = vmatpush.bf16.msrb.mxu3 %v6165_v4  ;;  %v6597_v4 = vor.u32 %v7157_v58, %v6596_v57  ;;  %v4569_v3 = vor.u32 %v6647_v59, %v4566_v60  ;;  %v7145_v53 = vld [vmem:[#allocation2 + $0x1054] sm:$0xf0]  ;;  %v6293_v56 = vor.u32 %v7081_v46, %v6292_v45  ;;  %v6276_v59 = vld [vmem:[#allocation2 + $0xe28] sm:$0xf] }
 0x196   :  { %3981 = vmatpush.bf16.msrb.mxu0 %v5749_v7  ;;  %v3775_v5 = vpop.f32.mrf.mxu0  ;;  %v6580_v7 = vld [vmem:[#allocation2 + $0x1088] sm:$0xf]  ;;  %v7077_v60 = vld [vmem:[#allocation2 + $0xe34] sm:$0xf0] }
 0x197   :  { %3994 = vmatpush.bf16.msrb.mxu1 %v5877_v11  ;;  %v3776_v10 = vadd.f32 %v3775_v5, %v7491_v50  ;;  %v6643_v11 = vld [vmem:[#allocation2 + $0xac] sm:$0xf]  ;;  %v7109_v0 = vld [vmem:[#allocation2 + $0xf34] sm:$0xf0] }
 0x198   :  { %4006 = vmatpush.bf16.msrb.mxu2 %v6021_v12  ;;  %v4550_v12 = vld [vmem:[#allocation2 + $0xb8] sm:$0xf0]  ;;  %v7105_v27 = vld [vmem:[#allocation2 + $0xf14] sm:$0xf0] }
 0x199   :  { %4019 = vmatpush.bf16.msrb.mxu3 %v6149_v14  ;;  %3982 = vmatmul.bf16.vlgmr.msrb.gmra.mxu0 %v7407_v28  ;;  %v6453_v14 = vor.u32 %v7121_v6, %v6452_v1  ;;  %v4553_v23 = vor.u32 %v6643_v11, %v4550_v12  ;;  %v6532_v1 = vld [vmem:[#allocation2 + $0x1028] sm:$0xf]  ;;  %v6631_v6 = vld [vmem:[#allocation2 + $0x4c] sm:$0xf]  ;;  %v7073_v12 = vld [vmem:[#allocation2 + $0xe14] sm:$0xf0]  ;;  %v6389_v45 = vor.u32 %v7105_v27, %v6388_v52 }
 0x19a   :  { %4026 = vmatpush.bf16.msra.mxu0 %v6373_v15  ;;  %3995 = vmatmul.bf16.vlgmr.msrb.gmra.mxu1 %v7415_v16  ;;  %v6581_v15 = vor.u32 %v7153_v8, %v6580_v7  ;;  %v4502_v7 = vld [vmem:[#allocation2 + $0x58] sm:$0xf0]  ;;  %v6260_v11 = vld [vmem:[#allocation2 + $0xe08] sm:$0xf]  ;;  %v7137_v30 = vld [vmem:[#allocation2 + $0x1014] sm:$0xf0] }
 0x19b   :  { %4039 = vmatpush.bf16.msra.mxu1 %v6501_v32  ;;  %v6564_v32 = vld [vmem:[#allocation2 + $0x1068] sm:$0xf]  ;;  %v3788_v37 = vpop.f32.mrf.mxu1  ;;  %v6517_v46 = vor.u32 %v7137_v30, %v6516_v20  ;;  %v4662_v30 = vld [vmem:[#allocation2 + $0x198] sm:$0xf0] }
 0x19c   :  { %4007 = vmatpush.bf16.msrb.mxu2 %v6005_v19  ;;  %v3789_v50 = vadd.f32 %v3788_v37, %v3776_v10  ;;  %v6565_v19 = vor.u32 %v7149_v33, %v6564_v32  ;;  %v6277_v10 = vor.u32 %v7077_v60, %v6276_v59  ;;  %v6627_v32 = vld [vmem:[#allocation2 + $0x2c] sm:$0xf]  ;;  %v4486_v33 = vld [vmem:[#allocation2 + $0x38] sm:$0xf0] }
 0x19d   :  { %4020 = vmatpush.bf16.msrb.mxu3 %v6133_v47  ;;  %v6420_v47 = vld [vmem:[#allocation2 + $0xf48] sm:$0xf]  ;;  %v6683_v37 = vld [vmem:[#allocation2 + $0x1ec] sm:$0xf]  ;;  %v4822_v59 = vld [vmem:[#allocation2 + $0x2d8] sm:$0xf0] }
 0x19e   :  { %4027 = vmatpush.bf16.msra.mxu0 %v6357_v22  ;;  %v4537_v22 = vor.u32 %v6639_v38, %v4534_v18  ;;  %v3777_v54 = vpop.f32.mrf.mxu0  ;;  %v4710_v38 = vld [vmem:[#allocation2 + $0x1f8] sm:$0xf0]  ;;  %v6715_v18 = vld [vmem:[#allocation2 + $0x2ec] sm:$0xf] }
 0x19f   :  { %4040 = vmatpush.bf16.msra.mxu1 %v6485_v48  ;;  %4008 = vmatmul.bf16.vlgmr.msrb.gmra.mxu2 %v7421_v17  ;;  %v7113_v48 = vld [vmem:[#allocation2 + $0xf54] sm:$0xf0]  ;;  %v6743_v60 = vld [vmem:[#allocation2 + $0x3cc] sm:$0xf] }
 0x1a0   :  { %4053 = vmatpush.bf16.msra.mxu2 %v6613_v49  ;;  %4021 = vmatmul.bf16.vlgmr.msrb.gmra.mxu3 %v7425_v26  ;;  %v6548_v49 = vld [vmem:[#allocation2 + $0x1048] sm:$0xf]  ;;  %v6421_v57 = vor.u32 %v7113_v48, %v6420_v47  ;;  %v4489_v47 = vor.u32 %v6627_v32, %v4486_v33  ;;  %v6623_v48 = vld [vmem:[#allocation2 + $0xc] sm:$0xf] }
 0x1a1   :  { %4065 = vmatpush.bf16.msra.mxu3 %v4585_v51  ;;  %v4518_v51 = vld [vmem:[#allocation2 + $0x78] sm:$0xf0]  ;;  %v6549_v58 = vor.u32 %v7145_v53, %v6548_v49  ;;  %v6703_v32 = vld [vmem:[#allocation2 + $0x28c] sm:$0xf] }
 0x1a2   :  { %4028 = vmatpush.bf16.msra.mxu0 %v6341_v61  ;;  %v6404_v61 = vld [vmem:[#allocation2 + $0xf28] sm:$0xf]  ;;  %v4470_v49 = vld [vmem:[#allocation2 + $0x18] sm:$0xf0] }
 0x1a3   :  { %4041 = vmatpush.bf16.msra.mxu1 %v6469_v62  ;;  %v4521_v62 = vor.u32 %v6635_v55, %v4518_v51  ;;  %v3814_v21 = vpop.f32.mrf.mxu3  ;;  %v3790_v8 = vpop.f32.mrf.mxu1 }
 0x1a4   :  { %4054 = vmatpush.bf16.msra.mxu2 %v6597_v4  ;;  %v3801_v4 = vpop.f32.mrf.mxu2 }
 0x1a5   :  { %4066 = vmatpush.bf16.msra.mxu3 %v4569_v3  ;;  %v7141_v3 = vld [vmem:[#allocation2 + $0x1034] sm:$0xf0]  ;;  %v3802_v5 = vadd.f32 %v3801_v4, %v3789_v50  ;;  %v6261_v50 = vor.u32 %v7073_v12, %v6260_v11  ;;  %v5094_v4 = vld [vmem:[#allocation2 + $0x4f8] sm:$0xf0]  ;;  %v6739_v11 = vld [vmem:[#allocation2 + $0x3ac] sm:$0xf] }
 0x1a6   :  { %4029 = vmatpush.bf16.msra.mxu0 %v6325_v13  ;;  %v4934_v12 = vld [vmem:[#allocation2 + $0x3b8] sm:$0xf0] }
 0x1a7   :  { %4042 = vmatpush.bf16.msra.mxu1 %v6453_v14  ;;  %v7498_v13 = vadd.f32 %v3814_v21, %v3802_v5  ;;  %v6405_v14 = vor.u32 %v7109_v0, %v6404_v61  ;;  %v4950_v61 = vld [vmem:[#allocation2 + $0x3d8] sm:$0xf0]  ;;  %v4473_v21 = vor.u32 %v6623_v48, %v4470_v49  ;;  %v6675_v5 = vld [vmem:[#allocation2 + $0x1ac] sm:$0xf]  ;;  %v4937_v20 = vor.u32 %v6739_v11, %v4934_v12 }
 0x1a8   :  { %4055 = vmatpush.bf16.msra.mxu2 %v6581_v15  ;;  %v6533_v15 = vor.u32 %v7141_v3, %v6532_v1  ;;  %v4953_v3 = vor.u32 %v6743_v60, %v4950_v61  ;;  %v6667_v49 = vld [vmem:[#allocation2 + $0x16c] sm:$0xf] }
 0x1a9   :  { %4067 = vmatpush.bf16.msra.mxu3 %v4553_v23  ;;  %v4505_v23 = vor.u32 %v6631_v6, %v4502_v7  ;;  %v4678_v6 = vld [vmem:[#allocation2 + $0x1b8] sm:$0xf0]  ;;  %v6707_v7 = vld [vmem:[#allocation2 + $0x2ac] sm:$0xf] }
 0x1aa   :  { %4030 = vmatpush.bf16.msra.mxu0 %v6309_v41  ;;  %v4838_v41 = vld [vmem:[#allocation2 + $0x2f8] sm:$0xf0]  ;;  %v4681_v52 = vor.u32 %v6675_v5, %v4678_v6  ;;  %v7173_v6 = vld [vmem:[#allocation5] sm:$0xf] }
 0x1ab   :  { %4043 = vmatpush.bf16.msra.mxu1 %v6437_v9  ;;  %v6747_v9 = vld [vmem:[#allocation2 + $0x3ec] sm:$0xf]  ;;  %v3816_v54 = vpop.f32.mrf.mxu3  ;;  %v4841_v55 = vor.u32 %v6715_v18, %v4838_v41 }
 0x1ac   :  { %4056 = vmatpush.bf16.msra.mxu2 %v6565_v19  ;;  %v4966_v19 = vld [vmem:[#allocation2 + $0x3f8] sm:$0xf0]  ;;  %v3803_v53 = vpop.f32.mrf.mxu2  ;;  %v6735_v18 = vld [vmem:[#allocation2 + $0x38c] sm:$0xf] }
 0x1ad   :  { %4068 = vmatpush.bf16.msra.mxu3 %v4537_v22  ;;  %v4713_v22 = vor.u32 %v6683_v37, %v4710_v38  ;;  %v4969_v51 = vor.u32 %v6747_v9, %v4966_v19  ;;  %v4790_v38 = vld [vmem:[#allocation2 + $0x298] sm:$0xf0]  ;;  %v6771_v9 = vld [vmem:[#allocation2 + $0x4ac] sm:$0xf] }
 0x1ae   :  { %4031 = vmatpush.bf16.msra.mxu0 %v6293_v56  ;;  %v6679_v56 = vld [vmem:[#allocation2 + $0x1cc] sm:$0xf]  ;;  %v5062_v19 = vld [vmem:[#allocation2 + $0x4b8] sm:$0xf0] }
 0x1af   :  { %4044 = vmatpush.bf16.msra.mxu1 %v6421_v57  ;;  %v4694_v57 = vld [vmem:[#allocation2 + $0x1d8] sm:$0xf0]  ;;  %v6699_v54 = vld [vmem:[#allocation2 + $0x26c] sm:$0xf] }
 0x1b0   :  { %4057 = vmatpush.bf16.msra.mxu2 %v6549_v58  ;;  %v6711_v58 = vld [vmem:[#allocation2 + $0x2cc] sm:$0xf]  ;;  %v4697_v0 = vor.u32 %v6679_v56, %v4694_v57  ;;  %v4646_v53 = vld [vmem:[#allocation2 + $0x178] sm:$0xf0] }
 0x1b1   :  { %4069 = vmatpush.bf16.msra.mxu3 %v4521_v62  ;;  %v6779_v62 = vld [vmem:[#allocation2 + $0x4ec] sm:$0xf]  ;;  %v4825_v1 = vor.u32 %v6711_v58, %v4822_v59  ;;  %v4902_v56 = vld [vmem:[#allocation2 + $0x378] sm:$0xf0] }
 0x1b2   :  { %4032 = vmatpush.bf16.msra.mxu0 %v6277_v10  ;;  %v5097_v8 = vor.u32 %v6779_v62, %v5094_v4  ;;  %v4806_v10 = vld [vmem:[#allocation2 + $0x2b8] sm:$0xf0]  ;;  %v6767_v57 = vld [vmem:[#allocation2 + $0x48c] sm:$0xf] }
 0x1b3   :  { %4045 = vmatpush.bf16.msra.mxu1 %v6405_v14  ;;  %v6775_v14 = vld [vmem:[#allocation2 + $0x4cc] sm:$0xf]  ;;  %v4809_v27 = vor.u32 %v6707_v7, %v4806_v10  ;;  %v5046_v58 = vld [vmem:[#allocation2 + $0x498] sm:$0xf0]  ;;  %v692_v7 = vperm.slane %v7173_v6, 2 }
 0x1b4   :  { %4058 = vmatpush.bf16.msra.mxu2 %v6533_v15  ;;  %v5078_v15 = vld [vmem:[#allocation2 + $0x4d8] sm:$0xf0]  ;;  %v6663_v59 = vld [vmem:[#allocation2 + $0x14c] sm:$0xf] }
 0x1b5   :  { %4070 = vmatpush.bf16.msra.mxu3 %v4505_v23  ;;  %v6671_v23 = vld [vmem:[#allocation2 + $0x18c] sm:$0xf]  ;;  %v5081_v33 = vor.u32 %v6775_v14, %v5078_v15  ;;  %v4630_v62 = vld [vmem:[#allocation2 + $0x158] sm:$0xf0] }
 0x1b6   :  { %4033 = vmatpush.bf16.msra.mxu0 %v6261_v50  ;;  %v3827_v37 = vpop.f32.mrf.mxu0  ;;  %v4918_v50 = vld [vmem:[#allocation2 + $0x398] sm:$0xf0]  ;;  %v6695_v4 = vld [vmem:[#allocation2 + $0x24c] sm:$0xf]  ;;  %v4633_v12 = vor.u32 %v6663_v59, %v4630_v62 }
 0x1b7   :  { %4046 = vmatpush.bf16.msra.mxu1 %v6389_v45  ;;  %v3828_v41 = vadd.f32 %v3827_v37, %v7498_v13  ;;  %v3840_v45 = vpop.f32.mrf.mxu1  ;;  %v6731_v13 = vld [vmem:[#allocation2 + $0x36c] sm:$0xf]  ;;  %v5030_v10 = vld [vmem:[#allocation2 + $0x478] sm:$0xf0] }
 0x1b8   :  { %4059 = vmatpush.bf16.msra.mxu2 %v6517_v46  ;;  %v4665_v46 = vor.u32 %v6671_v23, %v4662_v30  ;;  %v4905_v61 = vor.u32 %v6731_v13, %v4902_v56  ;;  %v4870_v37 = vld [vmem:[#allocation2 + $0x338] sm:$0xf0]  ;;  %v6755_v13 = vld [vmem:[#allocation2 + $0x42c] sm:$0xf] }
 0x1b9   :  { %4071 = vmatpush.bf16.msra.mxu3 %v4489_v47  ;;  %4034 = vmatmul.bf16.vlgmr.msra.gmra.mxu0 %v7423_v25  ;;  %v4793_v47 = vor.u32 %v6703_v32, %v4790_v38  ;;  %v7506_v48 = vadd.f32 %v3840_v45, %v3828_v41  ;;  %v4742_v32 = vld [vmem:[#allocation2 + $0x238] sm:$0xf0] }
 0x1ba   :  { %4078 = vmatpush.bf16.msrb.mxu0 %v4713_v22  ;;  %4047 = vmatmul.bf16.vlgmr.msra.gmra.mxu1 %v7427_v31  ;;  %v4921_v22 = vor.u32 %v6735_v18, %v4918_v50  ;;  %v6759_v50 = vld [vmem:[#allocation2 + $0x44c] sm:$0xf]  ;;  %v5014_v41 = vld [vmem:[#allocation2 + $0x458] sm:$0xf0] }
 0x1bb   :  { %4091 = vmatpush.bf16.msrb.mxu1 %v4841_v55  ;;  %6620 = vmatmul.msk.bf16.vlgmr.msra.gmra.mxu2 %vm3398_vm0, %v7433_v63  ;;  %v5065_v55 = vor.u32 %v6771_v9, %v5062_v19  ;;  %v6655_v19 = vld [vmem:[#allocation2 + $0x10c] sm:$0xf]  ;;  %v4598_v45 = vld [vmem:[#allocation2 + $0x118] sm:$0xf0] }
 0x1bc   :  { %4104 = vmatpush.bf16.msrb.mxu2 %v4969_v51  ;;  %v4774_v51 = vld [vmem:[#allocation2 + $0x278] sm:$0xf0]  ;;  %v4601_v59 = vor.u32 %v6655_v19, %v4598_v45  ;;  %v6867_v19 = vld [vmem:[#allocation2 + $0x7ac] sm:$0xf] }
 0x1bd   :  { %4072 = vmatpush.bf16.msra.mxu3 %v4473_v21  ;;  %v4777_v60 = vor.u32 %v6699_v54, %v4774_v51  ;;  %v4758_v21 = vld [vmem:[#allocation2 + $0x258] sm:$0xf0]  ;;  %v6719_v54 = vld [vmem:[#allocation2 + $0x30c] sm:$0xf] }
 0x1be   :  { %4079 = vmatpush.bf16.msrb.mxu0 %v4697_v0  ;;  %v5049_v0 = vor.u32 %v6767_v57, %v5046_v58  ;;  %v3829_v5 = vpop.f32.mrf.mxu0  ;;  %v4761_v14 = vor.u32 %v6695_v4, %v4758_v21  ;;  %v4854_v51 = vld [vmem:[#allocation2 + $0x318] sm:$0xf0]  ;;  %v6811_v57 = vld [vmem:[#allocation2 + $0x5ec] sm:$0xf] }
 0x1bf   :  { %4092 = vmatpush.bf16.msrb.mxu1 %v4825_v1  ;;  %v6727_v1 = vld [vmem:[#allocation2 + $0x34c] sm:$0xf]  ;;  %v3842_v11 = vpop.f32.mrf.mxu1  ;;  %v4998_v56 = vld [vmem:[#allocation2 + $0x438] sm:$0xf0]  ;;  %v4857_v21 = vor.u32 %v6719_v54, %v4854_v51 }
 0x1c0   :  { %4105 = vmatpush.bf16.msrb.mxu2 %v4953_v3  ;;  %4073 = vmatmul.bf16.vlgmr.msra.gmra.mxu3 %v7362_v36  ;;  %v4649_v36 = vor.u32 %v6667_v49, %v4646_v53  ;;  %v4886_v3 = vld [vmem:[#allocation2 + $0x358] sm:$0xf0]  ;;  %v6687_v49 = vld [vmem:[#allocation2 + $0x20c] sm:$0xf] }
 0x1c1   :  { %4117 = vmatpush.bf16.msrb.mxu3 %v5097_v8  ;;  %v6763_v8 = vld [vmem:[#allocation2 + $0x46c] sm:$0xf]  ;;  %v4889_v15 = vor.u32 %v6727_v1, %v4886_v3  ;;  %v4726_v53 = vld [vmem:[#allocation2 + $0x218] sm:$0xf0]  ;;  %v5001_v1 = vor.u32 %v6755_v13, %v4998_v56 }
 0x1c2   :  { %4080 = vmatpush.bf16.msrb.mxu0 %v4681_v52  ;;  %v6659_v52 = vld [vmem:[#allocation2 + $0x12c] sm:$0xf]  ;;  %v3853_v23 = vpop.f32.mrf.mxu2  ;;  %v5033_v30 = vor.u32 %v6763_v8, %v5030_v10  ;;  %v5222_v58 = vld [vmem:[#allocation2 + $0x5f8] sm:$0xf0]  ;;  %v4729_v4 = vor.u32 %v6687_v49, %v4726_v53 }
 0x1c3   :  { %4093 = vmatpush.bf16.msrb.mxu1 %v4809_v27  ;;  %v4614_v27 = vld [vmem:[#allocation2 + $0x138] sm:$0xf0]  ;;  %v3854_v38 = vadd.f32 %v3853_v23, %v692_v7  ;;  %v3866_v18 = vpop.f32.mrf.mxu3  ;;  %v5225_v3 = vor.u32 %v6811_v57, %v5222_v58  ;;  %v6751_v5 = vld [vmem:[#allocation2 + $0x40c] sm:$0xf] }
 0x1c4   :  { %4106 = vmatpush.bf16.msrb.mxu2 %v4937_v20  ;;  %v6691_v20 = vld [vmem:[#allocation2 + $0x22c] sm:$0xf]  ;;  %v4617_v9 = vor.u32 %v6659_v52, %v4614_v27  ;;  %v5478_v62 = vld [vmem:[#allocation2 + $0x7f8] sm:$0xf0] }
 0x1c5   :  { %4118 = vmatpush.bf16.msrb.mxu3 %v5081_v33  ;;  %v6723_v33 = vld [vmem:[#allocation2 + $0x32c] sm:$0xf]  ;;  %v4982_v6 = vld [vmem:[#allocation2 + $0x418] sm:$0xf0] }
 0x1c6   :  { %4081 = vmatpush.bf16.msrb.mxu0 %v4665_v46  ;;  %v7508_v46 = vadd.f32 %v3866_v18, %v3854_v38  ;;  %v6807_v11 = vld [vmem:[#allocation2 + $0x5cc] sm:$0xf]  ;;  %v5462_v27 = vld [vmem:[#allocation2 + $0x7d8] sm:$0xf0] }
 0x1c7   :  { %4094 = vmatpush.bf16.msrb.mxu1 %v4793_v47  ;;  %v4745_v47 = vor.u32 %v6691_v20, %v4742_v32  ;;  %v6871_v52 = vld [vmem:[#allocation2 + $0x7cc] sm:$0xf]  ;;  %v5606_v23 = vld [vmem:[#allocation2 + $0x8f8] sm:$0xf0] }
 0x1c8   :  { %4107 = vmatpush.bf16.msrb.mxu2 %v4921_v22  ;;  %v4873_v22 = vor.u32 %v6723_v33, %v4870_v37  ;;  %v6907_v20 = vld [vmem:[#allocation2 + $0x8ec] sm:$0xf]  ;;  %v5465_v37 = vor.u32 %v6871_v52, %v5462_v27  ;;  %v5190_v18 = vld [vmem:[#allocation2 + $0x5b8] sm:$0xf0] }
 0x1c9   :  { %4119 = vmatpush.bf16.msrb.mxu3 %v5065_v55  ;;  %v5017_v55 = vor.u32 %v6759_v50, %v5014_v41  ;;  %v6803_v38 = vld [vmem:[#allocation2 + $0x5ac] sm:$0xf]  ;;  %v5609_v41 = vor.u32 %v6907_v20, %v5606_v23  ;;  %v5446_v45 = vld [vmem:[#allocation2 + $0x7b8] sm:$0xf0] }
 0x1ca   :  { %4082 = vmatpush.bf16.msrb.mxu0 %v4649_v36  ;;  %v6843_v36 = vld [vmem:[#allocation2 + $0x6ec] sm:$0xf]  ;;  %v5193_v49 = vor.u32 %v6803_v38, %v5190_v18  ;;  %v5449_v54 = vor.u32 %v6867_v19, %v5446_v45  ;;  %v5174_v51 = vld [vmem:[#allocation2 + $0x598] sm:$0xf0] }
 0x1cb   :  { %4095 = vmatpush.bf16.msrb.mxu1 %v4777_v60  ;;  %v5350_v60 = vld [vmem:[#allocation2 + $0x6f8] sm:$0xf0]  ;;  %v3868_v7 = vpop.f32.mrf.mxu3  ;;  %v6835_v50 = vld [vmem:[#allocation2 + $0x6ac] sm:$0xf] }
 0x1cc   :  { %4108 = vmatpush.bf16.msrb.mxu2 %v4905_v61  ;;  %v6875_v61 = vld [vmem:[#allocation2 + $0x7ec] sm:$0xf]  ;;  %v5353_v8 = vor.u32 %v6843_v36, %v5350_v60  ;;  %v5302_v57 = vld [vmem:[#allocation2 + $0x698] sm:$0xf0] }
 0x1cd   :  { %4120 = vmatpush.bf16.msrb.mxu3 %v5049_v0  ;;  %v3855_v0 = vpop.f32.mrf.mxu2  ;;  %v5481_v10 = vor.u32 %v6875_v61, %v5478_v62  ;;  %v6831_v13 = vld [vmem:[#allocation2 + $0x68c] sm:$0xf]  ;;  %v5430_v58 = vld [vmem:[#allocation2 + $0x798] sm:$0xf0] }
 0x1ce   :  { %4083 = vmatpush.bf16.msrb.mxu0 %v4633_v12  ;;  %v5206_v12 = vld [vmem:[#allocation2 + $0x5d8] sm:$0xf0]  ;;  %v6899_v36 = vld [vmem:[#allocation2 + $0x8ac] sm:$0xf]  ;;  %v5305_v62 = vor.u32 %v6831_v13, %v5302_v57 }
 0x1cf   :  { %4096 = vmatpush.bf16.msrb.mxu1 %v4761_v14  ;;  %v6839_v14 = vld [vmem:[#allocation2 + $0x6cc] sm:$0xf]  ;;  %v5209_v32 = vor.u32 %v6807_v11, %v5206_v12  ;;  %v5158_v0 = vld [vmem:[#allocation2 + $0x578] sm:$0xf0] }
 0x1d0   :  { %4109 = vmatpush.bf16.msrb.mxu2 %v4889_v15  ;;  %v5334_v15 = vld [vmem:[#allocation2 + $0x6d8] sm:$0xf0]  ;;  %v6859_v7 = vld [vmem:[#allocation2 + $0x76c] sm:$0xf] }
 0x1d1   :  { %4121 = vmatpush.bf16.msrb.mxu3 %v5033_v30  ;;  %v4985_v30 = vor.u32 %v6751_v5, %v4982_v6  ;;  %v5337_v33 = vor.u32 %v6839_v14, %v5334_v15  ;;  %v5286_v6 = vld [vmem:[#allocation2 + $0x678] sm:$0xf0]  ;;  %v6791_v14 = vld [vmem:[#allocation2 + $0x54c] sm:$0xf] }
 0x1d2   :  { %4084 = vmatpush.bf16.msrb.mxu0 %v4617_v9  ;;  %v5318_v9 = vld [vmem:[#allocation2 + $0x6b8] sm:$0xf0]  ;;  %v6823_v52 = vld [vmem:[#allocation2 + $0x64c] sm:$0xf] }
 0x1d3   :  { %4097 = vmatpush.bf16.msrb.mxu1 %v4745_v47  ;;  %v6903_v47 = vld [vmem:[#allocation2 + $0x8cc] sm:$0xf]  ;;  %v5321_v53 = vor.u32 %v6835_v50, %v5318_v9  ;;  %v5142_v15 = vld [vmem:[#allocation2 + $0x558] sm:$0xf0] }
 0x1d4   :  { %4110 = vmatpush.bf16.msrb.mxu2 %v4873_v22  ;;  %v5590_v22 = vld [vmem:[#allocation2 + $0x8d8] sm:$0xf0]  ;;  %v6855_v23 = vld [vmem:[#allocation2 + $0x74c] sm:$0xf]  ;;  %v5145_v18 = vor.u32 %v6791_v14, %v5142_v15 }
 0x1d5   :  { %4122 = vmatpush.bf16.msrb.mxu3 %v5017_v55  ;;  %v6799_v55 = vld [vmem:[#allocation2 + $0x58c] sm:$0xf]  ;;  %v5593_v56 = vor.u32 %v6903_v47, %v5590_v22  ;;  %v5270_v20 = vld [vmem:[#allocation2 + $0x658] sm:$0xf0] }
 0x1d6   :  { %4085 = vmatpush.bf16.msrb.mxu0 %v4601_v59  ;;  %v5574_v59 = vld [vmem:[#allocation2 + $0x8b8] sm:$0xf0]  ;;  %v5177_v61 = vor.u32 %v6799_v55, %v5174_v51  ;;  %v5273_v50 = vor.u32 %v6823_v52, %v5270_v20  ;;  %v6787_v9 = vld [vmem:[#allocation2 + $0x52c] sm:$0xf] }
 0x1d7   :  { %4098 = vmatpush.bf16.msrb.mxu1 %v4729_v4  ;;  %v3892_v60 = vpop.f32.mrf.mxu1  ;;  %v5577_v5 = vor.u32 %v6899_v36, %v5574_v59  ;;  %v5126_v19 = vld [vmem:[#allocation2 + $0x538] sm:$0xf0]  ;;  %v6819_v45 = vld [vmem:[#allocation2 + $0x62c] sm:$0xf] }
 0x1d8   :  { %4111 = vmatpush.bf16.msrb.mxu2 %v4857_v21  ;;  %v6795_v21 = vld [vmem:[#allocation2 + $0x56c] sm:$0xf]  ;;  %v5129_v57 = vor.u32 %v6787_v9, %v5126_v19  ;;  %v5494_v52 = vld [vmem:[#allocation2 + $0x818] sm:$0xf0] }
 0x1d9   :  { %4123 = vmatpush.bf16.msrb.mxu3 %v5001_v1  ;;  %4086 = vmatmul.bf16.vlgmr.msrb.gmra.mxu0 %v7366_v43  ;;  %v3879_v43 = vpop.f32.mrf.mxu0  ;;  %v6827_v1 = vld [vmem:[#allocation2 + $0x66c] sm:$0xf] }
 0x1da   :  { %4130 = vmatpush.bf16.msra.mxu0 %v5225_v3  ;;  %4099 = vmatmul.bf16.vlgmr.msrb.gmra.mxu1 %v7360_v35  ;;  %v3880_v35 = vadd.f32 %v3879_v43, %v7508_v46  ;;  %v5161_v46 = vor.u32 %v6795_v21, %v5158_v0  ;;  %v5289_v11 = vor.u32 %v6827_v1, %v5286_v6  ;;  %v6887_v13 = vld [vmem:[#allocation2 + $0x84c] sm:$0xf]  ;;  %v5510_v0 = vld [vmem:[#allocation2 + $0x838] sm:$0xf0] }
 0x1db   :  { %4143 = vmatpush.bf16.msra.mxu1 %v5353_v8  ;;  %4112 = vmatmul.bf16.vlgmr.msrb.gmra.mxu2 %v7364_v42  ;;  %v6863_v42 = vld [vmem:[#allocation2 + $0x78c] sm:$0xf]  ;;  %v5414_v8 = vld [vmem:[#allocation2 + $0x778] sm:$0xf0] }
 0x1dc   :  { %4156 = vmatpush.bf16.msra.mxu2 %v5481_v10  ;;  %v5433_v4 = vor.u32 %v6863_v42, %v5430_v58  ;;  %v3893_v3 = vadd.f32 %v3892_v60, %v3880_v35  ;;  %v6895_v10 = vld [vmem:[#allocation2 + $0x88c] sm:$0xf]  ;;  %v5417_v12 = vor.u32 %v6859_v7, %v5414_v8  ;;  %v5110_v58 = vld [vmem:[#allocation2 + $0x518] sm:$0xf0] }
 0x1dd   :  { %4124 = vmatpush.bf16.msrb.mxu3 %v4985_v30  ;;  %v5398_v30 = vld [vmem:[#allocation2 + $0x758] sm:$0xf0]  ;;  %v6783_v42 = vld [vmem:[#allocation2 + $0x50c] sm:$0xf] }
 0x1de   :  { %4131 = vmatpush.bf16.msra.mxu0 %v5209_v32  ;;  %v6815_v35 = vld [vmem:[#allocation2 + $0x60c] sm:$0xf]  ;;  %v5238_v60 = vld [vmem:[#allocation2 + $0x618] sm:$0xf0]  ;;  %v5113_v6 = vor.u32 %v6783_v42, %v5110_v58 }
 0x1df   :  { %4144 = vmatpush.bf16.msra.mxu1 %v5337_v33  ;;  %v6891_v33 = vld [vmem:[#allocation2 + $0x86c] sm:$0xf]  ;;  %v3894_v38 = vpop.f32.mrf.mxu1  ;;  %v5862_v7 = vld [vmem:[#allocation2 + $0xaf8] sm:$0xf0] }
 0x1e0   :  { %4157 = vmatpush.bf16.msra.mxu2 %v5465_v37  ;;  %4125 = vmatmul.bf16.vlgmr.msrb.gmra.mxu3 %v7380_v39  ;;  %v5558_v39 = vld [vmem:[#allocation2 + $0x898] sm:$0xf0]  ;;  %v6883_v21 = vld [vmem:[#allocation2 + $0x82c] sm:$0xf] }
 0x1e1   :  { %4169 = vmatpush.bf16.msra.mxu3 %v5609_v41  ;;  %v5561_v27 = vor.u32 %v6895_v10, %v5558_v39  ;;  %v3881_v32 = vpop.f32.mrf.mxu0  ;;  %v5542_v37 = vld [vmem:[#allocation2 + $0x878] sm:$0xf0]  ;;  %v5401_v41 = vor.u32 %v6855_v23, %v5398_v30  ;;  %v6939_v1 = vld [vmem:[#allocation2 + $0x9ec] sm:$0xf]  ;;  %v5241_v39 = vor.u32 %v6815_v35, %v5238_v60 }
 0x1e2   :  { %4132 = vmatpush.bf16.msra.mxu0 %v5193_v49  ;;  %v3905_v47 = vpop.f32.mrf.mxu2  ;;  %v5545_v22 = vor.u32 %v6891_v33, %v5542_v37  ;;  %v5254_v49 = vld [vmem:[#allocation2 + $0x638] sm:$0xf0]  ;;  %v7003_v8 = vld [vmem:[#allocation2 + $0xbec] sm:$0xf] }
 0x1e3   :  { %4145 = vmatpush.bf16.msra.mxu1 %v5321_v53  ;;  %v6851_v53 = vld [vmem:[#allocation2 + $0x72c] sm:$0xf]  ;;  %v3906_v55 = vadd.f32 %v3905_v47, %v3893_v3  ;;  %v3918_v51 = vpop.f32.mrf.mxu3  ;;  %v5257_v36 = vor.u32 %v6819_v45, %v5254_v49  ;;  %v5734_v3 = vld [vmem:[#allocation2 + $0x9f8] sm:$0xf0] }
 0x1e4   :  { %4158 = vmatpush.bf16.msra.mxu2 %v5449_v54  ;;  %v5382_v54 = vld [vmem:[#allocation2 + $0x738] sm:$0xf0]  ;;  %v5737_v14 = vor.u32 %v6939_v1, %v5734_v3  ;;  %v6879_v15 = vld [vmem:[#allocation2 + $0x80c] sm:$0xf] }
 0x1e5   :  { %4170 = vmatpush.bf16.msra.mxu3 %v5593_v56  ;;  %v5526_v56 = vld [vmem:[#allocation2 + $0x858] sm:$0xf0]  ;;  %v7515_v43 = vadd.f32 %v3918_v51, %v3906_v55  ;;  %v5385_v59 = vor.u32 %v6851_v53, %v5382_v54  ;;  %v6935_v30 = vld [vmem:[#allocation2 + $0x9cc] sm:$0xf]  ;;  %v5497_v9 = vor.u32 %v6879_v15, %v5494_v52 }
 0x1e6   :  { %4133 = vmatpush.bf16.msra.mxu0 %v5177_v61  ;;  %v6847_v61 = vld [vmem:[#allocation2 + $0x70c] sm:$0xf]  ;;  %v5990_v10 = vld [vmem:[#allocation2 + $0xbf8] sm:$0xf0] }
 0x1e7   :  { %4146 = vmatpush.bf16.msra.mxu1 %v5305_v62  ;;  %v5529_v62 = vor.u32 %v6887_v13, %v5526_v56  ;;  %v5993_v23 = vor.u32 %v7003_v8, %v5990_v10  ;;  %v5718_v32 = vld [vmem:[#allocation2 + $0x9d8] sm:$0xf0]  ;;  %v6967_v33 = vld [vmem:[#allocation2 + $0xacc] sm:$0xf] }
 0x1e8   :  { %4159 = vmatpush.bf16.msra.mxu2 %v5433_v4  ;;  %v5366_v4 = vld [vmem:[#allocation2 + $0x718] sm:$0xf0]  ;;  %v6999_v38 = vld [vmem:[#allocation2 + $0xbcc] sm:$0xf]  ;;  %v5721_v19 = vor.u32 %v6935_v30, %v5718_v32 }
 0x1e9   :  { %4171 = vmatpush.bf16.msra.mxu3 %v5577_v5  ;;  %v6971_v5 = vld [vmem:[#allocation2 + $0xaec] sm:$0xf]  ;;  %v5846_v37 = vld [vmem:[#allocation2 + $0xad8] sm:$0xf0] }
 0x1ea   :  { %4134 = vmatpush.bf16.msra.mxu0 %v5161_v46  ;;  %v5369_v46 = vor.u32 %v6847_v61, %v5366_v4  ;;  %v5865_v20 = vor.u32 %v6971_v5, %v5862_v7  ;;  %v5849_v45 = vor.u32 %v6967_v33, %v5846_v37  ;;  %v5702_v49 = vld [vmem:[#allocation2 + $0x9b8] sm:$0xf0]  ;;  %v6963_v53 = vld [vmem:[#allocation2 + $0xaac] sm:$0xf] }
 0x1eb   :  { %4147 = vmatpush.bf16.msra.mxu1 %v5289_v11  ;;  %v3907_v11 = vpop.f32.mrf.mxu2  ;;  %v5830_v55 = vld [vmem:[#allocation2 + $0xab8] sm:$0xf0]  ;;  %v6995_v51 = vld [vmem:[#allocation2 + $0xbac] sm:$0xf] }
 0x1ec   :  { %4160 = vmatpush.bf16.msra.mxu2 %v5417_v12  ;;  %v5513_v12 = vor.u32 %v6883_v21, %v5510_v0  ;;  %v5958_v13 = vld [vmem:[#allocation2 + $0xbb8] sm:$0xf0]  ;;  %v7031_v56 = vld [vmem:[#allocation2 + $0xccc] sm:$0xf]  ;;  %v5833_v58 = vor.u32 %v6963_v53, %v5830_v55 }
 0x1ed   :  { %4172 = vmatpush.bf16.msra.mxu3 %v5561_v27  ;;  %v3920_v27 = vpop.f32.mrf.mxu3  ;;  %v5686_v35 = vld [vmem:[#allocation2 + $0x998] sm:$0xf0]  ;;  %v7027_v21 = vld [vmem:[#allocation2 + $0xcac] sm:$0xf] }
 0x1ee   :  { %4135 = vmatpush.bf16.msra.mxu0 %v5145_v18  ;;  %v5974_v18 = vld [vmem:[#allocation2 + $0xbd8] sm:$0xf0]  ;;  %v6923_v8 = vld [vmem:[#allocation2 + $0x96c] sm:$0xf] }
 0x1ef   :  { %4148 = vmatpush.bf16.msra.mxu1 %v5273_v50  ;;  %v7035_v50 = vld [vmem:[#allocation2 + $0xcec] sm:$0xf]  ;;  %v5977_v47 = vor.u32 %v6999_v38, %v5974_v18  ;;  %v5814_v61 = vld [vmem:[#allocation2 + $0xa98] sm:$0xf0] }
 0x1f0   :  { %4161 = vmatpush.bf16.msra.mxu2 %v5401_v41  ;;  %v6118_v41 = vld [vmem:[#allocation2 + $0xcf8] sm:$0xf0]  ;;  %v6951_v30 = vld [vmem:[#allocation2 + $0xa4c] sm:$0xf] }
 0x1f1   :  { %4173 = vmatpush.bf16.msra.mxu3 %v5545_v22  ;;  %v6931_v22 = vld [vmem:[#allocation2 + $0x9ac] sm:$0xf]  ;;  %v6121_v54 = vor.u32 %v7035_v50, %v6118_v41  ;;  %v5942_v4 = vld [vmem:[#allocation2 + $0xb98] sm:$0xf0] }
 0x1f2   :  { %4136 = vmatpush.bf16.msra.mxu0 %v5129_v57  ;;  %v6102_v57 = vld [vmem:[#allocation2 + $0xcd8] sm:$0xf0]  ;;  %v5705_v42 = vor.u32 %v6931_v22, %v5702_v49  ;;  %v6983_v37 = vld [vmem:[#allocation2 + $0xb4c] sm:$0xf] }
 0x1f3   :  { %4149 = vmatpush.bf16.msra.mxu1 %v5257_v36  ;;  %v5961_v36 = vor.u32 %v6995_v51, %v5958_v13  ;;  %v6086_v0 = vld [vmem:[#allocation2 + $0xcb8] sm:$0xf0]  ;;  %v7019_v50 = vld [vmem:[#allocation2 + $0xc6c] sm:$0xf] }
 0x1f4   :  { %4162 = vmatpush.bf16.msra.mxu2 %v5385_v59  ;;  %v6927_v59 = vld [vmem:[#allocation2 + $0x98c] sm:$0xf]  ;;  %v5670_v10 = vld [vmem:[#allocation2 + $0x978] sm:$0xf0] }
 0x1f5   :  { %4174 = vmatpush.bf16.msra.mxu3 %v5529_v62  ;;  %v6991_v62 = vld [vmem:[#allocation2 + $0xb8c] sm:$0xf]  ;;  %v5689_v3 = vor.u32 %v6927_v59, %v5686_v35  ;;  %v5798_v11 = vld [vmem:[#allocation2 + $0xa78] sm:$0xf0]  ;;  %v5673_v15 = vor.u32 %v6923_v8, %v5670_v10 }
 0x1f6   :  { %4137 = vmatpush.bf16.msra.mxu0 %v5113_v6  ;;  %v3931_v60 = vpop.f32.mrf.mxu0  ;;  %v5945_v6 = vor.u32 %v6991_v62, %v5942_v4  ;;  %v5782_v33 = vld [vmem:[#allocation2 + $0xa58] sm:$0xf0]  ;;  %v6915_v49 = vld [vmem:[#allocation2 + $0x92c] sm:$0xf] }
 0x1f7   :  { %4150 = vmatpush.bf16.msra.mxu1 %v5241_v39  ;;  %v3944_v1 = vpop.f32.mrf.mxu1  ;;  %v6955_v39 = vld [vmem:[#allocation2 + $0xa6c] sm:$0xf]  ;;  %v5910_v38 = vld [vmem:[#allocation2 + $0xb58] sm:$0xf0] }
 0x1f8   :  { %4163 = vmatpush.bf16.msra.mxu2 %v5369_v46  ;;  %v6089_v46 = vor.u32 %v7027_v21, %v6086_v0  ;;  %v5801_v52 = vor.u32 %v6955_v39, %v5798_v11  ;;  %v6054_v41 = vld [vmem:[#allocation2 + $0xc78] sm:$0xf0]  ;;  %v6911_v59 = vld [vmem:[#allocation2 + $0x90c] sm:$0xf] }
 0x1f9   :  { %4175 = vmatpush.bf16.msra.mxu3 %v5513_v12  ;;  %4138 = vmatmul.bf16.vlgmr.msra.gmra.mxu0 %v7384_v44  ;;  %v6959_v44 = vld [vmem:[#allocation2 + $0xa8c] sm:$0xf]  ;;  %v5926_v12 = vld [vmem:[#allocation2 + $0xb78] sm:$0xf0]  ;;  %v6057_v55 = vor.u32 %v7019_v50, %v6054_v41 }
 0x1fa   :  { %4182 = vmatpush.bf16.msrb.mxu0 %v5737_v14  ;;  %4151 = vmatmul.bf16.vlgmr.msra.gmra.mxu1 %v7378_v34  ;;  %v3932_v34 = vadd.f32 %v3931_v60, %v7515_v43  ;;  %v5817_v5 = vor.u32 %v6959_v44, %v5814_v61  ;;  %v7023_v43 = vld [vmem:[#allocation2 + $0xc8c] sm:$0xf]  ;;  %v6070_v14 = vld [vmem:[#allocation2 + $0xc98] sm:$0xf0] }
 0x1fb   :  { %4195 = vmatpush.bf16.msrb.mxu1 %v5865_v20  ;;  %4164 = vmatmul.bf16.vlgmr.msra.gmra.mxu2 %v7382_v40  ;;  %v6105_v40 = vor.u32 %v7031_v56, %v6102_v57  ;;  %v6919_v20 = vld [vmem:[#allocation2 + $0x94c] sm:$0xf]  ;;  %v6073_v32 = vor.u32 %v7023_v43, %v6070_v14  ;;  %v5638_v53 = vld [vmem:[#allocation2 + $0x938] sm:$0xf0] }
 0x1fc   :  { %4208 = vmatpush.bf16.msrb.mxu2 %v5993_v23  ;;  %v7522_v7 = vadd.f32 %v3944_v1, %v3932_v34  ;;  %v5654_v23 = vld [vmem:[#allocation2 + $0x958] sm:$0xf0]  ;;  %v6979_v56 = vld [vmem:[#allocation2 + $0xb2c] sm:$0xf] }
 0x1fd   :  { %4176 = vmatpush.bf16.msra.mxu3 %v5497_v9  ;;  %v5766_v13 = vld [vmem:[#allocation2 + $0xa38] sm:$0xf0]  ;;  %v6943_v60 = vld [vmem:[#allocation2 + $0xa0c] sm:$0xf] }
 0x1fe   :  { %4183 = vmatpush.bf16.msrb.mxu0 %v5721_v19  ;;  %v3933_v18 = vpop.f32.mrf.mxu0  ;;  %v5657_v19 = vor.u32 %v6919_v20, %v5654_v23  ;;  %v5894_v57 = vld [vmem:[#allocation2 + $0xb38] sm:$0xf0]  ;;  %v6975_v62 = vld [vmem:[#allocation2 + $0xb0c] sm:$0xf] }
 0x1ff   :  { %4196 = vmatpush.bf16.msrb.mxu1 %v5849_v45  ;;  %v3946_v9 = vpop.f32.mrf.mxu1  ;;  %v5785_v45 = vor.u32 %v6951_v30, %v5782_v33  ;;  %v5622_v35 = vld [vmem:[#allocation2 + $0x918] sm:$0xf0]  ;;  %v7011_v21 = vld [vmem:[#allocation2 + $0xc2c] sm:$0xf] }
 0x200   :  { %4209 = vmatpush.bf16.msrb.mxu2 %v5977_v47  ;;  %4177 = vmatmul.bf16.vlgmr.msra.gmra.mxu3 %v7403_v24  ;;  %v6987_v24 = vld [vmem:[#allocation2 + $0xb6c] sm:$0xf]  ;;  %v5913_v47 = vor.u32 %v6983_v37, %v5910_v38  ;;  %v5750_v61 = vld [vmem:[#allocation2 + $0xa18] sm:$0xf0] }
 0x201   :  { %4221 = vmatpush.bf16.msrb.mxu3 %v6121_v54  ;;  %v5929_v27 = vor.u32 %v6987_v24, %v5926_v12  ;;  %v6947_v54 = vld [vmem:[#allocation2 + $0xa2c] sm:$0xf]  ;;  %v5878_v34 = vld [vmem:[#allocation2 + $0xb18] sm:$0xf0] }
 0x202   :  { %4184 = vmatpush.bf16.msrb.mxu0 %v5705_v42  ;;  %v7524_v22 = vpop.f32.mrf.mxu2  ;;  %v7015_v42 = vld [vmem:[#allocation2 + $0xc4c] sm:$0xf]  ;;  %v5769_v44 = vor.u32 %v6947_v54, %v5766_v13  ;;  %v6022_v0 = vld [vmem:[#allocation2 + $0xc38] sm:$0xf0]  ;;  %v5881_v11 = vor.u32 %v6975_v62, %v5878_v34 }
 0x203   :  { %4197 = vmatpush.bf16.msrb.mxu1 %v5833_v58  ;;  %v7526_v51 = vpop.f32.mrf.mxu3  ;;  %v6038_v58 = vld [vmem:[#allocation2 + $0xc58] sm:$0xf0]  ;;  %v7067_v1 = vld [vmem:[#allocation2 + $0xdec] sm:$0xf]  ;;  %v6025_v12 = vor.u32 %v7011_v21, %v6022_v0 }
 0x204   :  { %4210 = vmatpush.bf16.msrb.mxu2 %v5961_v36  ;;  %v5641_v36 = vor.u32 %v6915_v49, %v5638_v53  ;;  %v6041_v4 = vor.u32 %v7015_v42, %v6038_v58  ;;  %v6374_v8 = vld [vmem:[#allocation2 + $0xef8] sm:$0xf0]  ;;  %v7131_v10 = vld [vmem:[#allocation2 + $0xfec] sm:$0xf] }
 0x205   :  { %4222 = vmatpush.bf16.msrb.mxu3 %v6105_v40  ;;  %v5897_v40 = vor.u32 %v6979_v56, %v5894_v57  ;;  %v6502_v39 = vld [vmem:[#allocation2 + $0xff8] sm:$0xf0]  ;;  %v7007_v14 = vld [vmem:[#allocation2 + $0xc0c] sm:$0xf] }
 0x206   :  { %4185 = vmatpush.bf16.msrb.mxu0 %v5689_v3  ;;  %v6246_v3 = vld [vmem:[#allocation2 + $0xdf8] sm:$0xf0]  ;;  %v6505_v20 = vor.u32 %v7131_v10, %v6502_v39  ;;  %v7063_v23 = vld [vmem:[#allocation2 + $0xdcc] sm:$0xf] }
 0x207   :  { %4198 = vmatpush.bf16.msrb.mxu1 %v5817_v5  ;;  %v7099_v5 = vld [vmem:[#allocation2 + $0xeec] sm:$0xf]  ;;  %v6249_v43 = vor.u32 %v7067_v1, %v6246_v3  ;;  %v6230_v30 = vld [vmem:[#allocation2 + $0xdd8] sm:$0xf0] }
 0x208   :  { %4211 = vmatpush.bf16.msrb.mxu2 %v5945_v6  ;;  %v5625_v6 = vor.u32 %v6911_v59, %v5622_v35  ;;  %v6358_v33 = vld [vmem:[#allocation2 + $0xed8] sm:$0xf0]  ;;  %v7127_v37 = vld [vmem:[#allocation2 + $0xfcc] sm:$0xf]  ;;  %v6233_v9 = vor.u32 %v7063_v23, %v6230_v30 }
 0x209   :  { %4223 = vmatpush.bf16.msrb.mxu3 %v6089_v46  ;;  %v5753_v46 = vor.u32 %v6943_v60, %v5750_v61  ;;  %v6486_v38 = vld [vmem:[#allocation2 + $0xfd8] sm:$0xf0]  ;;  %v7159_v18 = vld [vmem:[#allocation2 + $0x10cc] sm:$0xf] }
 0x20a   :  { %4186 = vmatpush.bf16.msrb.mxu0 %v5673_v15  ;;  %v3959_v24 = vpop.f32.mrf.mxu2  ;;  %v6006_v15 = vld [vmem:[#allocation2 + $0xc18] sm:$0xf0]  ;;  %v7091_v53 = vld [vmem:[#allocation2 + $0xeac] sm:$0xf] }
 0x20b   :  { %4199 = vmatpush.bf16.msrb.mxu1 %v5801_v52  ;;  %v3972_v52 = vpop.f32.mrf.mxu3  ;;  %v6614_v50 = vld [vmem:[#allocation2 + $0x10d8] sm:$0xf0]  ;;  %v6009_v41 = vor.u32 %v7007_v14, %v6006_v15  ;;  %v7123_v13 = vld [vmem:[#allocation2 + $0xfac] sm:$0xf] }
 0x20c   :  { %4212 = vmatpush.bf16.msrb.mxu2 %v5929_v27  ;;  %v6377_v27 = vor.u32 %v7099_v5, %v6374_v8  ;;  %v6214_v49 = vld [vmem:[#allocation2 + $0xdb8] sm:$0xf0]  ;;  %v6617_v54 = vor.u32 %v7159_v18, %v6614_v50  ;;  %v7155_v57 = vld [vmem:[#allocation2 + $0x10ac] sm:$0xf] }
 0x20d   :  { %4224 = vmatpush.bf16.msrb.mxu3 %v6073_v32  ;;  %v7095_v32 = vld [vmem:[#allocation2 + $0xecc] sm:$0xf]  ;;  %v6470_v56 = vld [vmem:[#allocation2 + $0xfb8] sm:$0xf0] }
 0x20e   :  { %4187 = vmatpush.bf16.msrb.mxu0 %v5657_v19  ;;  %v6361_v19 = vor.u32 %v7095_v32, %v6358_v33  ;;  %v6598_v42 = vld [vmem:[#allocation2 + $0x10b8] sm:$0xf0]  ;;  %v6473_v59 = vor.u32 %v7123_v13, %v6470_v56  ;;  %v7055_v35 = vld [vmem:[#allocation2 + $0xd8c] sm:$0xf] }
 0x20f   :  { %4200 = vmatpush.bf16.msrb.mxu1 %v5785_v45  ;;  %v6489_v45 = vor.u32 %v7127_v37, %v6486_v38  ;;  %v6326_v60 = vld [vmem:[#allocation2 + $0xe98] sm:$0xf0]  ;;  %v7119_v61 = vld [vmem:[#allocation2 + $0xf8c] sm:$0xf] }
 0x210   :  { %4213 = vmatpush.bf16.msrb.mxu2 %v5913_v47  ;;  %v7059_v47 = vld [vmem:[#allocation2 + $0xdac] sm:$0xf]  ;;  %v6454_v62 = vld [vmem:[#allocation2 + $0xf98] sm:$0xf0] }
 0x211   :  { %4225 = vmatpush.bf16.msrb.mxu3 %v6057_v55  ;;  %v6342_v55 = vld [vmem:[#allocation2 + $0xeb8] sm:$0xf0]  ;;  %v6217_v58 = vor.u32 %v7059_v47, %v6214_v49  ;;  %v6457_v1 = vor.u32 %v7119_v61, %v6454_v62  ;;  %v7051_v3 = vld [vmem:[#allocation2 + $0xd6c] sm:$0xf] }
 0x212   :  { %4188 = vmatpush.bf16.msrb.mxu0 %v5641_v36  ;;  %v6345_v36 = vor.u32 %v7091_v53, %v6342_v55  ;;  %v6182_v5 = vld [vmem:[#allocation2 + $0xd78] sm:$0xf0]  ;;  %v7115_v39 = vld [vmem:[#allocation2 + $0xf6c] sm:$0xf] }
 0x213   :  { %4201 = vmatpush.bf16.msrb.mxu1 %v5769_v44  ;;  %v6198_v44 = vld [vmem:[#allocation2 + $0xd98] sm:$0xf0]  ;;  %v6185_v24 = vor.u32 %v7051_v3, %v6182_v5  ;;  %v7047_v14 = vld [vmem:[#allocation2 + $0xd4c] sm:$0xf] }
 0x214   :  { %4214 = vmatpush.bf16.msrb.mxu2 %v5897_v40  ;;  %v6201_v21 = vor.u32 %v7055_v35, %v6198_v44  ;;  %v6310_v10 = vld [vmem:[#allocation2 + $0xe78] sm:$0xf0]  ;;  %v7079_v52 = vld [vmem:[#allocation2 + $0xe4c] sm:$0xf] }
 0x215   :  { %4226 = vmatpush.bf16.msrb.mxu3 %v6041_v4  ;;  %v6582_v4 = vld [vmem:[#allocation2 + $0x1098] sm:$0xf0]  ;;  %v7111_v23 = vld [vmem:[#allocation2 + $0xf4c] sm:$0xf] }
 0x216   :  { %4189 = vmatpush.bf16.msrb.mxu0 %v5625_v6  ;;  %v7531_v40 = vpop.f32.mrf.mxu0  ;;  %v7083_v6 = vld [vmem:[#allocation2 + $0xe6c] sm:$0xf]  ;;  %v6166_v15 = vld [vmem:[#allocation2 + $0xd58] sm:$0xf0] }
 0x217   :  { %4202 = vmatpush.bf16.msrb.mxu1 %v5753_v46  ;;  %v7534_v34 = vpop.f32.mrf.mxu1  ;;  %v6438_v46 = vld [vmem:[#allocation2 + $0xf78] sm:$0xf0]  ;;  %v7143_v33 = vld [vmem:[#allocation2 + $0x104c] sm:$0xf]  ;;  %v6169_v18 = vor.u32 %v7047_v14, %v6166_v15  ;;  %v4302_v14 = vld [vmem:[#allocation7 + $0x60] sm:$0xff] }
 0x218   :  { %4215 = vmatpush.bf16.msrb.mxu2 %v5881_v11  ;;  %v7147_v11 = vld [vmem:[#allocation2 + $0x106c] sm:$0xf]  ;;  %v6422_v30 = vld [vmem:[#allocation2 + $0xf58] sm:$0xf0]  ;;  %v4318_v15 = vld [vmem:[#allocation7 + $0xe0] sm:$0xff] }
 0x219   :  { %4227 = vmatpush.bf16.msrb.mxu3 %v6025_v12  ;;  %4190 = vmatmul.bf16.vlgmr.msrb.gmra.mxu0 %v7411_v29  ;;  %v7087_v29 = vld [vmem:[#allocation2 + $0xe8c] sm:$0xf]  ;;  %v6313_v12 = vor.u32 %v7083_v6, %v6310_v10  ;;  %v6550_v37 = vld [vmem:[#allocation2 + $0x1058] sm:$0xf0] }
 0x21a   :  { %4234 = vmatpush.bf16.msra.mxu0 %v6249_v43  ;;  %4203 = vmatmul.bf16.vlgmr.msrb.gmra.mxu1 %v7407_v28  ;;  %v7151_v28 = vld [vmem:[#allocation2 + $0x108c] sm:$0xf]  ;;  %v6329_v0 = vor.u32 %v7087_v29, %v6326_v60  ;;  %v6441_v43 = vor.u32 %v7115_v39, %v6438_v46  ;;  %v6553_v49 = vor.u32 %v7143_v33, %v6550_v37  ;;  %v6406_v13 = vld [vmem:[#allocation2 + $0xf38] sm:$0xf0]  ;;  %v4304_v39 = vld [vmem:[#allocation7 + $0x70] sm:$0xff] }
 0x21b   :  { %4247 = vmatpush.bf16.msra.mxu1 %v6377_v27  ;;  %4216 = vmatmul.bf16.vlgmr.msrb.gmra.mxu2 %v7415_v16  ;;  %v6601_v16 = vor.u32 %v7155_v57, %v6598_v42  ;;  %v6585_v8 = vor.u32 %v7151_v28, %v6582_v4  ;;  %v7075_v47 = vld [vmem:[#allocation2 + $0xe2c] sm:$0xf]  ;;  %v6534_v57 = vld [vmem:[#allocation2 + $0x1038] sm:$0xf0]  ;;  %v4320_v46 = vld [vmem:[#allocation7 + $0xf0] sm:$0xff] }
 0x21c   :  { %4260 = vmatpush.bf16.msra.mxu2 %v6505_v20  ;;  %v6294_v20 = vld [vmem:[#allocation2 + $0xe58] sm:$0xf0]  ;;  %v7107_v55 = vld [vmem:[#allocation2 + $0xf2c] sm:$0xf] }
 0x21d   :  { %4228 = vmatpush.bf16.msrb.mxu3 %v6009_v41  ;;  %v6297_v50 = vor.u32 %v7079_v52, %v6294_v20  ;;  %v6425_v41 = vor.u32 %v7111_v23, %v6422_v30  ;;  %v7139_v56 = vld [vmem:[#allocation2 + $0x102c] sm:$0xf]  ;;  %v6134_v35 = vld [vmem:[#allocation2 + $0xd18] sm:$0xf0]  ;;  %v4332_v30 = vld [vmem:[#allocation7 + $0x150] sm:$0xff] }
 0x21e   :  { %4235 = vmatpush.bf16.msra.mxu0 %v6233_v9  ;;  %v3985_v32 = vpop.f32.mrf.mxu0  ;;  %v7071_v44 = vld [vmem:[#allocation2 + $0xe0c] sm:$0xf]  ;;  %v6537_v29 = vor.u32 %v7139_v56, %v6534_v57  ;;  %v6390_v61 = vld [vmem:[#allocation2 + $0xf18] sm:$0xf0]  ;;  %v4328_v56 = vld [vmem:[#allocation7 + $0x130] sm:$0xff] }
 0x21f   :  { %4248 = vmatpush.bf16.msra.mxu1 %v6361_v19  ;;  %v3998_v38 = vpop.f32.mrf.mxu1  ;;  %v7043_v19 = vld [vmem:[#allocation2 + $0xd2c] sm:$0xf]  ;;  %v6518_v28 = vld [vmem:[#allocation2 + $0x1018] sm:$0xf0] }
 0x220   :  { %4261 = vmatpush.bf16.msra.mxu2 %v6489_v45  ;;  %4229 = vmatmul.bf16.vlgmr.msrb.gmra.mxu3 %v7421_v17  ;;  %v6566_v17 = vld [vmem:[#allocation2 + $0x1078] sm:$0xf0]  ;;  %v7103_v60 = vld [vmem:[#allocation2 + $0xf0c] sm:$0xf]  ;;  %v4314_v38 = vld [vmem:[#allocation7 + $0xc0] sm:$0xff] }
 0x221   :  { %4274 = vmatpush.bf16.msra.mxu3 %v6617_v54  ;;  %v6569_v27 = vor.u32 %v7147_v11, %v6566_v17  ;;  %v6150_v45 = vld [vmem:[#allocation2 + $0xd38] sm:$0xf0]  ;;  %v7135_v62 = vld [vmem:[#allocation2 + $0x100c] sm:$0xf]  ;;  %v4336_v11 = vld [vmem:[#allocation7 + $0x170] sm:$0xff] }
 0x222   :  { %4236 = vmatpush.bf16.msra.mxu0 %v6217_v58  ;;  %v7536_v9 = vpop.f32.mrf.mxu2  ;;  %v6278_v54 = vld [vmem:[#allocation2 + $0xe38] sm:$0xf0]  ;;  %v6153_v42 = vor.u32 %v7043_v19, %v6150_v45  ;;  %v6521_v3 = vor.u32 %v7135_v62, %v6518_v28  ;;  %v4303_v17 = vld [vmem:[#allocation7 + $0x68] sm:$0xff]  ;;  %v4292_v62 = vld [vmem:[#allocation7 + $0x10] sm:$0xff] }
 0x223   :  { %4249 = vmatpush.bf16.msra.mxu1 %v6345_v36  ;;  %v7538_v53 = vpop.f32.mrf.mxu3  ;;  %v6281_v58 = vor.u32 %v7075_v47, %v6278_v54  ;;  %v6409_v36 = vor.u32 %v7107_v55, %v6406_v13  ;;  %v4305_v6 = vld [vmem:[#allocation7 + $0x78] sm:$0xff]  ;;  %v4299_v32 = vld [vmem:[#allocation7 + $0x48] sm:$0xff]  ;;  %v4296_v55 = vld [vmem:[#allocation7 + $0x30] sm:$0xff] }
 0x224   :  { %4262 = vmatpush.bf16.msra.mxu2 %v6473_v59  ;;  %v7039_v59 = vld [vmem:[#allocation2 + $0xd0c] sm:$0xf]  ;;  %v4337_v10 = vld [vmem:[#allocation7 + $0x178] sm:$0xff]  ;;  %v4312_v13 = vld [vmem:[#allocation7 + $0xb0] sm:$0xff] }
 0x225   :  { %4275 = vmatpush.bf16.msra.mxu3 %v6601_v16  ;;  %v6262_v16 = vld [vmem:[#allocation2 + $0xe18] sm:$0xf0]  ;;  %v6137_v4 = vor.u32 %v7039_v59, %v6134_v35  ;;  %v4315_v33 = vld [vmem:[#allocation7 + $0xc8] sm:$0xff]  ;;  %v4310_v59 = vld [vmem:[#allocation7 + $0xa0] sm:$0xff] }
 0x226   :  { %4237 = vmatpush.bf16.msra.mxu0 %v6201_v21  ;;  %v6265_v21 = vor.u32 %v7071_v44, %v6262_v16  ;;  %v4331_v37 = vld [vmem:[#allocation7 + $0x148] sm:$0xff]  ;;  %v4313_v19 = vld [vmem:[#allocation7 + $0xb8] sm:$0xff] }
 0x227   :  { %4250 = vmatpush.bf16.msra.mxu1 %v6329_v0  ;;  %v6393_v0 = vor.u32 %v7103_v60, %v6390_v61  ;;  %v4295_v57 = vld [vmem:[#allocation7 + $0x28] sm:$0xff]  ;;  %v4293_v16 = vld [vmem:[#allocation7 + $0x18] sm:$0xff] }
 0x228   :  { %4263 = vmatpush.bf16.msra.mxu2 %v6457_v1  ;;  %v4309_v60 = vld [vmem:[#allocation7 + $0x98] sm:$0xff] }
 0x229   :  { %4276 = vmatpush.bf16.msra.mxu3 %v6585_v8  ;;  %v4321_v8 = vld [vmem:[#allocation7 + $0xf8] sm:$0xff] }
 0x22a   :  { %4238 = vmatpush.bf16.msra.mxu0 %v6185_v24  ;;  %v4011_v1 = vpop.f32.mrf.mxu2  ;;  %v4319_v24 = vld [vmem:[#allocation7 + $0xe8] sm:$0xff]  ;;  %v4325_v61 = vld [vmem:[#allocation7 + $0x118] sm:$0xff] }
 0x22b   :  { %4251 = vmatpush.bf16.msra.mxu1 %v6313_v12  ;;  %v4024_v5 = vpop.f32.mrf.mxu3  ;;  %v3958_v12 = vadd.f32 %v7524_v22, %v7522_v7  ;;  %v4300_v7 = vld [vmem:[#allocation7 + $0x50] sm:$0xff]  ;;  %v4307_v1 = vld [vmem:[#allocation7 + $0x88] sm:$0xff] }
 0x22c   :  { %4264 = vmatpush.bf16.msra.mxu2 %v6441_v43  ;;  %v4335_v43 = vld [vmem:[#allocation7 + $0x168] sm:$0xff]  ;;  %v4316_v22 = vld [vmem:[#allocation7 + $0xd0] sm:$0xff] }
 0x22d   :  { %4277 = vmatpush.bf16.msra.mxu3 %v6569_v27  ;;  %v4333_v27 = vld [vmem:[#allocation7 + $0x158] sm:$0xff]  ;;  %v4323_v5 = vld [vmem:[#allocation7 + $0x108] sm:$0xff] }
 0x22e   :  { %4239 = vmatpush.bf16.msra.mxu0 %v6169_v18 }
 0x22f   :  { %4252 = vmatpush.bf16.msra.mxu1 %v6297_v50 }
 0x230   :  { %4265 = vmatpush.bf16.msra.mxu2 %v6425_v41  ;;  %v4330_v41 = vld [vmem:[#allocation7 + $0x140] sm:$0xff] }
 0x231   :  { %4278 = vmatpush.bf16.msra.mxu3 %v6553_v49  ;;  %v4329_v49 = vld [vmem:[#allocation7 + $0x138] sm:$0xff] }
 0x232   :  { %4240 = vmatpush.bf16.msra.mxu0 %v6153_v42  ;;  %v4311_v42 = vld [vmem:[#allocation7 + $0xa8] sm:$0xff] }
 0x233   :  { %4253 = vmatpush.bf16.msra.mxu1 %v6281_v58 }
 0x234   :  { %4266 = vmatpush.bf16.msra.mxu2 %v6409_v36  ;;  %v4327_v36 = vld [vmem:[#allocation7 + $0x128] sm:$0xff] }
 0x235   :  { %4279 = vmatpush.bf16.msra.mxu3 %v6537_v29  ;;  %v4326_v29 = vld [vmem:[#allocation7 + $0x120] sm:$0xff] }
 0x236   :  { %4241 = vmatpush.bf16.msra.mxu0 %v6137_v4  ;;  %v4035_v52 = vpop.f32.mrf.mxu0  ;;  %v4324_v4 = vld [vmem:[#allocation7 + $0x110] sm:$0xff] }
 0x237   :  { %4254 = vmatpush.bf16.msra.mxu1 %v6265_v21  ;;  %v4048_v20 = vpop.f32.mrf.mxu1 }
 0x238   :  { %4267 = vmatpush.bf16.msra.mxu2 %v6393_v0  ;;  %v4291_v0 = vld [vmem:[#allocation7 + $0x8] sm:$0xff] }
 0x239   :  { %4280 = vmatpush.bf16.msra.mxu3 %v6521_v3  ;;  %4242 = vmatmul.bf16.vlgmr.msra.gmra.mxu0 %v7425_v26  ;;  %v4301_v26 = vld [vmem:[#allocation7 + $0x58] sm:$0xff] }
 0x23a   :  { %4358 = vmatpush.msrb.mxu0 %v4305_v6  ;;  %4255 = vmatmul.bf16.vlgmr.msra.gmra.mxu1 %v7423_v25  ;;  %v4334_v25 = vld [vmem:[#allocation7 + $0x160] sm:$0xff] }
 0x23b   :  { %4378 = vmatpush.msrb.mxu1 %v4321_v8  ;;  %4268 = vmatmul.bf16.vlgmr.msra.gmra.mxu2 %v7427_v31  ;;  %v4317_v31 = vld [vmem:[#allocation7 + $0xd8] sm:$0xff]  ;;  %v4290_v6 = vld [vmem:[#allocation7] sm:$0xff] }
 0x23c   :  { %4398 = vmatpush.msrb.mxu2 %v4337_v10  ;;  %6621 = vmatmul.msk.bf16.vlgmr.msra.gmra.mxu3 %vm3398_vm0, %v7433_v63  ;;  %v3971_v63 = vadd.f32 %v7526_v51, %v3958_v12  ;;  %v4298_v51 = vld [vmem:[#allocation7 + $0x40] sm:$0xff] }
 0x23d   :  { %4359 = vmatpush.msrb.mxu0 %v4304_v39  ;;  %4379 = vmatpush.msrb.mxu1 %v4320_v46  ;;  %v4306_v8 = vld [vmem:[#allocation7 + $0x80] sm:$0xff]  ;;  %v7174_v39 = vld [vmem:[#allocation5] sm:$0xf] }
 0x23e   :  { %4399 = vmatpush.msrb.mxu2 %v4336_v11  ;;  %v3984_v23 = vadd.f32 %v7531_v40, %v3971_v63  ;;  %v4061_v18 = vpop.f32.mrf.mxu2  ;;  %v4297_v40 = vld [vmem:[#allocation7 + $0x38] sm:$0xff]  ;;  %v4037_v45 = vpop.f32.mrf.mxu0  ;;  %v4322_v10 = vld [vmem:[#allocation7 + $0x100] sm:$0xff]  ;;  %v693_v46 = vperm.slane %v7174_v39, 3  ;;  %v4286_v11 = vmax.f32 %v7465_v2, 0.0 }
 0x23f   :  { %4360 = vmatpush.msrb.mxu0 %v4303_v17  ;;  %4380 = vmatpush.msrb.mxu1 %v4319_v24  ;;  %v4050_v54 = vpop.f32.mrf.mxu1  ;;  %v4287_v17 = vmax.f32 %v7506_v48, 0.0  ;;  %v4347_v45 = vld [vmem:[#allocation7 + $0x1c8] sm:$0xff] }
 0x240   :  { %4400 = vmatpush.msrb.mxu2 %v4335_v43  ;;  %v3997_v50 = vadd.f32 %v7534_v34, %v3984_v23 }
 0x241   :  { %4361 = vmatpush.msrb.mxu0 %v4302_v14  ;;  %4381 = vmatpush.msrb.mxu1 %v4318_v15 }
 0x242   :  { %4401 = vmatpush.msrb.mxu2 %v4334_v25  ;;  %v4010_v47 = vadd.f32 %v7536_v9, %v3997_v50  ;;  %v4294_v9 = vld [vmem:[#allocation7 + $0x20] sm:$0xff] }
 0x243   :  { %4362 = vmatpush.msrb.mxu0 %v4301_v26  ;;  %4382 = vmatpush.msrb.mxu1 %v4317_v31  ;;  %v4074_v34 = vpop.f32.mrf.mxu3  ;;  %v4350_v50 = vld [vmem:[#allocation7 + $0x1e0] sm:$0xff] }
 0x244   :  { %4402 = vmatpush.msrb.mxu2 %v4333_v27  ;;  %v4023_v58 = vadd.f32 %v7538_v53, %v4010_v47  ;;  %v4308_v53 = vld [vmem:[#allocation7 + $0x90] sm:$0xff]  ;;  %v4075_v12 = vadd.f32 %v4074_v34, %v693_v46  ;;  %v4346_v47 = vld [vmem:[#allocation7 + $0x1c0] sm:$0xff] }
 0x245   :  { %4363 = vmatpush.msrb.mxu0 %v4300_v7  ;;  %4383 = vmatpush.msrb.mxu1 %v4316_v22  ;;  %v4342_v34 = vld [vmem:[#allocation7 + $0x1a0] sm:$0xff] }
 0x246   :  { %4403 = vmatpush.msrb.mxu2 %v4332_v30  ;;  %v4063_v35 = vpop.f32.mrf.mxu2  ;;  %v4036_v44 = vadd.f32 %v4035_v52, %v4023_v58 }
 0x247   :  { %4364 = vmatpush.msrb.mxu0 %v4299_v32  ;;  %4384 = vmatpush.msrb.mxu1 %v4315_v33  ;;  %v4353_v33 = vld [vmem:[#allocation7 + $0x1f8] sm:$0xff]  ;;  %v4338_v35 = vld [vmem:[#allocation7 + $0x180] sm:$0xff] }
 0x248   :  { %4404 = vmatpush.msrb.mxu2 %v4331_v37  ;;  %v4049_v28 = vadd.f32 %v4048_v20, %v4036_v44  ;;  %v4352_v37 = vld [vmem:[#allocation7 + $0x1f0] sm:$0xff]  ;;  %4418 = vmatpush.msrb.mxu3 %v4353_v33 }
 0x249   :  { %4365 = vmatpush.msrb.mxu0 %v4298_v51  ;;  %4385 = vmatpush.msrb.mxu1 %v4314_v38  ;;  %v4351_v38 = vld [vmem:[#allocation7 + $0x1e8] sm:$0xff] }
 0x24a   :  { %4405 = vmatpush.msrb.mxu2 %v4330_v41  ;;  %v4062_v3 = vadd.f32 %v4061_v18, %v4049_v28  ;;  %4419 = vmatpush.msrb.mxu3 %v4352_v37  ;;  %v4349_v41 = vld [vmem:[#allocation7 + $0x1d8] sm:$0xff] }
 0x24b   :  { %4366 = vmatpush.msrb.mxu0 %v4297_v40  ;;  %4386 = vmatpush.msrb.mxu1 %v4313_v19  ;;  %v4076_v21 = vpop.f32.mrf.mxu3  ;;  %v4348_v40 = vld [vmem:[#allocation7 + $0x1d0] sm:$0xff] }
 0x24c   :  { %4406 = vmatpush.msrb.mxu2 %v4329_v49  ;;  %v4288_v24 = vmax.f32 %v4062_v3, 0.0  ;;  %4420 = vmatpush.msrb.mxu3 %v4351_v38  ;;  %v4345_v49 = vld [vmem:[#allocation7 + $0x1b8] sm:$0xff] }
 0x24d   :  { %4367 = vmatpush.msrb.mxu0 %v4296_v55  ;;  %4387 = vmatpush.msrb.mxu1 %v4312_v13  ;;  %v4344_v55 = vld [vmem:[#allocation7 + $0x1b0] sm:$0xff] }
 0x24e   :  { %4407 = vmatpush.msrb.mxu2 %v4328_v56  ;;  %4421 = vmatpush.msrb.mxu3 %v4350_v50  ;;  %v4343_v56 = vld [vmem:[#allocation7 + $0x1a8] sm:$0xff] }
 0x24f   :  { %4368 = vmatpush.msrb.mxu0 %v4295_v57  ;;  %4388 = vmatpush.msrb.mxu1 %v4311_v42  ;;  %v4341_v42 = vld [vmem:[#allocation7 + $0x198] sm:$0xff] }
 0x250   :  { %4408 = vmatpush.msrb.mxu2 %v4327_v36  ;;  %4422 = vmatpush.msrb.mxu3 %v4349_v41  ;;  %v4340_v36 = vld [vmem:[#allocation7 + $0x190] sm:$0xff] }
 0x251   :  { %4369 = vmatpush.msrb.mxu0 %v4294_v9  ;;  %4389 = vmatpush.msrb.mxu1 %v4310_v59  ;;  %v4339_v59 = vld [vmem:[#allocation7 + $0x188] sm:$0xff] }
 0x252   :  { %4409 = vmatpush.msrb.mxu2 %v4326_v29  ;;  %4423 = vmatpush.msrb.mxu3 %v4348_v40 }
 0x253   :  { %4370 = vmatpush.msrb.mxu0 %v4293_v16  ;;  %4390 = vmatpush.msrb.mxu1 %v4309_v60 }
 0x254   :  { %4410 = vmatpush.msrb.mxu2 %v4325_v61  ;;  %4424 = vmatpush.msrb.mxu3 %v4347_v45 }
 0x255   :  { %4371 = vmatpush.msrb.mxu0 %v4292_v62  ;;  %4391 = vmatpush.msrb.mxu1 %v4308_v53 }
 0x256   :  { %4411 = vmatpush.msrb.mxu2 %v4324_v4  ;;  %v4087_v43 = vpop.f32.mrf.mxu0  ;;  %4425 = vmatpush.msrb.mxu3 %v4346_v47 }
 0x257   :  { %4372 = vmatpush.msrb.mxu0 %v4291_v0  ;;  %4392 = vmatpush.msrb.mxu1 %v4307_v1  ;;  %v4088_v14 = vadd.f32 %v4087_v43, %v4075_v12  ;;  %v4100_v15 = vpop.f32.mrf.mxu1 }
 0x258   :  { %4412 = vmatpush.msrb.mxu2 %v4323_v5  ;;  %4426 = vmatpush.msrb.mxu3 %v4345_v49 }
 0x259   :  { %4373 = vmatpush.msrb.mxu0 %v4290_v6  ;;  %4393 = vmatpush.msrb.mxu1 %v4306_v8  ;;  %v4101_v25 = vadd.f32 %v4100_v15, %v4088_v14  ;;  %v7171_v14 = vld [vmem:[#allocation8] ss:$0 sm:$0xff] }
 0x25a   :  { %4413 = vmatpush.msrb.mxu2 %v4322_v10  ;;  %4374 = vmatmul.f32.vlgmr.msrb.gmra.mxu0 %v4286_v11 }
 0x25b   :  { %4394 = vmatmul.f32.vlgmr.msrb.gmra.mxu1 %v4287_v17  ;;  %4414 = vmatmul.f32.vlgmr.msrb.gmra.mxu2 %v4288_v24 }
 0x25c   :  { %4427 = vmatpush.msrb.mxu3 %v4344_v55 }
 0x25e   :  { %v4113_v26 = vpop.f32.mrf.mxu2  ;;  %v4089_v52 = vpop.f32.mrf.mxu0  ;;  %4428 = vmatpush.msrb.mxu3 %v4343_v56 }
 0x25f   :  { %v4114_v31 = vadd.f32 %v4113_v26, %v4101_v25  ;;  %v4102_v63 = vpop.f32.mrf.mxu1 }
 0x260   :  { %4429 = vmatpush.msrb.mxu3 %v4342_v34 }
 0x262   :  { %4430 = vmatpush.msrb.mxu3 %v4341_v42 }
 0x263   :  { %v4126_v2 = vpop.f32.mrf.mxu3 }
 0x264   :  { %v4127_v27 = vadd.f32 %v4126_v2, %v4114_v31  ;;  %4431 = vmatpush.msrb.mxu3 %v4340_v36 }
 0x266   :  { %v4115_v20 = vpop.f32.mrf.mxu2  ;;  %4432 = vmatpush.msrb.mxu3 %v4339_v59 }
 0x268   :  { %4433 = vmatpush.msrb.mxu3 %v4338_v35 }
 0x26b   :  { %v4128_v48 = vpop.f32.mrf.mxu3 }
 0x276   :  { %v4139_v7 = vpop.f32.mrf.mxu0 }
 0x277   :  { %v4152_v22 = vpop.f32.mrf.mxu1  ;;  %v4140_v29 = vadd.f32 %v4139_v7, %v4127_v27 }
 0x279   :  { %v4153_v60 = vadd.f32 %v4152_v22, %v4140_v29 }
 0x27e   :  { %v4165_v23 = vpop.f32.mrf.mxu2  ;;  %v4141_v30 = vpop.f32.mrf.mxu0 }
 0x27f   :  { %v4154_v32 = vpop.f32.mrf.mxu1  ;;  %v4166_v61 = vadd.f32 %v4165_v23, %v4153_v60 }
 0x283   :  { %v4178_v51 = vpop.f32.mrf.mxu3 }
 0x284   :  { %v4179_v53 = vadd.f32 %v4178_v51, %v4166_v61 }
 0x286   :  { %v4167_v18 = vpop.f32.mrf.mxu2 }
 0x28b   :  { %v4180_v19 = vpop.f32.mrf.mxu3 }
 0x296   :  { %v4191_v54 = vpop.f32.mrf.mxu0 }
 0x297   :  { %v4204_v13 = vpop.f32.mrf.mxu1  ;;  %v4192_v28 = vadd.f32 %v4191_v54, %v4179_v53 }
 0x299   :  { %v4205_v4 = vadd.f32 %v4204_v13, %v4192_v28 }
 0x29e   :  { %v4217_v57 = vpop.f32.mrf.mxu2  ;;  %v4193_v58 = vpop.f32.mrf.mxu0 }
 0x29f   :  { %v4206_v9 = vpop.f32.mrf.mxu1  ;;  %v4218_v21 = vadd.f32 %v4217_v57, %v4205_v4 }
 0x2a3   :  { %v4230_v44 = vpop.f32.mrf.mxu3 }
 0x2a4   :  { %v4231_v0 = vadd.f32 %v4230_v44, %v4218_v21 }
 0x2a6   :  { %v4219_v16 = vpop.f32.mrf.mxu2 }
 0x2ab   :  { %v4232_v62 = vpop.f32.mrf.mxu3 }
 0x2b6   :  { %v4243_v1 = vpop.f32.mrf.mxu0 }
 0x2b7   :  { %v4256_v3 = vpop.f32.mrf.mxu1  ;;  %v4244_v5 = vadd.f32 %v4243_v1, %v4231_v0 }
 0x2b9   :  { %v4257_v6 = vadd.f32 %v4256_v3, %v4244_v5 }
 0x2be   :  { %v4269_v8 = vpop.f32.mrf.mxu2  ;;  %v4245_v46 = vpop.f32.mrf.mxu0 }
 0x2bf   :  { %v4282_v10 = vpop.f32.mrf.mxu3  ;;  %v4270_v39 = vadd.f32 %v4269_v8, %v4257_v6  ;;  %v4258_v11 = vpop.f32.mrf.mxu1 }
 0x2c1   :  { %v4283_v17 = vadd.f32 %v4282_v10, %v4270_v39 }
 0x2c3   :  { %v4289_v24 = vmax.f32 %v4283_v17, 0.0 }
 0x2c5   :  { %4434 = vmatmul.f32.vlgmr.msrb.gmra.mxu3 %v4289_v24 }
 0x2c6   :  { %v4271_v12 = vpop.f32.mrf.mxu2 }
 0x2c7   :  { %v4284_v43 = vpop.f32.mrf.mxu3 }
 0x2d7   :  { %v4375_v15 = vpop.f32.mrf.mxu0 }
 0x2d8   :  { %v4376_v25 = vadd.f32 %v7171_v14, %v4375_v15  ;;  %v4395_v26 = vpop.f32.mrf.mxu1 }
 0x2da   :  { %v4396_v52 = vadd.f32 %v4395_v26, %v4376_v25 }
 0x2de   :  { %v4415_v31 = vpop.f32.mrf.mxu2 }
 0x2df   :  { %v4416_v63 = vadd.f32 %v4415_v31, %v4396_v52 }
 0x348   :  { %v4435_v2 = vpop.f32.mrf.mxu3 }
 0x349   :  { %v4436_v27 = vadd.f32 %v4435_v2, %v4416_v63 }
 0x34b   :  { %4438 = vst [vmem:[#allocation10] sm:$0x3] %v4436_v27 }
 0x34c   :  { %4449 = dma.vmem_to_hbm [thread:$0]  %s4445_s23, 32, %s4447_s26, [#allocation4]  }
 0x34d   :  { %7301 = dma.done.wait [#allocation4], 32  }
 0x34e   :  { %7302 = vsyncadd [#allocation4], 4294967264 }
 0x34f   :  { %4454 = vsyncpa [#allocation3], 1 }
 0x350   :  { %4455 = vsyncpa [#allocation6], 1 }
 0x351   :  { %4456 = vsyncpa [#allocation9], 1 }
 0x352   :  { %4457 = vsyncpa [#allocation4], 1 }

</bundles_post_ra>
